<compile_context>
chip_gen: v5e
topology: v5e:2x2
jax: 0.10.0
libtpu: 0.0.40
codegen_flags: <defaults>
</compile_context>

<pallas_src>
import functools

import jax
import jax.numpy as jnp
from jax.experimental import pallas as pl
from jax.experimental.pallas import tpu as pltpu


def _round_up(x, m):
    return -(-x // m) * m


def _decoder_fused_kernel(src_ref, dst_ref, ps_ref, pd_ref, b1_ref,
                          w2_ref, b2_ref, w3_ref, b3_ref, out_ref,
                          *, use_sigmoid: bool):
    """Fused gather + MLP.  ps/pd = node_feature @ W1_src / W1_dst (resident in VMEM)."""
    e_tile = src_ref.shape[0]
    n_nodes = ps_ref.shape[0]

    # Row gather expressed as a one-hot matmul on the MXU (exact: one 1.0 per row),
    # which simultaneously applies lin1 because the node table is pre-projected.
    node_iota = jax.lax.broadcasted_iota(jnp.int32, (e_tile, n_nodes), 1)
    onehot_s = (node_iota == src_ref[...]).astype(ps_ref.dtype)   # [e_tile, N]
    onehot_d = (node_iota == dst_ref[...]).astype(pd_ref.dtype)   # [e_tile, N]
    h = (jnp.dot(onehot_s, ps_ref[...], preferred_element_type=jnp.float32)
         + jnp.dot(onehot_d, pd_ref[...], preferred_element_type=jnp.float32)
         + b1_ref[...])
    h = jnp.maximum(h.astype(w2_ref.dtype), 0)                    # relu in compute dtype

    h = (jnp.dot(h, w2_ref[...], preferred_element_type=jnp.float32)
         + b2_ref[...])
    h = jnp.maximum(h, 0.0)                                        # relu

    # lin3 (H -> 1): VPU multiply + XLU lane reduce instead of an N=1 MXU matmul.
    # (For tiny H one could additionally pack 4 edges per vreg row here.)
    score = jnp.sum(h * w3_ref[...], axis=-1) + b3_ref[0]          # [e_tile] f32
    if use_sigmoid:
        # exp and approximate reciprocal both run on the otherwise-idle EUP slot.
        score = pl.reciprocal(1.0 + jnp.exp(-score), approx=True)

    # Lane-dense store: edges live on the lane axis of the output row.
    out_ref[...] = score.reshape(out_ref.shape).astype(out_ref.dtype)


def _decoder_gathered_kernel(zcat_ref, w1_ref, b1_ref, w2_ref, b2_ref,
                             w3_ref, b3_ref, out_ref, *, use_sigmoid: bool):
    """Fallback: pre-gathered concatenated edge features [e_tile, 2H], single K=2H matmul."""
    h = (jnp.dot(zcat_ref[...], w1_ref[...], preferred_element_type=jnp.float32)
         + b1_ref[...])
    h = jnp.maximum(h.astype(w2_ref.dtype), 0)
    h = (jnp.dot(h, w2_ref[...], preferred_element_type=jnp.float32)
         + b2_ref[...])
    h = jnp.maximum(h, 0.0)
    score = jnp.sum(h * w3_ref[...], axis=-1) + b3_ref[0]
    if use_sigmoid:
        score = pl.reciprocal(1.0 + jnp.exp(-score), approx=True)
    out_ref[...] = score.reshape(out_ref.shape).astype(out_ref.dtype)


def gnn_decoder_forward(node_feature, edge_index, params, *, sigmoid=True,
                        e_tile=1024, compute_dtype=jnp.bfloat16,
                        max_fused_nodes=1024):
    """node_feature: [N, H] f32, edge_index: [2, E] int -> [E] f32 edge scores."""
    N, H = node_feature.shape
    E = edge_index.shape[-1]
    assert e_tile % 256 == 0, "e_tile must be a multiple of 256 (lane width + bf16 sublanes)"

    # Shrink the tile for small edge counts, then force an even tile count so the
    # "parallel" edge axis can shard across both v7x TensorCores.
    e_tile = min(e_tile, max(256, _round_up(-(-E // 2), 256)))
    num_tiles = -(-E // e_tile)
    num_tiles += num_tiles % 2
    e_pad = num_tiles * e_tile

    src = edge_index[0].astype(jnp.int32)
    dst = edge_index[1].astype(jnp.int32)
    if e_pad != E:
        pad = e_pad - E
        src = jnp.pad(src, (0, pad))          # padded edges hit node 0; sliced off below
        dst = jnp.pad(dst, (0, pad))

    w1, b1, w2, b2 = params["w1"], params["b1"], params["w2"], params["b2"]
    w3, b3 = params["w3"], params["b3"]
    itemsize = jnp.dtype(compute_dtype).itemsize

    b1r = b1.reshape(1, H).astype(jnp.float32)
    b2r = b2.reshape(1, H).astype(jnp.float32)
    w3r = w3.reshape(1, H).astype(jnp.float32)          # lin3 weight as a lane row
    b3s = b3.reshape(1).astype(jnp.float32)             # scalar bias -> SMEM
    w2c = w2.astype(compute_dtype)

    # Constant-index blocks are DMA'd only once (block index never changes); the
    # extra pipeline buffer they keep is a few KiB here, so pl.Buffered(1) is skipped.
    full = lambda shape: pl.BlockSpec(shape, lambda i: (0,) * len(shape))
    smem_spec = pl.BlockSpec(memory_space=pltpu.MemorySpace.SMEM)
    out_spec = pl.BlockSpec((1, 1, e_tile), lambda i: (i, 0, 0))
    out_shape = jax.ShapeDtypeStruct((num_tiles, 1, e_tile), jnp.float32)

    if N <= max_fused_nodes:
        # Fused-gather path: only edge ids stream from HBM; the node table (already
        # projected by the two halves of lin1) stays resident in VMEM.
        p_src = (node_feature.astype(jnp.float32)
                 @ w1[:H].astype(jnp.float32)).astype(compute_dtype)   # [N, H]
        p_dst = (node_feature.astype(jnp.float32)
                 @ w1[H:].astype(jnp.float32)).astype(compute_dtype)   # [N, H]
        ids_s = src.reshape(e_pad, 1)
        ids_d = dst.reshape(e_pad, 1)
        id_spec = pl.BlockSpec((e_tile, 1), lambda i: (i, 0))

        kernel = functools.partial(_decoder_fused_kernel, use_sigmoid=sigmoid)
        args = (ids_s, ids_d, p_src, p_dst, b1r, w2c, b2r, w3r, b3s)
        in_specs = [id_spec, id_spec, full((N, H)), full((N, H)),
                    full((1, H)), full((H, H)), full((1, H)), full((1, H)),
                    smem_spec]

        flops = e_pad * (4 * N * H + 2 * H * H + 2 * H)
        bytes_accessed = (2 * e_pad * 4 + 2 * N * H * itemsize
                          + H * H * itemsize + (3 * H + 1) * 4 + e_pad * 4)
        vmem_est = (2 * 2 * e_tile * 4 * 2              # edge-id tiles, double-buffered
                    + 2 * e_tile * 4                    # output row, double-buffered
                    + 2 * (2 * N * H + H * H) * itemsize + 4 * H * 4
                    + 2 * e_tile * N * 4                # one-hot intermediates (f32)
                    + 4 * e_tile * H * 4)               # activation intermediates
    else:
        # Large node table: keep the wrapper gather but emit ONE concatenated
        # [E_pad, 2H] stream and do lin1 as a single K=2H matmul.
        # TODO(synk): manual double-buffered DMA gather from a pl.ANY node table.
        zcat = jnp.concatenate([node_feature[src], node_feature[dst]], axis=-1)
        zcat = zcat.astype(compute_dtype)                               # [E_pad, 2H]
        w1c = w1.astype(compute_dtype)                                  # [2H, H]

        kernel = functools.partial(_decoder_gathered_kernel, use_sigmoid=sigmoid)
        args = (zcat, w1c, b1r, w2c, b2r, w3r, b3s)
        in_specs = [pl.BlockSpec((e_tile, 2 * H), lambda i: (i, 0)),
                    full((2 * H, H)), full((1, H)), full((H, H)), full((1, H)),
                    full((1, H)), smem_spec]

        flops = e_pad * (6 * H * H + 2 * H)
        bytes_accessed = (e_pad * 2 * H * itemsize + 3 * H * H * itemsize
                          + (3 * H + 1) * 4 + e_pad * 4)
        vmem_est = (2 * e_tile * 2 * H * itemsize       # edge-feature tile, double-buffered
                    + 2 * e_tile * 4
                    + 2 * 3 * H * H * itemsize + 4 * H * 4
                    + 4 * e_tile * H * 4)

    # Raise the scoped-VMEM limit only when the footprint needs it (v5e default is
    # 16 MiB); cap at v7x's 64 MiB physical VMEM.
    vmem_limit = None
    if vmem_est > 12 * 1024 * 1024:
        vmem_limit = int(min(64 * 1024 * 1024, 2 * vmem_est))

    cost = pl.CostEstimate(flops=int(flops),
                           transcendentals=int(e_pad if sigmoid else 0),
                           bytes_accessed=int(bytes_accessed))

    out = pl.pallas_call(
        kernel,
        out_shape=out_shape,
        grid_spec=pltpu.PrefetchScalarGridSpec(
            num_scalar_prefetch=0,
            grid=(num_tiles,),
            in_specs=in_specs,
            out_specs=out_spec,
        ),
        compiler_params=pltpu.CompilerParams(
            dimension_semantics=("parallel",),
            vmem_limit_bytes=vmem_limit),
        cost_estimate=cost,
    )(*args)

    return out.reshape(-1)[:E]                           # [E], matches z.view(-1)


def init_params(key, hidden_channels):
    """Deterministic synthetic init (shapes match nn.Linear in the module)."""
    H = hidden_channels
    k1, k2, k3, k4, k5, k6 = jax.random.split(key, 6)
    s = 0.1
    return {
        "w1": s * jax.random.normal(k1, (2 * H, H), jnp.float32),   # lin1.weight.T
        "b1": s * jax.random.normal(k4, (H,), jnp.float32),
        "w2": s * jax.random.normal(k2, (H, H), jnp.float32),       # lin2.weight.T
        "b2": s * jax.random.normal(k5, (H,), jnp.float32),
        "w3": s * jax.random.normal(k3, (H, 1), jnp.float32),       # lin3.weight.T
        "b3": s * jax.random.normal(k6, (1,), jnp.float32),
    }


def _reference(node_feature, edge_index, params, sigmoid):
    zs = node_feature[edge_index[0]]
    zd = node_feature[edge_index[1]]
    z = jnp.concatenate([zs, zd], axis=-1)
    z = jax.nn.relu(z @ params["w1"] + params["b1"])
    z = jax.nn.relu(z @ params["w2"] + params["b2"])
    z = z @ params["w3"] + params["b3"]
    if sigmoid:
        z = jax.nn.sigmoid(z)
    return z.reshape(-1)


if __name__ == "__main__":
    key = jax.random.PRNGKey(0)
    k_feat, k_edge, k_par = jax.random.split(key, 3)

    N, H, E = 64, 32, 1000                       # nodes, hidden_channels, edges
    node_feature = jax.random.normal(k_feat, (N, H), jnp.float32)
    edge_index = jax.random.randint(k_edge, (2, E), 0, N, jnp.int32)
    params = init_params(k_par, H)

    ref_sig = _reference(node_feature, edge_index, params, sigmoid=True)
    ref_lin = _reference(node_feature, edge_index, params, sigmoid=False)

    # Fused-gather path, f32, no sigmoid: strict check of the gather + matmul/relu chain.
    out = jax.block_until_ready(
        gnn_decoder_forward(node_feature, edge_index, params,
                            sigmoid=False, compute_dtype=jnp.float32))
    assert out.shape == (E,)
    assert jnp.allclose(out, ref_lin, atol=1e-4, rtol=1e-4), "fused f32 (no sigmoid) mismatch"

    # Fused-gather path, f32, sigmoid (approx EUP reciprocal -> relaxed tolerance).
    out = jax.block_until_ready(
        gnn_decoder_forward(node_feature, edge_index, params,
                            sigmoid=True, compute_dtype=jnp.float32))
    assert jnp.allclose(out, ref_sig, atol=2e-2, rtol=2e-2), "fused f32 sigmoid mismatch"

    # Fused-gather path, bf16 compute with f32 accumulation.
    out = jax.block_until_ready(
        gnn_decoder_forward(node_feature, edge_index, params,
                            sigmoid=True, compute_dtype=jnp.bfloat16))
    assert jnp.allclose(out, ref_sig, atol=5e-2, rtol=5e-2), "fused bf16 sigmoid mismatch"

    # Fallback path (wrapper gather, single merged [E, 2H] stream), forced for coverage.
    out = jax.block_until_ready(
        gnn_decoder_forward(node_feature, edge_index, params,
                            sigmoid=False, compute_dtype=jnp.float32,
                            max_fused_nodes=0))
    assert jnp.allclose(out, ref_lin, atol=1e-4, rtol=1e-4), "gathered-path f32 mismatch"

    print("KERNEL_OK")
</pallas_src>

<mosaic_0001>
module attributes {stable_mosaic.version = 11 : i64} {
  func.func @_decoder_fused_kernel(%arg0: i32, %arg1: memref<512x1xi32, #tpu.memory_space<vmem>>, %arg2: memref<512x1xi32, #tpu.memory_space<vmem>>, %arg3: memref<64x32xf32, #tpu.memory_space<vmem>>, %arg4: memref<64x32xf32, #tpu.memory_space<vmem>>, %arg5: memref<1x32xf32, #tpu.memory_space<vmem>>, %arg6: memref<32x32xf32, #tpu.memory_space<vmem>>, %arg7: memref<1x32xf32, #tpu.memory_space<vmem>>, %arg8: memref<1x32xf32, #tpu.memory_space<vmem>>, %arg9: memref<1xf32, #tpu.memory_space<smem>>, %arg10: memref<1x1x512xf32, #tpu.memory_space<vmem>>) attributes {dimension_semantics = [#tpu.dimension_semantics<parallel>], iteration_bounds = array<i64: 2>, scalar_prefetch = 0 : i64, scratch_operands = 0 : i64, tpu.core_type = #tpu.core_type<tc>, window_params = [{transform_indices = @transform_0, window_bounds = array<i64: 512, 1>}, {transform_indices = @transform_1, window_bounds = array<i64: 512, 1>}, {pipeline_mode = #tpu.pipeline_mode<synchronous>, transform_indices = @transform_2, window_bounds = array<i64: 64, 32>}, {pipeline_mode = #tpu.pipeline_mode<synchronous>, transform_indices = @transform_3, window_bounds = array<i64: 64, 32>}, {pipeline_mode = #tpu.pipeline_mode<synchronous>, transform_indices = @transform_4, window_bounds = array<i64: 1, 32>}, {pipeline_mode = #tpu.pipeline_mode<synchronous>, transform_indices = @transform_5, window_bounds = array<i64: 32, 32>}, {pipeline_mode = #tpu.pipeline_mode<synchronous>, transform_indices = @transform_6, window_bounds = array<i64: 1, 32>}, {pipeline_mode = #tpu.pipeline_mode<synchronous>, transform_indices = @transform_7, window_bounds = array<i64: 1, 32>}, {transform_indices = @transform_8, window_bounds = array<i64: 1>}, {transform_indices = @transform_9, window_bounds = array<i64: 1, 1, 512>}]} {
    %0 = tpu.iota {dimensions = array<i32: 1>} : vector<512x64xi32>
    %c0 = arith.constant 0 : index
    %c0_0 = arith.constant 0 : index
    %1 = vector.load %arg1[%c0, %c0_0] : memref<512x1xi32, #tpu.memory_space<vmem>>, vector<512x1xi32>
    %2 = vector.broadcast %1 : vector<512x1xi32> to vector<512x64xi32>
    %3 = arith.cmpi eq, %0, %2 : vector<512x64xi32>
    %4 = arith.extui %3 : vector<512x64xi1> to vector<512x64xi32>
    %5 = arith.sitofp %4 : vector<512x64xi32> to vector<512x64xf32>
    %c0_1 = arith.constant 0 : index
    %c0_2 = arith.constant 0 : index
    %6 = vector.load %arg2[%c0_1, %c0_2] : memref<512x1xi32, #tpu.memory_space<vmem>>, vector<512x1xi32>
    %7 = vector.broadcast %6 : vector<512x1xi32> to vector<512x64xi32>
    %8 = arith.cmpi eq, %0, %7 : vector<512x64xi32>
    %9 = arith.extui %8 : vector<512x64xi1> to vector<512x64xi32>
    %10 = arith.sitofp %9 : vector<512x64xi32> to vector<512x64xf32>
    %c0_3 = arith.constant 0 : index
    %c0_4 = arith.constant 0 : index
    %11 = vector.load %arg3[%c0_3, %c0_4] : memref<64x32xf32, #tpu.memory_space<vmem>>, vector<64x32xf32>
    %cst = arith.constant dense<0.000000e+00> : vector<512x32xf32>
    %12 = tpu.matmul %5, %11, %cst {dimension_numbers = #tpu.dot_dimension_numbers<[1], [0], [0], [1], [0, 0, 1, 1], [], []>} : vector<512x64xf32>, vector<64x32xf32>, vector<512x32xf32> -> vector<512x32xf32>
    %c0_5 = arith.constant 0 : index
    %c0_6 = arith.constant 0 : index
    %13 = vector.load %arg4[%c0_5, %c0_6] : memref<64x32xf32, #tpu.memory_space<vmem>>, vector<64x32xf32>
    %cst_7 = arith.constant dense<0.000000e+00> : vector<512x32xf32>
    %14 = tpu.matmul %10, %13, %cst_7 {dimension_numbers = #tpu.dot_dimension_numbers<[1], [0], [0], [1], [0, 0, 1, 1], [], []>} : vector<512x64xf32>, vector<64x32xf32>, vector<512x32xf32> -> vector<512x32xf32>
    %15 = arith.addf %12, %14 : vector<512x32xf32>
    %c0_8 = arith.constant 0 : index
    %c0_9 = arith.constant 0 : index
    %16 = vector.load %arg5[%c0_8, %c0_9] : memref<1x32xf32, #tpu.memory_space<vmem>>, vector<1x32xf32>
    %17 = vector.broadcast %16 : vector<1x32xf32> to vector<512x32xf32>
    %18 = arith.addf %15, %17 : vector<512x32xf32>
    %cst_10 = arith.constant 0.000000e+00 : f32
    %19 = vector.broadcast %cst_10 : f32 to vector<512x32xf32>
    %20 = arith.maximumf %18, %19 : vector<512x32xf32>
    %c0_11 = arith.constant 0 : index
    %c0_12 = arith.constant 0 : index
    %21 = vector.load %arg6[%c0_11, %c0_12] : memref<32x32xf32, #tpu.memory_space<vmem>>, vector<32x32xf32>
    %cst_13 = arith.constant dense<0.000000e+00> : vector<512x32xf32>
    %22 = tpu.matmul %20, %21, %cst_13 {dimension_numbers = #tpu.dot_dimension_numbers<[1], [0], [0], [1], [0, 0, 1, 1], [], []>} : vector<512x32xf32>, vector<32x32xf32>, vector<512x32xf32> -> vector<512x32xf32>
    %c0_14 = arith.constant 0 : index
    %c0_15 = arith.constant 0 : index
    %23 = vector.load %arg7[%c0_14, %c0_15] : memref<1x32xf32, #tpu.memory_space<vmem>>, vector<1x32xf32>
    %24 = vector.broadcast %23 : vector<1x32xf32> to vector<512x32xf32>
    %25 = arith.addf %22, %24 : vector<512x32xf32>
    %cst_16 = arith.constant 0.000000e+00 : f32
    %26 = vector.broadcast %cst_16 : f32 to vector<512x32xf32>
    %27 = arith.maximumf %25, %26 : vector<512x32xf32>
    %c0_17 = arith.constant 0 : index
    %c0_18 = arith.constant 0 : index
    %28 = vector.load %arg8[%c0_17, %c0_18] : memref<1x32xf32, #tpu.memory_space<vmem>>, vector<1x32xf32>
    %29 = vector.broadcast %28 : vector<1x32xf32> to vector<512x32xf32>
    %30 = arith.mulf %27, %29 : vector<512x32xf32>
    %cst_19 = arith.constant dense<0.000000e+00> : vector<512xf32>
    %31 = vector.multi_reduction <add>, %30, %cst_19 [1] : vector<512x32xf32> to vector<512xf32>
    %c0_20 = arith.constant 0 : index
    %32 = memref.load %arg9[%c0_20] : memref<1xf32, #tpu.memory_space<smem>>
    %33 = vector.broadcast %32 : f32 to vector<512xf32>
    %34 = arith.addf %31, %33 : vector<512xf32>
    %35 = vector.shape_cast %34 : vector<512xf32> to vector<1x1x512xf32>
    %c0_21 = arith.constant 0 : index
    %c0_22 = arith.constant 0 : index
    %c0_23 = arith.constant 0 : index
    %36 = vector.load %arg10[%c0_21, %c0_22, %c0_23] : memref<1x1x512xf32, #tpu.memory_space<vmem>>, vector<1x1x512xf32>
    tpu.vector_store %arg10[%c0_21, %c0_22, %c0_23], %35 {strides = array<i32>} : memref<1x1x512xf32, #tpu.memory_space<vmem>>, vector<1x1x512xf32>,
    return
  }
  func.func @transform_0(%arg0: i32) -> (i32, i32) {
    %c0_i32 = arith.constant 0 : i32
    %c0_i32_0 = arith.constant 0 : i32
    return %arg0, %c0_i32 : i32, i32
  }
  func.func @transform_1(%arg0: i32) -> (i32, i32) {
    %c0_i32 = arith.constant 0 : i32
    %c0_i32_0 = arith.constant 0 : i32
    return %arg0, %c0_i32 : i32, i32
  }
  func.func @transform_2(%arg0: i32) -> (i32, i32) {
    %c0_i32 = arith.constant 0 : i32
    %c0_i32_0 = arith.constant 0 : i32
    %c0_i32_1 = arith.constant 0 : i32
    return %c0_i32, %c0_i32_0 : i32, i32
  }
  func.func @transform_3(%arg0: i32) -> (i32, i32) {
    %c0_i32 = arith.constant 0 : i32
    %c0_i32_0 = arith.constant 0 : i32
    %c0_i32_1 = arith.constant 0 : i32
    return %c0_i32, %c0_i32_0 : i32, i32
  }
  func.func @transform_4(%arg0: i32) -> (i32, i32) {
    %c0_i32 = arith.constant 0 : i32
    %c0_i32_0 = arith.constant 0 : i32
    %c0_i32_1 = arith.constant 0 : i32
    return %c0_i32, %c0_i32_0 : i32, i32
  }
  func.func @transform_5(%arg0: i32) -> (i32, i32) {
    %c0_i32 = arith.constant 0 : i32
    %c0_i32_0 = arith.constant 0 : i32
    %c0_i32_1 = arith.constant 0 : i32
    return %c0_i32, %c0_i32_0 : i32, i32
  }
  func.func @transform_6(%arg0: i32) -> (i32, i32) {
    %c0_i32 = arith.constant 0 : i32
    %c0_i32_0 = arith.constant 0 : i32
    %c0_i32_1 = arith.constant 0 : i32
    return %c0_i32, %c0_i32_0 : i32, i32
  }
  func.func @transform_7(%arg0: i32) -> (i32, i32) {
    %c0_i32 = arith.constant 0 : i32
    %c0_i32_0 = arith.constant 0 : i32
    %c0_i32_1 = arith.constant 0 : i32
    return %c0_i32, %c0_i32_0 : i32, i32
  }
  func.func @transform_8(%arg0: i32) -> i32 {
    %c0_i32 = arith.constant 0 : i32
    %c0_i32_0 = arith.constant 0 : i32
    return %c0_i32 : i32
  }
  func.func @transform_9(%arg0: i32) -> (i32, i32, i32) {
    %c0_i32 = arith.constant 0 : i32
    %c0_i32_0 = arith.constant 0 : i32
    %c0_i32_1 = arith.constant 0 : i32
    return %arg0, %c0_i32, %c0_i32_0 : i32, i32, i32
  }
}

</mosaic_0001>

<bundles_post_ra>
// kernel: tpu_custom_call.1
= control target key start
LH: loop header
LB: loop body
LE: loop exit
PB: predicated region body
PF: predicated region fallthrough
CT: control target
= control target key end

     0   :  { %s7145_s0 = inlined_call_operand.vmem [shape: s32[1024,1], index: 0, kind: input, shape index: {}]   ;;  %s7146_s1 = inlined_call_operand.vmem [shape: s32[1024,1], index: 1, kind: input, shape index: {}]   ;;  %s7147_s2 = inlined_call_operand.vmem [shape: f32[64,32], index: 2, kind: input, shape index: {}]   ;;  %s7148_s3 = inlined_call_operand.vmem [shape: f32[64,32], index: 3, kind: input, shape index: {}]   ;;  %s7149_s4 = inlined_call_operand.vmem [shape: f32[1,32], index: 4, kind: input, shape index: {}]   ;;  %s7150_s5 = inlined_call_operand.vmem [shape: f32[32,32], index: 5, kind: input, shape index: {}]   ;;  %s7151_s6 = inlined_call_operand.vmem [shape: f32[1,32], index: 6, kind: input, shape index: {}]   ;;  %s7152_s7 = inlined_call_operand.vmem [shape: f32[1,32], index: 7, kind: input, shape index: {}]   ;;  %s7153_s8 = inlined_call_operand.<no memory space> [shape: f32[1], index: 8, kind: input, shape index: {}]   ;;  %s7154_s9 = inlined_call_operand.hbm [shape: f32[2,1,512], index: 9, kind: output, shape index: {}]  }
   0x1   :  { %14 = sst [smem:[#allocation2]] %s7153_s8 }
   0x2   :  { %15 = vsyncpa [#allocation4], 0 }
   0x3   :  { %17 = vsyncpa [#allocation4 + $0x1], 0  ;;  %s5137_s11 = smov 0   ;;  %s5139_s12 = smov 0  }
   0x4   :  { %s5141_s13 = smov 0   ;;  %s5143_s14 = smov 0  }
   0x5 LB: > { %s5158_s8 = sadd.s32 4294967295, %s5080_s14   ;;  %s4612_s15 = sadd.s32 4294967294, %s5080_s14   ;;  %s5080_s14 = sphi %s5143_s14, %s7213_s14   ;;  %s5076_s13 = sphi %s5141_s13, %s7212_s13   ;;  %s5072_s12 = sphi %s5139_s12, %s7211_s12   ;;  %s5068_s11 = sphi %s5137_s11, %s7210_s11  }
   0x6   : > { %s5162_s16 = sadd.s32 1, %s5080_s14   ;;  %s229_s17 = sadd.s32 1, %s5076_s13 }
   0x7   : > { %s226_s18 = ssub.s32 %s5080_s14, %s5162_s16  ;;  %p239_p0 = scmp.ne.s32.totalorder %s5076_s13, %s5072_s12 }
   0x8   : > { %p227_p1 = scmp.eq.s32.totalorder %s226_s18, 0  ;;  %p240_p2 = scmp.eq.s32.totalorder %s5158_s8, 1 }
   0x9   : > { %p245_p3 = scmp.ne.s32.totalorder %s5072_s12, %s5068_s11  ;;  %p246_p4 = scmp.eq.s32.totalorder %s4612_s15, 1 }
   0xa   : > { %s5173_s19 = scalar_select %p227_p1, %s5076_s13, %s229_s17  }
   0xb   : > { %p5175_p5 = por %p240_p2, %p239_p0  ;;  %p5179_p6 = por %p246_p4, %p245_p3 }
   0xc   : > { %p4615_p7 = scmp.ge.s32.totalorder %s5080_s14, 1  ;;  %p303_p8 = scmp.lt.s32.totalorder %s5080_s14, 3 }
   0xe   : > { %p304_p9 = pnand %p4615_p7, %p303_p8 }
  0x10   : > { %307 = sbr.rel (%p304_p9) target bundleno = 2013 (0x7dd), region = 56 }
  0x15   : > { %s4617_s22 = sshll.u32 %s5158_s8, 6  ;;  %v5082_v0 = vmov 0   ;;  %v5226_v28 = vld [vmem:[%s7147_s2 + $0x38] sm:$0xff]  ;;  %v5231_v29 = vld [vmem:[%s7147_s2 + $0x30] sm:$0xff]  ;;  %v5241_v33 = vld [vmem:[%s7147_s2 + $0x28] sm:$0xff]  ;;  %v7155_v54 = vlaneseq  ;;  %vm1270_vm0 = vcmask 523264  }
  0x16   : > { %5008 = vset.pattern.permute.xlu2 %v5082_v0  ;;  %5007 = vset.pattern.permute.xlu1 %v5082_v0  ;;  %p345_p10 = scmp.lt.s32.totalorder %s4617_s22, 127  ;;  %v5247_v34 = vld [vmem:[%s7147_s2 + $0x20] sm:$0xff]  ;;  %v5252_v35 = vld [vmem:[%s7147_s2 + $0x18] sm:$0xff]  ;;  %v5262_v39 = vld [vmem:[%s7147_s2 + $0x10] sm:$0xff]  ;;  %v7156_v62 = vmov 0.0   ;;  %s4942_s30 = sshll.u32 %s5158_s8, 2 }
  0x17   : > { %5006 = vset.pattern.permute.xlu0 %v5082_v0  ;;  %1872 = vmatpush.msra.mxu1 %v5226_v28  ;;  %v5268_v40 = vld [vmem:[%s7147_s2 + $0x8] sm:$0xff]  ;;  %v5274_v41 = vld [vmem:[%s7147_s2] sm:$0xff]  ;;  %v5296_v58 = vand.u32 127, %v7155_v54  ;;  %s4536_s17 = scalar_lea.hbm %s7154_s9, %s4942_s30 }
  0x18   : > { %s7215_s22 = smov (!%p345_p10, %s4617_s22), 127 }
  0x19   : > { %s4618_s23 = sshll.u32 %s7215_s22, 3  ;;  %1873 = vmatpush.msra.mxu1 %v5231_v29  ;;  %s4540_s22 = sshll.u32 %s4536_s17, 4  ;;  %s4541_s22 = int_to_ptr.hbm [resolvable:$true] %s4540_s22 }
  0x1a   : > { %s5194_s26 = scalar_lea.vmem %s7145_s0, %s4618_s23  ;;  %s5372_s24 = scalar_lea.vmem %s7146_s1, %s4618_s23 }
  0x1b   : > { %v362_v1 = vld [vmem:[%s5194_s26 + $0x20] sm:$0xff]  ;;  %v360_v2 = vld [vmem:[%s5194_s26 + $0x10] sm:$0xff]  ;;  %v363_v4 = vld [vmem:[%s5194_s26 + $0x28] sm:$0xff]  ;;  %1874 = vmatpush.msra.mxu1 %v5241_v33 }
  0x1c   : > { %v358_v3 = vld [vmem:[%s5194_s26] sm:$0xff]  ;;  %435 = vperm.xlu2 %5008, %v362_v1   ;;  %429 = vperm.xlu1 %5007, %v360_v2   ;;  %v361_v5 = vld [vmem:[%s5194_s26 + $0x18] sm:$0xff]  ;;  %v359_v6 = vld [vmem:[%s5194_s26 + $0x8] sm:$0xff] }
  0x1d   : > { %423 = vperm.xlu0 %5006, %v358_v3   ;;  %v366_v7 = vld [vmem:[%s5194_s26 + $0x40] sm:$0xff]  ;;  %v365_v8 = vld [vmem:[%s5194_s26 + $0x38] sm:$0xff]  ;;  %v364_v9 = vld [vmem:[%s5194_s26 + $0x30] sm:$0xff]  ;;  %1875 = vmatpush.msra.mxu1 %v5247_v34 }
  0x1e   : > { %v369_v10 = vld [vmem:[%s5194_s26 + $0x58] sm:$0xff]  ;;  %v368_v11 = vld [vmem:[%s5194_s26 + $0x50] sm:$0xff]  ;;  %v367_v12 = vld [vmem:[%s5194_s26 + $0x48] sm:$0xff] }
  0x1f   : > { %v372_v13 = vld [vmem:[%s5194_s26 + $0x70] sm:$0xff]  ;;  %v371_v14 = vld [vmem:[%s5194_s26 + $0x68] sm:$0xff]  ;;  %v370_v15 = vld [vmem:[%s5194_s26 + $0x60] sm:$0xff]  ;;  %1876 = vmatpush.msra.mxu1 %v5252_v35 }
  0x20   : > { %v375_v16 = vld [vmem:[%s5194_s26 + $0x88] sm:$0xff]  ;;  %v374_v17 = vld [vmem:[%s5194_s26 + $0x80] sm:$0xff]  ;;  %v373_v18 = vld [vmem:[%s5194_s26 + $0x78] sm:$0xff] }
  0x21   : > { %v378_v19 = vld [vmem:[%s5194_s26 + $0xa0] sm:$0xff]  ;;  %v377_v20 = vld [vmem:[%s5194_s26 + $0x98] sm:$0xff]  ;;  %v376_v21 = vld [vmem:[%s5194_s26 + $0x90] sm:$0xff]  ;;  %1877 = vmatpush.msra.mxu1 %v5262_v39 }
  0x22   : > { %v381_v22 = vld [vmem:[%s5194_s26 + $0xb8] sm:$0xff]  ;;  %v380_v23 = vld [vmem:[%s5194_s26 + $0xb0] sm:$0xff]  ;;  %v379_v24 = vld [vmem:[%s5194_s26 + $0xa8] sm:$0xff] }
  0x23   : > { %v384_v25 = vld [vmem:[%s5194_s26 + $0xd0] sm:$0xff]  ;;  %v383_v26 = vld [vmem:[%s5194_s26 + $0xc8] sm:$0xff]  ;;  %v382_v27 = vld [vmem:[%s5194_s26 + $0xc0] sm:$0xff]  ;;  %1878 = vmatpush.msra.mxu1 %v5268_v40 }
  0x24   : > { %438 = vperm.xlu2 %5008, %v363_v4   ;;  %432 = vperm.xlu1 %5007, %v361_v5   ;;  %v387_v30 = vld [vmem:[%s5194_s26 + $0xe8] sm:$0xff]  ;;  %v386_v31 = vld [vmem:[%s5194_s26 + $0xe0] sm:$0xff]  ;;  %v385_v32 = vld [vmem:[%s5194_s26 + $0xd8] sm:$0xff] }
  0x25   : > { %426 = vperm.xlu0 %5006, %v359_v6   ;;  %v390_v36 = vld [vmem:[%s5194_s26 + $0x100] sm:$0xff]  ;;  %v389_v37 = vld [vmem:[%s5194_s26 + $0xf8] sm:$0xff]  ;;  %v388_v38 = vld [vmem:[%s5194_s26 + $0xf0] sm:$0xff]  ;;  %1879 = vmatpush.msra.mxu1 %v5274_v41 }
  0x26   : > { %v393_v42 = vld [vmem:[%s5194_s26 + $0x118] sm:$0xff]  ;;  %v392_v43 = vld [vmem:[%s5194_s26 + $0x110] sm:$0xff]  ;;  %v391_v44 = vld [vmem:[%s5194_s26 + $0x108] sm:$0xff] }
  0x27   : > { %v396_v46 = vld [vmem:[%s5194_s26 + $0x130] sm:$0xff]  ;;  %v395_v47 = vld [vmem:[%s5194_s26 + $0x128] sm:$0xff]  ;;  %v394_v48 = vld [vmem:[%s5194_s26 + $0x120] sm:$0xff] }
  0x28   : > { %v399_v50 = vld [vmem:[%s5194_s26 + $0x148] sm:$0xff]  ;;  %v398_v51 = vld [vmem:[%s5194_s26 + $0x140] sm:$0xff]  ;;  %v397_v52 = vld [vmem:[%s5194_s26 + $0x138] sm:$0xff] }
  0x29   : > { %v402_v55 = vld [vmem:[%s5194_s26 + $0x160] sm:$0xff]  ;;  %v401_v56 = vld [vmem:[%s5194_s26 + $0x158] sm:$0xff]  ;;  %v400_v57 = vld [vmem:[%s5194_s26 + $0x150] sm:$0xff] }
  0x2a   : > { %v405_v0 = vld [vmem:[%s5194_s26 + $0x178] sm:$0xff]  ;;  %v404_v1 = vld [vmem:[%s5194_s26 + $0x170] sm:$0xff]  ;;  %v403_v2 = vld [vmem:[%s5194_s26 + $0x168] sm:$0xff] }
  0x2c   : > { %447 = vperm.xlu2 %5008, %v366_v7   ;;  %444 = vperm.xlu1 %5007, %v365_v8   ;;  %v408_v7 = vld [vmem:[%s5194_s26 + $0x190] sm:$0xff]  ;;  %v407_v8 = vld [vmem:[%s5194_s26 + $0x188] sm:$0xff] }
  0x2d   : > { %441 = vperm.xlu0 %5006, %v364_v9   ;;  %v406_v9 = vld [vmem:[%s5194_s26 + $0x180] sm:$0xff] }
  0x34   : > { %456 = vperm.xlu2 %5008, %v369_v10   ;;  %453 = vperm.xlu1 %5007, %v368_v11  }
  0x35   : > { %450 = vperm.xlu0 %5006, %v367_v12  }
  0x3c   : > { %465 = vperm.xlu2 %5008, %v372_v13   ;;  %462 = vperm.xlu1 %5007, %v371_v14   ;;  %v411_v14 = vld [vmem:[%s5194_s26 + $0x1a8] sm:$0xff] }
  0x3d   : > { %459 = vperm.xlu0 %5006, %v370_v15   ;;  %v410_v15 = vld [vmem:[%s5194_s26 + $0x1a0] sm:$0xff] }
  0x44   : > { %474 = vperm.xlu2 %5008, %v375_v16   ;;  %471 = vperm.xlu1 %5007, %v374_v17   ;;  %v409_v16 = vld [vmem:[%s5194_s26 + $0x198] sm:$0xff] }
  0x45   : > { %468 = vperm.xlu0 %5006, %v373_v18  }
  0x4c   : > { %483 = vperm.xlu2 %5008, %v378_v19   ;;  %480 = vperm.xlu1 %5007, %v377_v20  }
  0x4d   : > { %477 = vperm.xlu0 %5006, %v376_v21   ;;  %v414_v21 = vld [vmem:[%s5194_s26 + $0x1c0] sm:$0xff] }
  0x54   : > { %492 = vperm.xlu2 %5008, %v381_v22   ;;  %489 = vperm.xlu1 %5007, %v380_v23   ;;  %v413_v22 = vld [vmem:[%s5194_s26 + $0x1b8] sm:$0xff]  ;;  %v412_v23 = vld [vmem:[%s5194_s26 + $0x1b0] sm:$0xff] }
  0x55   : > { %486 = vperm.xlu0 %5006, %v379_v24  }
  0x5c   : > { %501 = vperm.xlu2 %5008, %v384_v25   ;;  %498 = vperm.xlu1 %5007, %v383_v26  }
  0x5d   : > { %495 = vperm.xlu0 %5006, %v382_v27  }
  0x64   : > { %510 = vperm.xlu2 %5008, %v387_v30   ;;  %507 = vperm.xlu1 %5007, %v386_v31   ;;  %v417_v30 = vld [vmem:[%s5194_s26 + $0x1d8] sm:$0xff]  ;;  %v416_v31 = vld [vmem:[%s5194_s26 + $0x1d0] sm:$0xff] }
  0x65   : > { %504 = vperm.xlu0 %5006, %v385_v32   ;;  %v415_v32 = vld [vmem:[%s5194_s26 + $0x1c8] sm:$0xff] }
  0x6c   : > { %519 = vperm.xlu2 %5008, %v390_v36   ;;  %516 = vperm.xlu1 %5007, %v389_v37  }
  0x6d   : > { %513 = vperm.xlu0 %5006, %v388_v38  }
  0x74   : > { %528 = vperm.xlu2 %5008, %v393_v42   ;;  %525 = vperm.xlu1 %5007, %v392_v43   ;;  %v420_v43 = vld [vmem:[%s5194_s26 + $0x1f0] sm:$0xff] }
  0x75   : > { %522 = vperm.xlu0 %5006, %v391_v44   ;;  %v419_v44 = vld [vmem:[%s5194_s26 + $0x1e8] sm:$0xff] }
  0x76   : > { %v5280_v45 = vpop.permute.xlu2 %435 }
  0x77   : > { %vm618_vm5 = vcmp.eq.s32.totalorder %v5296_v58, %v5280_v45  ;;  %v418_v45 = vld [vmem:[%s5194_s26 + $0x1e0] sm:$0xff] }
  0x78   : > { %v4625_v27 = vsel %vm618_vm5, 1.0, %v7156_v62 }
  0x7c   : > { %537 = vperm.xlu2 %5008, %v396_v46   ;;  %534 = vperm.xlu1 %5007, %v395_v47  }
  0x7d   : > { %531 = vperm.xlu0 %5006, %v394_v48  }
  0x7e   : > { %v5285_v49 = vpop.permute.xlu2 %438 }
  0x7f   : > { %vm619_vm6 = vcmp.eq.s32.totalorder %v5296_v58, %v5285_v49 }
  0x80   : > { %v4626_v42 = vsel %vm619_vm6, 1.0, %v7156_v62 }
  0x84   : > { %546 = vperm.xlu2 %5008, %v399_v50   ;;  %543 = vperm.xlu1 %5007, %v398_v51   ;;  %v807_v50 = vld [vmem:[%s5372_s24 + $0x8] sm:$0xff]  ;;  %v806_v51 = vld [vmem:[%s5372_s24] sm:$0xff] }
  0x85   : > { %540 = vperm.xlu0 %5006, %v397_v52   ;;  %v421_v52 = vld [vmem:[%s5194_s26 + $0x1f8] sm:$0xff]  ;;  %s5032_s26 = sshra.s32 %s4541_s22, 4  ;;  %s5033_s26 = int_to_ptr.hbm [resolvable:$true] %s5032_s26 }
  0x86   : > { %v5290_v53 = vpop.permute.xlu2 %447  ;;  %s5034_s25 = scalar_lea.hbm %s5033_s26, 4  ;;  %p5039_p0 = scmp.lt.s32.totalorder %s5033_s26, %s7154_s9 }
  0x87   : > { %vm622_vm9 = vcmp.eq.s32.totalorder %v5296_v58, %v5290_v53  ;;  %p5035_p11 = scmp.ne.s32.totalorder %s5033_s26, %s5034_s25 }
  0x89   : > { %p5036_p12 = pnand %p5035_p11, %p5175_p5 }
  0x8b   : > { %p5037_p13 = pneg %p5036_p12 }
  0x8c   : > { %555 = vperm.xlu2 %5008, %v402_v55   ;;  %552 = vperm.xlu1 %5007, %v401_v56  }
  0x8d   : > { %549 = vperm.xlu0 %5006, %v400_v57  }
  0x8e   : > { %v5298_v59 = vpop.permute.xlu2 %456  ;;  %v430_v60 = vpop.permute.xlu1 %429 }
  0x8f   : > { %v424_v61 = vpop.permute.xlu0 %423  ;;  %vm616_vm3 = vcmp.eq.s32.totalorder %v5296_v58, %v430_v60  ;;  %vm625_vm12 = vcmp.eq.s32.totalorder %v5296_v58, %v5298_v59 }
  0x90   : > { %vm614_vm1 = vcmp.eq.s32.totalorder %v5296_v58, %v424_v61  ;;  %v4623_v13 = vsel %vm616_vm3, 1.0, %v7156_v62  ;;  %v810_v61 = vld [vmem:[%s5372_s24 + $0x20] sm:$0xff] }
  0x91   : > { %v4621_v63 = vsel %vm614_vm1, 1.0, %v7156_v62 }
  0x92   : > { %4813 = vmatmul.msk.f32.vlgmr.msra.gmra.mxu1 %vm1270_vm0, %v4621_v63  ;;  %v809_v63 = vld [vmem:[%s5372_s24 + $0x18] sm:$0xff] }
  0x94   : > { %564 = vperm.xlu2 %5008, %v405_v0   ;;  %561 = vperm.xlu1 %5007, %v404_v1   ;;  %v808_v0 = vld [vmem:[%s5372_s24 + $0x10] sm:$0xff] }
  0x95   : > { %558 = vperm.xlu0 %5006, %v403_v2  }
  0x96   : > { %v5306_v3 = vpop.permute.xlu2 %465  ;;  %v433_v4 = vpop.permute.xlu1 %432 }
  0x97   : > { %v427_v5 = vpop.permute.xlu0 %426  ;;  %vm617_vm4 = vcmp.eq.s32.totalorder %v5296_v58, %v433_v4  ;;  %vm628_vm15 = vcmp.eq.s32.totalorder %v5296_v58, %v5306_v3 }
  0x98   : > { %vm615_vm2 = vcmp.eq.s32.totalorder %v5296_v58, %v427_v5  ;;  %v4624_v20 = vsel %vm617_vm4, 1.0, %v7156_v62  ;;  %v4629_v5 = vsel %vm622_vm9, 1.0, %v7156_v62 }
  0x99   : > { %v4622_v6 = vsel %vm615_vm2, 1.0, %v7156_v62 }
  0x9a   : > { %4814 = vmatmul.msk.f32.gmra.mxu1 %vm1270_vm0, %v4622_v6  ;;  %v813_v6 = vld [vmem:[%s5372_s24 + $0x38] sm:$0xff] }
  0x9c   : > { %573 = vperm.xlu2 %5008, %v408_v7   ;;  %570 = vperm.xlu1 %5007, %v407_v8   ;;  %v812_v7 = vld [vmem:[%s5372_s24 + $0x30] sm:$0xff]  ;;  %v811_v8 = vld [vmem:[%s5372_s24 + $0x28] sm:$0xff] }
  0x9d   : > { %567 = vperm.xlu0 %5006, %v406_v9  }
  0x9e   : > { %v5315_v10 = vpop.permute.xlu2 %474  ;;  %v5317_v11 = vpop.permute.xlu1 %444 }
  0x9f   : > { %v442_v12 = vpop.permute.xlu0 %441  ;;  %vm621_vm8 = vcmp.eq.s32.totalorder %v5296_v58, %v5317_v11  ;;  %vm631_vm3 = vcmp.eq.s32.totalorder %v5296_v58, %v5315_v10  ;;  %v838_v10 = vld [vmem:[%s5372_s24 + $0x100] sm:$0xff] }
  0xa0   : > { %vm620_vm7 = vcmp.eq.s32.totalorder %v5296_v58, %v442_v12  ;;  %v4628_v60 = vsel %vm621_vm8, 1.0, %v7156_v62 }
  0xa1   : > { %v4627_v49 = vsel %vm620_vm7, 1.0, %v7156_v62 }
  0xa2   : > { %4815 = vmatmul.msk.f32.gmra.mxu1 %vm1270_vm0, %v4623_v13  ;;  %v816_v13 = vld [vmem:[%s5372_s24 + $0x50] sm:$0xff] }
  0xa4   : > { %582 = vperm.xlu2 %5008, %v411_v14   ;;  %579 = vperm.xlu1 %5007, %v410_v15   ;;  %v815_v14 = vld [vmem:[%s5372_s24 + $0x48] sm:$0xff]  ;;  %v814_v15 = vld [vmem:[%s5372_s24 + $0x40] sm:$0xff] }
  0xa5   : > { %576 = vperm.xlu0 %5006, %v409_v16  }
  0xa6   : > { %v5325_v17 = vpop.permute.xlu2 %483  ;;  %v5327_v18 = vpop.permute.xlu1 %453 }
  0xa7   : > { %v5329_v19 = vpop.permute.xlu0 %450  ;;  %vm624_vm11 = vcmp.eq.s32.totalorder %v5296_v58, %v5327_v18  ;;  %vm634_vm6 = vcmp.eq.s32.totalorder %v5296_v58, %v5325_v17 }
  0xa8   : > { %vm623_vm10 = vcmp.eq.s32.totalorder %v5296_v58, %v5329_v19 }
  0xa9   : > { %v4630_v12 = vsel %vm623_vm10, 1.0, %v7156_v62 }
  0xaa   : > { %4816 = vmatmul.msk.f32.gmra.mxu1 %vm1270_vm0, %v4624_v20 }
  0xac   : > { %591 = vperm.xlu2 %5008, %v414_v21   ;;  %588 = vperm.xlu1 %5007, %v413_v22   ;;  %v4631_v21 = vsel %vm624_vm11, 1.0, %v7156_v62  ;;  %v819_v22 = vld [vmem:[%s5372_s24 + $0x68] sm:$0xff] }
  0xad   : > { %585 = vperm.xlu0 %5006, %v412_v23   ;;  %v818_v23 = vld [vmem:[%s5372_s24 + $0x60] sm:$0xff] }
  0xae   : > { %v5338_v24 = vpop.permute.xlu2 %492  ;;  %v5340_v25 = vpop.permute.xlu1 %462 }
  0xaf   : > { %v5342_v26 = vpop.permute.xlu0 %459  ;;  %vm627_vm14 = vcmp.eq.s32.totalorder %v5296_v58, %v5340_v25 }
  0xb0   : > { %vm626_vm13 = vcmp.eq.s32.totalorder %v5296_v58, %v5342_v26 }
  0xb2   : > { %4817 = vmatmul.msk.f32.gmra.mxu1 %vm1270_vm0, %v4625_v27  ;;  %v817_v27 = vld [vmem:[%s5372_s24 + $0x58] sm:$0xff] }
  0xb4   : > { %600 = vperm.xlu2 %5008, %v417_v30   ;;  %597 = vperm.xlu1 %5007, %v416_v31  }
  0xb5   : > { %594 = vperm.xlu0 %5006, %v415_v32   ;;  %v4632_v32 = vsel %vm625_vm12, 1.0, %v7156_v62  ;;  %vm637_vm12 = vcmp.eq.s32.totalorder %v5296_v58, %v5338_v24 }
  0xb6   : > { %v5351_v36 = vpop.permute.xlu2 %501  ;;  %v5353_v37 = vpop.permute.xlu1 %471 }
  0xb7   : > { %v5355_v38 = vpop.permute.xlu0 %468  ;;  %vm630_vm2 = vcmp.eq.s32.totalorder %v5296_v58, %v5353_v37  ;;  %v835_v37 = vld [vmem:[%s5372_s24 + $0xe8] sm:$0xff] }
  0xb8   : > { %vm629_vm1 = vcmp.eq.s32.totalorder %v5296_v58, %v5355_v38  ;;  %v1269_v38 = vld [vmem:[%s7148_s3 + $0x38] sm:$0xff] }
  0xb9   : > { %1471 = vmatpush.msra.mxu0 %v1269_v38  ;;  %4945 = vmatpush.msra.mxu3 %v1269_v38  ;;  %v840_v38 = vld [vmem:[%s5372_s24 + $0x110] sm:$0xff] }
  0xba   : > { %4818 = vmatmul.msk.f32.gmra.mxu1 %vm1270_vm0, %v4626_v42  ;;  %v822_v42 = vld [vmem:[%s5372_s24 + $0x80] sm:$0xff] }
  0xbc   : > { %609 = vperm.xlu2 %5008, %v420_v43   ;;  %606 = vperm.xlu1 %5007, %v419_v44   ;;  %v821_v43 = vld [vmem:[%s5372_s24 + $0x78] sm:$0xff]  ;;  %v820_v44 = vld [vmem:[%s5372_s24 + $0x70] sm:$0xff] }
  0xbd   : > { %603 = vperm.xlu0 %5006, %v418_v45  }
  0xbe   : > { %v5363_v46 = vpop.permute.xlu2 %510  ;;  %v5365_v47 = vpop.permute.xlu1 %480 }
  0xbf   : > { %v5374_v48 = vpop.permute.xlu0 %477  ;;  %vm633_vm5 = vcmp.eq.s32.totalorder %v5296_v58, %v5365_v47 }
  0xc0   : > { %vm632_vm4 = vcmp.eq.s32.totalorder %v5296_v58, %v5374_v48  ;;  %v841_v48 = vld [vmem:[%s5372_s24 + $0x118] sm:$0xff] }
  0xc2   : > { %4819 = vmatmul.msk.f32.gmra.mxu1 %vm1270_vm0, %v4627_v49 }
  0xc4   : > { %874 = vperm.xlu2 %5008, %v807_v50   ;;  %871 = vperm.xlu1 %5007, %v806_v51   ;;  %v4633_v50 = vsel %vm626_vm13, 1.0, %v7156_v62  ;;  %v825_v51 = vld [vmem:[%s5372_s24 + $0x98] sm:$0xff] }
  0xc5   : > { %612 = vperm.xlu0 %5006, %v421_v52   ;;  %v824_v52 = vld [vmem:[%s5372_s24 + $0x90] sm:$0xff] }
  0xc6   : > { %v5383_v55 = vpop.permute.xlu2 %519  ;;  %v5385_v56 = vpop.permute.xlu1 %489 }
  0xc7   : > { %v5387_v57 = vpop.permute.xlu0 %486  ;;  %vm636_vm10 = vcmp.eq.s32.totalorder %v5296_v58, %v5385_v56 }
  0xc8   : > { %vm635_vm7 = vcmp.eq.s32.totalorder %v5296_v58, %v5387_v57  ;;  %v850_v57 = vld [vmem:[%s5372_s24 + $0x160] sm:$0xff] }
  0xca   : > { %4820 = vmatmul.msk.f32.gmra.mxu1 %vm1270_vm0, %v4628_v60  ;;  %v823_v60 = vld [vmem:[%s5372_s24 + $0x88] sm:$0xff] }
  0xcc   : > { %883 = vperm.xlu2 %5008, %v810_v61   ;;  %880 = vperm.xlu1 %5007, %v809_v63  }
  0xcd   : > { %877 = vperm.xlu0 %5006, %v808_v0   ;;  %v4634_v0 = vsel %vm627_vm14, 1.0, %v7156_v62 }
  0xce   : > { %v5396_v1 = vpop.permute.xlu2 %528  ;;  %v5398_v2 = vpop.permute.xlu1 %498 }
  0xcf   : > { %v5400_v4 = vpop.permute.xlu0 %495 }
  0xd0   : > { %vm638_vm14 = vcmp.eq.s32.totalorder %v5296_v58, %v5400_v4 }
  0xd2   : > { %4821 = vmatmul.msk.f32.gmra.mxu1 %vm1270_vm0, %v4629_v5  ;;  %v828_v5 = vld [vmem:[%s5372_s24 + $0xb0] sm:$0xff] }
  0xd4   : > { %892 = vperm.xlu2 %5008, %v813_v6   ;;  %889 = vperm.xlu1 %5007, %v812_v7   ;;  %v827_v6 = vld [vmem:[%s5372_s24 + $0xa8] sm:$0xff]  ;;  %v826_v7 = vld [vmem:[%s5372_s24 + $0xa0] sm:$0xff] }
  0xd5   : > { %886 = vperm.xlu0 %5006, %v811_v8  }
  0xd6   : > { %v5409_v53 = vpop.permute.xlu2 %537  ;;  %v5411_v9 = vpop.permute.xlu1 %507 }
  0xd7   : > { %v5413_v11 = vpop.permute.xlu0 %504 }
  0xda   : > { %4822 = vmatmul.msk.f32.gmra.mxu1 %vm1270_vm0, %v4630_v12 }
  0xdc   : > { %901 = vperm.xlu2 %5008, %v816_v13   ;;  %898 = vperm.xlu1 %5007, %v815_v14   ;;  %v4635_v13 = vsel %vm628_vm15, 1.0, %v7156_v62  ;;  %v831_v14 = vld [vmem:[%s5372_s24 + $0xc8] sm:$0xff] }
  0xdd   : > { %895 = vperm.xlu0 %5006, %v814_v15   ;;  %v830_v15 = vld [vmem:[%s5372_s24 + $0xc0] sm:$0xff] }
  0xde   : > { %v5422_v16 = vpop.permute.xlu2 %546  ;;  %v5424_v19 = vpop.permute.xlu1 %516 }
  0xdf   : > { %v5426_v20 = vpop.permute.xlu0 %513 }
  0xe2   : > { %4823 = vmatmul.msk.f32.gmra.mxu1 %vm1270_vm0, %v4631_v21  ;;  %v829_v21 = vld [vmem:[%s5372_s24 + $0xb8] sm:$0xff] }
  0xe4   : > { %910 = vperm.xlu2 %5008, %v819_v22   ;;  %907 = vperm.xlu1 %5007, %v818_v23  }
  0xe5   : > { %904 = vperm.xlu0 %5006, %v817_v27   ;;  %v4636_v27 = vsel %vm629_vm1, 1.0, %v7156_v62  ;;  %vm639_vm1 = vcmp.eq.s32.totalorder %v5296_v58, %v5398_v2  ;;  %v862_v2 = vld [vmem:[%s5372_s24 + $0x1c0] sm:$0xff] }
  0xe6   : > { %v5435_v18 = vpop.permute.xlu2 %555  ;;  %v5437_v30 = vpop.permute.xlu1 %525 }
  0xe7   : > { %v5439_v31 = vpop.permute.xlu0 %522 }
  0xea   : > { %4824 = vmatmul.msk.f32.gmra.mxu1 %vm1270_vm0, %v4632_v32  ;;  %v834_v32 = vld [vmem:[%s5372_s24 + $0xe0] sm:$0xff] }
  0xec   : > { %919 = vperm.xlu2 %5008, %v822_v42   ;;  %916 = vperm.xlu1 %5007, %v821_v43   ;;  %v833_v42 = vld [vmem:[%s5372_s24 + $0xd8] sm:$0xff]  ;;  %v832_v43 = vld [vmem:[%s5372_s24 + $0xd0] sm:$0xff] }
  0xed   : > { %913 = vperm.xlu0 %5006, %v820_v44   ;;  %v1268_v44 = vld [vmem:[%s7148_s3 + $0x30] sm:$0xff] }
  0xee   : > { %v5448_v59 = vpop.permute.xlu2 %564  ;;  %v5450_v45 = vpop.permute.xlu1 %534  ;;  %1472 = vmatpush.msra.mxu0 %v1268_v44  ;;  %4946 = vmatpush.msra.mxu3 %v1268_v44  ;;  %v839_v44 = vld [vmem:[%s5372_s24 + $0x108] sm:$0xff] }
  0xef   : > { %v5452_v49 = vpop.permute.xlu0 %531 }
  0xf2   : > { %4825 = vmatmul.msk.f32.gmra.mxu1 %vm1270_vm0, %v4633_v50  ;;  %v1267_v50 = vld [vmem:[%s7148_s3 + $0x28] sm:$0xff] }
  0xf3   : > { %1473 = vmatpush.msra.mxu0 %v1267_v50  ;;  %4947 = vmatpush.msra.mxu3 %v1267_v50 }
  0xf4   : > { %928 = vperm.xlu2 %5008, %v825_v51   ;;  %925 = vperm.xlu1 %5007, %v824_v52  }
  0xf5   : > { %922 = vperm.xlu0 %5006, %v823_v60  }
  0xf6   : > { %v5461_v26 = vpop.permute.xlu2 %573  ;;  %v5463_v61 = vpop.permute.xlu1 %543 }
  0xf7   : > { %7160 = vst [vmem:[#allocation6_spill] sm:$0xff] %v5461_v26  ;;  %v5465_v63 = vpop.permute.xlu0 %540 }
  0xfa   : > { %4826 = vmatmul.msk.f32.gmra.mxu1 %vm1270_vm0, %v4634_v0  ;;  %v1266_v0 = vld [vmem:[%s7148_s3 + $0x20] sm:$0xff] }
  0xfb   : > { %1474 = vmatpush.msra.mxu0 %v1266_v0  ;;  %4948 = vmatpush.msra.mxu3 %v1266_v0 }
  0xfc   : > { %937 = vperm.xlu2 %5008, %v828_v5   ;;  %934 = vperm.xlu1 %5007, %v827_v6   ;;  %v4637_v5 = vsel %vm630_vm2, 1.0, %v7156_v62  ;;  %v837_v6 = vld [vmem:[%s5372_s24 + $0xf8] sm:$0xff] }
  0xfd   : > { %931 = vperm.xlu0 %5006, %v826_v7   ;;  %v836_v7 = vld [vmem:[%s5372_s24 + $0xf0] sm:$0xff] }
  0xfe   : > { %v5474_v25 = vpop.permute.xlu2 %582  ;;  %v5476_v8 = vpop.permute.xlu1 %552 }
  0xff   : > { %7161 = vst [vmem:[#allocation7_spill] sm:$0xff] %v5474_v25  ;;  %v5478_v12 = vpop.permute.xlu0 %549  ;;  %v2207_v25 = vld [vmem:[%s7150_s5 + $0x10] sm:$0xff] }
 0x102   : > { %4827 = vmatmul.msk.f32.gmra.mxu1 %vm1270_vm0, %v4635_v13  ;;  %v1265_v13 = vld [vmem:[%s7148_s3 + $0x18] sm:$0xff] }
 0x103   : > { %1475 = vmatpush.msra.mxu0 %v1265_v13  ;;  %4949 = vmatpush.msra.mxu3 %v1265_v13 }
 0x104   : > { %946 = vperm.xlu2 %5008, %v831_v14   ;;  %943 = vperm.xlu1 %5007, %v830_v15   ;;  %v1264_v14 = vld [vmem:[%s7148_s3 + $0x10] sm:$0xff]  ;;  %v1263_v15 = vld [vmem:[%s7148_s3 + $0x8] sm:$0xff] }
 0x105   : > { %940 = vperm.xlu0 %5006, %v829_v21   ;;  %1476 = vmatpush.msra.mxu0 %v1264_v14 }
 0x106   : > { %v5487_v3 = vpop.permute.xlu2 %591  ;;  %v5489_v22 = vpop.permute.xlu1 %561  ;;  %4950 = vmatpush.msra.mxu3 %v1264_v14 }
 0x107   : > { %7162 = vst [vmem:[#allocation8_spill] sm:$0xff] %v5487_v3  ;;  %v5491_v23 = vpop.permute.xlu0 %558  ;;  %1477 = vmatpush.msra.mxu0 %v1263_v15 }
 0x108   : > { %4951 = vmatpush.msra.mxu3 %v1263_v15  ;;  %v846_v15 = vld [vmem:[%s5372_s24 + $0x140] sm:$0xff] }
 0x10a   : > { %4828 = vmatmul.msk.f32.gmra.mxu1 %vm1270_vm0, %v4636_v27 }
 0x10c   : > { %955 = vperm.xlu2 %5008, %v834_v32   ;;  %952 = vperm.xlu1 %5007, %v833_v42   ;;  %v1262_v42 = vld [vmem:[%s7148_s3] sm:$0xff] }
 0x10d   : > { %949 = vperm.xlu0 %5006, %v832_v43   ;;  %v4638_v43 = vsel %vm631_vm3, 1.0, %v7156_v62  ;;  %1478 = vmatpush.msra.mxu0 %v1262_v42  ;;  %vm640_vm3 = vcmp.eq.s32.totalorder %v5296_v58, %v5351_v36  ;;  %v865_v36 = vld [vmem:[%s5372_s24 + $0x1d8] sm:$0xff] }
 0x10e   : > { %v5509_v51 = vpop.permute.xlu2 %600  ;;  %v5511_v52 = vpop.permute.xlu1 %570  ;;  %4952 = vmatpush.msra.mxu3 %v1262_v42  ;;  %v845_v42 = vld [vmem:[%s5372_s24 + $0x138] sm:$0xff] }
 0x10f   : > { %7163 = vst [vmem:[#allocation9_spill] sm:$0xff] %v5509_v51  ;;  %v5513_v60 = vpop.permute.xlu0 %567  ;;  %v5564_v13 = vpop.f32.mrf.mxu1 }
 0x110   : > { %7164 = vst [vmem:[#allocation10_spill] sm:$0xff] %v5511_v52  ;;  %4953 = vmatpush.msrb.mxu3 %v5226_v28 }
 0x111   : > { %7165 = vst [vmem:[#allocation11_spill] sm:$0xff] %v5513_v60 }
 0x112   : > { %4829 = vmatmul.msk.f32.gmra.mxu1 %vm1270_vm0, %v4637_v5  ;;  %4954 = vmatpush.msrb.mxu3 %v5231_v29 }
 0x114   : > { %964 = vperm.xlu2 %5008, %v837_v6   ;;  %961 = vperm.xlu1 %5007, %v836_v7   ;;  %v4639_v6 = vsel %vm632_vm4, 1.0, %v7156_v62  ;;  %v843_v7 = vld [vmem:[%s5372_s24 + $0x128] sm:$0xff] }
 0x115   : > { %958 = vperm.xlu0 %5006, %v835_v37   ;;  %v842_v37 = vld [vmem:[%s5372_s24 + $0x120] sm:$0xff]  ;;  %4955 = vmatpush.msrb.mxu3 %v5241_v33  ;;  %v4640_v33 = vsel %vm633_vm5, 1.0, %v7156_v62  ;;  %vm641_vm5 = vcmp.eq.s32.totalorder %v5296_v58, %v5413_v11 }
 0x116   : > { %v5534_v21 = vpop.permute.xlu2 %609  ;;  %v5536_v27 = vpop.permute.xlu1 %579 }
 0x117   : > { %7166 = vst [vmem:[#allocation12_spill] sm:$0xff] %v5534_v21  ;;  %v5538_v32 = vpop.permute.xlu0 %576  ;;  %4956 = vmatpush.msrb.mxu3 %v5247_v34  ;;  %v844_v34 = vld [vmem:[%s5372_s24 + $0x130] sm:$0xff] }
 0x118   : > { %7167 = vst [vmem:[#allocation13_spill] sm:$0xff] %v5536_v27 }
 0x119   : > { %7168 = vst [vmem:[#allocation14_spill] sm:$0xff] %v5538_v32  ;;  %4957 = vmatpush.msrb.mxu3 %v5252_v35  ;;  %v5586_v35 = vpop.f32.mrf.mxu1  ;;  %v7178_v32 = vmov 0.0  }
 0x11a   : > { %4830 = vmatmul.msk.f32.gmra.mxu1 %vm1270_vm0, %v4638_v43 }
 0x11b   : > { %4958 = vmatpush.msrb.mxu3 %v5262_v39 }
 0x11c   : > { %973 = vperm.xlu2 %5008, %v840_v38   ;;  %970 = vperm.xlu1 %5007, %v839_v44   ;;  %v4641_v38 = vsel %vm634_vm6, 1.0, %v7156_v62  ;;  %v849_v44 = vld [vmem:[%s5372_s24 + $0x158] sm:$0xff] }
 0x11d   : > { %967 = vperm.xlu0 %5006, %v838_v10   ;;  %4959 = vmatpush.msrb.mxu3 %v5268_v40  ;;  %v848_v40 = vld [vmem:[%s5372_s24 + $0x150] sm:$0xff] }
 0x11e   : > { %v5550_v50 = vpop.permute.xlu2 %874  ;;  %v5552_v0 = vpop.permute.xlu1 %588 }
 0x11f   : > { %7169 = vst [vmem:[#allocation15_spill] sm:$0xff] %v5552_v0  ;;  %v5555_v5 = vpop.permute.xlu0 %585  ;;  %4960 = vmatpush.msrb.mxu3 %v5274_v41  ;;  %v847_v41 = vld [vmem:[%s5372_s24 + $0x148] sm:$0xff]  ;;  %vm1063_vm9 = vcmp.eq.s32.totalorder %v5296_v58, %v5550_v50  ;;  %v853_v50 = vld [vmem:[%s5372_s24 + $0x178] sm:$0xff] }
 0x120   : > { %7170 = vst [vmem:[#allocation16_spill] sm:$0xff] %v5555_v5 }
 0x122   : > { %4831 = vmatmul.msk.f32.gmra.mxu1 %vm1270_vm0, %v4639_v6  ;;  %v5604_v6 = vpop.f32.mrf.mxu1 }
 0x124   : > { %982 = vperm.xlu2 %5008, %v843_v7   ;;  %979 = vperm.xlu1 %5007, %v842_v37  }
 0x125   : > { %976 = vperm.xlu0 %5006, %v841_v48   ;;  %v4642_v48 = vsel %vm635_vm7, 1.0, %v7156_v62  ;;  %vm642_vm7 = vcmp.eq.s32.totalorder %v5296_v58, %v5411_v9 }
 0x126   : > { %v5569_v28 = vpop.permute.xlu2 %883  ;;  %v5571_v29 = vpop.permute.xlu1 %597 }
 0x127   : > { %7171 = vst [vmem:[#allocation17_spill] sm:$0xff] %v5571_v29  ;;  %v5573_v14 = vpop.permute.xlu0 %594  ;;  %vm1066_vm15 = vcmp.eq.s32.totalorder %v5296_v58, %v5569_v28  ;;  %v863_v28 = vld [vmem:[%s5372_s24 + $0x1c8] sm:$0xff] }
 0x128   : > { %7172 = vst [vmem:[#allocation18_spill] sm:$0xff] %v5573_v14 }
 0x12a   : > { %4832 = vmatmul.msk.f32.gmra.mxu1 %vm1270_vm0, %v4640_v33  ;;  %v852_v33 = vld [vmem:[%s5372_s24 + $0x170] sm:$0xff] }
 0x12c   : > { %991 = vperm.xlu2 %5008, %v846_v15   ;;  %988 = vperm.xlu1 %5007, %v845_v42   ;;  %v851_v15 = vld [vmem:[%s5372_s24 + $0x168] sm:$0xff] }
 0x12d   : > { %985 = vperm.xlu0 %5006, %v844_v34  }
 0x12e   : > { %v5588_v47 = vpop.permute.xlu1 %606  ;;  %v5590_v43 = vpop.permute.xlu2 %892 }
 0x12f   : > { %7173 = vst [vmem:[#allocation19_spill] sm:$0xff] %v5588_v47  ;;  %v5592_v39 = vpop.permute.xlu0 %603  ;;  %v4648_v47 = vsel %vm641_vm5, 1.0, %v7156_v62  ;;  %vm1069_vm6 = vcmp.eq.s32.totalorder %v5296_v58, %v5590_v43 }
 0x130   : > { %7174 = vst [vmem:[#allocation20_spill] sm:$0xff] %v5592_v39 }
 0x132   : > { %4833 = vmatmul.msk.f32.gmra.mxu1 %vm1270_vm0, %v4641_v38  ;;  %v4686_v38 = vsel %vm1063_vm9, 1.0, %v7156_v62  ;;  %vm643_vm9 = vcmp.eq.s32.totalorder %v5296_v58, %v5363_v46 }
 0x134   : > { %1000 = vperm.xlu2 %5008, %v849_v44   ;;  %997 = vperm.xlu1 %5007, %v848_v40   ;;  %v4643_v44 = vsel %vm636_vm10, 1.0, %v7156_v62  ;;  %v855_v40 = vld [vmem:[%s5372_s24 + $0x188] sm:$0xff] }
 0x135   : > { %994 = vperm.xlu0 %5006, %v847_v41   ;;  %v854_v41 = vld [vmem:[%s5372_s24 + $0x180] sm:$0xff] }
 0x136   : > { %v872_v17 = vpop.permute.xlu1 %871  ;;  %v5607_v37 = vpop.permute.xlu2 %901 }
 0x137   : > { %vm1062_vm8 = vcmp.eq.s32.totalorder %v5296_v58, %v872_v17  ;;  %v5602_v10 = vpop.permute.xlu0 %612  ;;  %v5624_v17 = vpop.f32.mrf.mxu1 }
 0x138   : > { %7175 = vst [vmem:[#allocation21_spill] sm:$0xff] %v5602_v10  ;;  %v4685_v7 = vsel %vm1062_vm8, 1.0, %v7156_v62 }
 0x139   : > { %4749 = vmatmul.msk.f32.vlgmr.msra.gmra.mxu0 %vm1270_vm0, %v4685_v7 }
 0x13a   : > { %4834 = vmatmul.msk.f32.gmra.mxu1 %vm1270_vm0, %v4642_v48 }
 0x13c   : > { %1009 = vperm.xlu2 %5008, %v852_v33   ;;  %1006 = vperm.xlu1 %5007, %v851_v15   ;;  %v4644_v15 = vsel %vm637_vm12, 1.0, %v7156_v62  ;;  %vm1072_vm12 = vcmp.eq.s32.totalorder %v5296_v58, %v5607_v37 }
 0x13d   : > { %1003 = vperm.xlu0 %5006, %v850_v57   ;;  %v858_v57 = vld [vmem:[%s5372_s24 + $0x1a0] sm:$0xff]  ;;  %v4695_v14 = vsel %vm1072_vm12, 1.0, %v7156_v62  ;;  %vm2213_vm12 = vcmask 261120  }
 0x13e   : > { %v881_v42 = vpop.permute.xlu1 %880  ;;  %v5628_v7 = vpop.permute.xlu2 %910 }
 0x13f   : > { %v878_v34 = vpop.permute.xlu0 %877  ;;  %vm1065_vm13 = vcmp.eq.s32.totalorder %v5296_v58, %v881_v42  ;;  %v859_v42 = vld [vmem:[%s5372_s24 + $0x1a8] sm:$0xff] }
 0x140   : > { %vm1064_vm11 = vcmp.eq.s32.totalorder %v5296_v58, %v878_v34  ;;  %v856_v34 = vld [vmem:[%s5372_s24 + $0x190] sm:$0xff] }
 0x141   : > { %4750 = vmatmul.msk.f32.gmra.mxu0 %vm1270_vm0, %v4686_v38  ;;  %v4687_v33 = vsel %vm1064_vm11, 1.0, %v7156_v62  ;;  %v857_v38 = vld [vmem:[%s5372_s24 + $0x198] sm:$0xff]  ;;  %vm644_vm11 = vcmp.eq.s32.totalorder %v5296_v58, %v5426_v20 }
 0x142   : > { %4835 = vmatmul.msk.f32.gmra.mxu1 %vm1270_vm0, %v4643_v44  ;;  %v5642_v44 = vpop.f32.mrf.mxu1 }
 0x144   : > { %1018 = vperm.xlu2 %5008, %v855_v40   ;;  %1015 = vperm.xlu1 %5007, %v854_v41  }
 0x145   : > { %1012 = vperm.xlu0 %5006, %v853_v50   ;;  %v4688_v50 = vsel %vm1065_vm13, 1.0, %v7156_v62  ;;  %vm645_vm13 = vcmp.eq.s32.totalorder %v5296_v58, %v5424_v19 }
 0x146   : > { %v5633_v56 = vpop.permute.xlu1 %889  ;;  %v5645_v24 = vpop.permute.xlu2 %919  ;;  %v4652_v3 = vsel %vm645_vm13, 1.0, %v7156_v62 }
 0x147   : > { %v887_v48 = vpop.permute.xlu0 %886  ;;  %vm1068_vm4 = vcmp.eq.s32.totalorder %v5296_v58, %v5633_v56 }
 0x148   : > { %vm1067_vm2 = vcmp.eq.s32.totalorder %v5296_v58, %v887_v48  ;;  %v866_v48 = vld [vmem:[%s5372_s24 + $0x1e0] sm:$0xff] }
 0x149   : > { %4751 = vmatmul.msk.f32.gmra.mxu0 %vm1270_vm0, %v4687_v33  ;;  %v4645_v33 = vsel %vm638_vm14, 1.0, %v7156_v62  ;;  %v4690_v10 = vsel %vm1067_vm2, 1.0, %v7156_v62  ;;  %vm647_vm2 = vcmp.eq.s32.totalorder %v5296_v58, %v5439_v31  ;;  %v2206_v31 = vld [vmem:[%s7150_s5 + $0x8] sm:$0xff] }
 0x14a   : > { %4836 = vmatmul.msk.f32.gmra.mxu1 %vm1270_vm0, %v4644_v15  ;;  %v861_v15 = vld [vmem:[%s5372_s24 + $0x1b8] sm:$0xff]  ;;  %v5664_v4 = vpop.f32.mrf.mxu1 }
 0x14c   : > { %1027 = vperm.xlu2 %5008, %v858_v57   ;;  %1024 = vperm.xlu1 %5007, %v857_v38   ;;  %v860_v57 = vld [vmem:[%s5372_s24 + $0x1b0] sm:$0xff] }
 0x14d   : > { %1021 = vperm.xlu0 %5006, %v856_v34  }
 0x14e   : > { %v5649_v40 = vpop.permute.xlu1 %898  ;;  %v5668_v34 = vpop.permute.xlu2 %928 }
 0x14f   : > { %v5651_v41 = vpop.permute.xlu0 %895  ;;  %vm1071_vm10 = vcmp.eq.s32.totalorder %v5296_v58, %v5649_v40 }
 0x150   : > { %vm1070_vm8 = vcmp.eq.s32.totalorder %v5296_v58, %v5651_v41  ;;  %v4694_v29 = vsel %vm1071_vm10, 1.0, %v7156_v62  ;;  %vm651_vm10 = vcmp.eq.s32.totalorder %v5296_v58, %v5450_v45 }
 0x151   : > { %4752 = vmatmul.msk.f32.gmra.mxu0 %vm1270_vm0, %v4688_v50  ;;  %v4693_v39 = vsel %vm1070_vm8, 1.0, %v7156_v62  ;;  %vm650_vm8 = vcmp.eq.s32.totalorder %v5296_v58, %v5452_v49  ;;  %v5873_v49 = vld [vmem:[%s7149_s4] ss:$0 sm:$0xff] }
 0x152   : > { %4837 = vmatmul.msk.f32.gmra.mxu1 %vm1270_vm0, %v4645_v33  ;;  %v4689_v33 = vsel %vm1066_vm15, 1.0, %v7156_v62  ;;  %vm646_vm15 = vcmp.eq.s32.totalorder %v5296_v58, %v5383_v55 }
 0x154   : > { %1036 = vperm.xlu2 %5008, %v861_v15   ;;  %1033 = vperm.xlu1 %5007, %v860_v57   ;;  %v4646_v15 = vsel %vm639_vm1, 1.0, %v7156_v62  ;;  %v864_v57 = vld [vmem:[%s5372_s24 + $0x1d0] sm:$0xff] }
 0x155   : > { %1030 = vperm.xlu0 %5006, %v859_v42  }
 0x156   : > { %v5666_v38 = vpop.permute.xlu1 %907  ;;  %v5690_v21 = vpop.permute.xlu2 %937 }
 0x157   : > { %v5670_v50 = vpop.permute.xlu0 %904  ;;  %vm1074_vm1 = vcmp.eq.s32.totalorder %v5296_v58, %v5666_v38  ;;  %v5817_v38 = vld [vmem:[%s7150_s5] sm:$0xff] }
 0x158   : > { %vm1073_vm14 = vcmp.eq.s32.totalorder %v5296_v58, %v5670_v50 }
 0x159   : > { %4753 = vmatmul.msk.f32.gmra.mxu0 %vm1270_vm0, %v4689_v33  ;;  %v5686_v33 = vpop.f32.mrf.mxu1  ;;  %v4696_v37 = vsel %vm1073_vm14, 1.0, %v7156_v62  ;;  %vm652_vm14 = vcmp.eq.s32.totalorder %v5296_v58, %v5409_v53 }
 0x15a   : > { %4838 = vmatmul.msk.f32.gmra.mxu1 %vm1270_vm0, %v4646_v15  ;;  %v4647_v15 = vsel %vm640_vm3, 1.0, %v7156_v62  ;;  %vm1075_vm3 = vcmp.eq.s32.totalorder %v5296_v58, %v5628_v7 }
 0x15b   : > { %v4698_v26 = vsel %vm1075_vm3, 1.0, %v7178_v32 }
 0x15c   : > { %1045 = vperm.xlu2 %5008, %v864_v57   ;;  %1042 = vperm.xlu1 %5007, %v863_v28   ;;  %v867_v57 = vld [vmem:[%s5372_s24 + $0x1e8] sm:$0xff] }
 0x15d   : > { %1039 = vperm.xlu0 %5006, %v862_v2  }
 0x15e   : > { %v5682_v42 = vpop.permute.xlu1 %916  ;;  %v5712_v56 = vpop.permute.xlu2 %946 }
 0x15f   : > { %v5684_v54 = vpop.permute.xlu0 %913 }
 0x160   : > { %vm1076_vm5 = vcmp.eq.s32.totalorder %v5296_v58, %v5684_v54 }
 0x161   : > { %4754 = vmatmul.msk.f32.gmra.mxu0 %vm1270_vm0, %v4690_v10  ;;  %v4691_v10 = vsel %vm1068_vm4, 1.0, %v7156_v62  ;;  %vm648_vm4 = vcmp.eq.s32.totalorder %v5296_v58, %v5437_v30 }
 0x162   : > { %4839 = vmatmul.msk.f32.gmra.mxu1 %vm1270_vm0, %v4647_v15  ;;  %v5708_v15 = vpop.f32.mrf.mxu1  ;;  %v4655_v52 = vsel %vm648_vm4, 1.0, %v7178_v32  ;;  %vm1081_vm4 = vcmp.eq.s32.totalorder %v5296_v58, %v5668_v34 }
 0x164   : > { %1054 = vperm.xlu2 %5008, %v867_v57   ;;  %1051 = vperm.xlu1 %5007, %v866_v48   ;;  %v868_v57 = vld [vmem:[%s5372_s24 + $0x1f0] sm:$0xff] }
 0x165   : > { %1048 = vperm.xlu0 %5006, %v865_v36   ;;  %v4692_v36 = vsel %vm1069_vm6, 1.0, %v7156_v62  ;;  %vm649_vm6 = vcmp.eq.s32.totalorder %v5296_v58, %v5396_v1 }
 0x166   : > { %v5701_v28 = vpop.permute.xlu1 %925  ;;  %v5730_v43 = vpop.permute.xlu2 %955 }
 0x167   : > { %v5703_v2 = vpop.permute.xlu0 %922 }
 0x168   : > { %vm1079_vm13 = vcmp.eq.s32.totalorder %v5296_v58, %v5703_v2 }
 0x169   : > { %4755 = vmatmul.msk.f32.gmra.mxu0 %vm1270_vm0, %v4691_v10  ;;  %v4649_v10 = vsel %vm642_vm7, 1.0, %v7156_v62  ;;  %vm1077_vm7 = vcmp.eq.s32.totalorder %v5296_v58, %v5682_v42 }
 0x16a   : > { %4840 = vmatmul.msk.f32.gmra.mxu1 %vm1270_vm0, %v4648_v47  ;;  %v5726_v47 = vpop.f32.mrf.mxu1 }
 0x16d   : > { %1057 = vperm.xlu0 %5006, %v868_v57  }
 0x16e   : > { %v5718_v11 = vpop.permute.xlu1 %934 }
 0x16f   : > { %v5720_v48 = vpop.permute.xlu0 %931 }
 0x171   : > { %4756 = vmatmul.msk.f32.gmra.mxu0 %vm1270_vm0, %v4692_v36  ;;  %v4650_v36 = vsel %vm643_vm9, 1.0, %v7156_v62  ;;  %vm1078_vm9 = vcmp.eq.s32.totalorder %v5296_v58, %v5645_v24 }
 0x172   : > { %4841 = vmatmul.msk.f32.gmra.mxu1 %vm1270_vm0, %v4649_v10  ;;  %v5746_v41 = vpop.f32.mrf.mxu1  ;;  %v5750_v10 = vpop.permute.xlu2 %964 }
 0x176   : > { %v5734_v9 = vpop.permute.xlu1 %943 }
 0x177   : > { %v5736_v57 = vpop.permute.xlu0 %940 }
 0x179   : > { %4757 = vmatmul.msk.f32.gmra.mxu0 %vm1270_vm0, %v4693_v39  ;;  %v4651_v39 = vsel %vm644_vm11, 1.0, %v7156_v62 }
 0x17a   : > { %4842 = vmatmul.msk.f32.gmra.mxu1 %vm1270_vm0, %v4650_v36  ;;  %v5766_v36 = vpop.f32.mrf.mxu1  ;;  %v5770_v0 = vpop.permute.xlu2 %973 }
 0x17e   : > { %v5748_v46 = vpop.permute.xlu1 %952 }
 0x17f   : > { %v5752_v51 = vpop.permute.xlu0 %949 }
 0x181   : > { %4758 = vmatmul.msk.f32.gmra.mxu0 %vm1270_vm0, %v4694_v29 }
 0x182   : > { %4843 = vmatmul.msk.f32.gmra.mxu1 %vm1270_vm0, %v4651_v39  ;;  %v4653_v39 = vsel %vm646_vm15, 1.0, %v7156_v62  ;;  %v5785_v5 = vpop.f32.mrf.mxu1  ;;  %v5793_v55 = vpop.permute.xlu2 %982 }
 0x186   : > { %v5762_v20 = vpop.permute.xlu1 %961 }
 0x187   : > { %v5764_v40 = vpop.permute.xlu0 %958 }
 0x189   : > { %4759 = vmatmul.msk.f32.gmra.mxu0 %vm1270_vm0, %v4695_v14 }
 0x18a   : > { %4844 = vmatmul.msk.f32.gmra.mxu1 %vm1270_vm0, %v4652_v3  ;;  %v5791_v3 = vld [vmem:[%s7150_s5 + $0x18] sm:$0xff]  ;;  %v5819_v27 = vpop.f32.mrf.mxu1 }
 0x18b   : > { %2418 = vmatpush.msra.mxu2 %v5791_v3 }
 0x18d   : > { %2419 = vmatpush.msra.mxu2 %v2207_v25 }
 0x18e   : > { %v5778_v19 = vpop.permute.xlu1 %970 }
 0x18f   : > { %v5780_v29 = vpop.permute.xlu0 %967  ;;  %2420 = vmatpush.msra.mxu2 %v2206_v31 }
 0x191   : > { %4760 = vmatmul.msk.f32.gmra.mxu0 %vm1270_vm0, %v4696_v37  ;;  %v4697_v37 = vsel %vm1074_vm1, 1.0, %v7156_v62  ;;  %2421 = vmatpush.msra.mxu2 %v5817_v38  ;;  %vm1080_vm1 = vcmp.eq.s32.totalorder %v5296_v58, %v5701_v28 }
 0x192   : > { %4845 = vmatmul.msk.f32.gmra.mxu1 %vm1270_vm0, %v4653_v39  ;;  %v4654_v39 = vsel %vm647_vm2, 1.0, %v7156_v62  ;;  %v5840_v30 = vpop.f32.mrf.mxu1  ;;  %vm653_vm2 = vcmp.eq.s32.totalorder %v5296_v58, %v5465_v63 }
 0x196   : > { %v5800_v14 = vpop.permute.xlu1 %979 }
 0x197   : > { %v5802_v50 = vpop.permute.xlu0 %976 }
 0x199   : > { %4761 = vmatmul.msk.f32.gmra.mxu0 %vm1270_vm0, %v4697_v37  ;;  %v5823_v37 = vpop.permute.xlu2 %991 }
 0x19a   : > { %4846 = vmatmul.msk.f32.gmra.mxu1 %vm1270_vm0, %v4654_v39  ;;  %7176 = vst [vmem:[#allocation22_spill] sm:$0xff] %v5823_v37 }
 0x19e   : > { %v5827_v39 = vpop.permute.xlu1 %988 }
 0x19f   : > { %7177 = vst [vmem:[#allocation23_spill] sm:$0xff] %v5827_v39  ;;  %v5830_v62 = vpop.permute.xlu0 %985  ;;  %v4699_v39 = vsel %vm1076_vm5, 1.0, %v7178_v32  ;;  %vm654_vm5 = vcmp.eq.s32.totalorder %v5296_v58, %v5463_v61 }
 0x1a1   : > { %4762 = vmatmul.msk.f32.gmra.mxu0 %vm1270_vm0, %v4698_v26  ;;  %v5844_v60 = vpop.permute.xlu2 %1000  ;;  %v4656_v26 = vsel %vm649_vm6, 1.0, %v7178_v32 }
 0x1a2   : > { %4847 = vmatmul.msk.f32.gmra.mxu1 %vm1270_vm0, %v4655_v52  ;;  %7180 = vst [vmem:[#allocation25_spill] sm:$0xff] %v5844_v60  ;;  %v5860_v52 = vpop.f32.mrf.mxu1  ;;  %v4700_v60 = vsel %vm1077_vm7, 1.0, %v7178_v32  ;;  %vm1082_vm7 = vcmp.eq.s32.totalorder %v5296_v58, %v5720_v48 }
 0x1a6   : > { %v5842_v7 = vpop.permute.xlu1 %997 }
 0x1a7   : > { %7179 = vst [vmem:[#allocation24_spill] sm:$0xff] %v5842_v7  ;;  %v5846_v37 = vpop.permute.xlu0 %994  ;;  %v4657_v7 = vsel %vm650_vm8, 1.0, %v7178_v32  ;;  %vm655_vm8 = vcmp.eq.s32.totalorder %v5296_v58, %v5422_v16 }
 0x1a8   : > { %7181 = vst [vmem:[#allocation26_spill] sm:$0xff] %v5846_v37 }
 0x1a9   : > { %4763 = vmatmul.msk.f32.gmra.mxu0 %vm1270_vm0, %v4699_v39  ;;  %v5864_v37 = vpop.permute.xlu2 %1009 }
 0x1aa   : > { %4848 = vmatmul.msk.f32.gmra.mxu1 %vm1270_vm0, %v4656_v26  ;;  %7184 = vst [vmem:[#allocation29_spill] sm:$0xff] %v5864_v37 }
 0x1ae   : > { %v5856_v54 = vpop.permute.xlu1 %1006 }
 0x1af   : > { %7182 = vst [vmem:[#allocation27_spill] sm:$0xff] %v5856_v54  ;;  %v5858_v1 = vpop.permute.xlu0 %1003 }
 0x1b0   : > { %7183 = vst [vmem:[#allocation28_spill] sm:$0xff] %v5858_v1  ;;  %v5886_v1 = vpop.f32.mrf.mxu1 }
 0x1b1   : > { %4764 = vmatmul.msk.f32.gmra.mxu0 %vm1270_vm0, %v4700_v60  ;;  %v4701_v60 = vsel %vm1078_vm9, 1.0, %v7178_v32  ;;  %v1019_v45 = vpop.permute.xlu2 %1018 }
 0x1b2   : > { %4849 = vmatmul.msk.f32.gmra.mxu1 %vm1270_vm0, %v4657_v7  ;;  %v4658_v7 = vsel %vm651_vm10, 1.0, %v7178_v32  ;;  %vm1111_vm15 = vcmp.eq.s32.totalorder %v5296_v58, %v1019_v45  ;;  %vm1083_vm10 = vcmp.eq.s32.totalorder %v5296_v58, %v5718_v11 }
 0x1b6   : > { %v1480_v42 = vpop.f32.mrf.mxu0  ;;  %v1016_v26 = vpop.permute.xlu1 %1015 }
 0x1b7   : > { %v1882_v39 = vadd.f32 %v5564_v13, %v1480_v42  ;;  %vm1110_vm11 = vcmp.eq.s32.totalorder %v5296_v58, %v1016_v26  ;;  %v5882_v37 = vpop.permute.xlu0 %1012  ;;  %v4659_v26 = vsel %vm652_vm14, 1.0, %v7178_v32  ;;  %vm1084_vm14 = vcmp.eq.s32.totalorder %v5296_v58, %v5690_v21 }
 0x1b8   : > { %v4733_v54 = vsel %vm1110_vm11, 1.0, %v7178_v32  ;;  %vm656_vm11 = vcmp.eq.s32.totalorder %v5296_v58, %v5478_v12 }
 0x1b9   : > { %v2077_v24 = vadd.f32 %v5873_v49, %v1882_v39  ;;  %4765 = vmatmul.msk.f32.gmra.mxu0 %vm1270_vm0, %v4701_v60  ;;  %4797 = vmatmul.msk.f32.vlgmr.msra.gmra.mxu3 %vm1270_vm0, %v4733_v54  ;;  %v4702_v39 = vsel %vm1079_vm13, 1.0, %v7178_v32  ;;  %v4703_v60 = vsel %vm1080_vm1, 1.0, %v7178_v32  ;;  %v1028_v61 = vpop.permute.xlu2 %1027 }
 0x1ba   : > { %4850 = vmatmul.msk.f32.gmra.mxu1 %vm1270_vm0, %v4658_v7  ;;  %4961 = vmatpush.msra.mxu3 %v5791_v3  ;;  %v4734_v3 = vsel %vm1111_vm15, 1.0, %v7178_v32  ;;  %v4660_v7 = vsel %vm653_vm2, 1.0, %v7178_v32  ;;  %vm1114_vm9 = vcmp.eq.s32.totalorder %v5296_v58, %v1028_v61  ;;  %vm657_vm15 = vcmp.eq.s32.totalorder %v5296_v58, %v5476_v8 }
 0x1bb   : > { %v2141_v13 = vmax.f32 %v2077_v24, 0.0  ;;  %vm1085_vm2 = vcmp.eq.s32.totalorder %v5296_v58, %v5736_v57 }
 0x1bc   : > { %4962 = vmatpush.msra.mxu3 %v2207_v25 }
 0x1bd   : > { %4877 = vmatmul.msk.f32.vlgmr.msra.gmra.mxu2 %vm2213_vm12, %v2141_v13 }
 0x1be   : > { %v1483_v42 = vpop.f32.mrf.mxu0  ;;  %4963 = vmatpush.msra.mxu3 %v2206_v31  ;;  %v1025_v63 = vpop.permute.xlu1 %1024 }
 0x1bf   : > { %v1885_v54 = vadd.f32 %v5586_v35, %v1483_v42  ;;  %v1022_v53 = vpop.permute.xlu0 %1021  ;;  %v5906_v35 = vpop.f32.mrf.mxu1  ;;  %vm1113_vm6 = vcmp.eq.s32.totalorder %v5296_v58, %v1025_v63 }
 0x1c0   : > { %4964 = vmatpush.msra.mxu3 %v5817_v38  ;;  %vm1112_vm3 = vcmp.eq.s32.totalorder %v5296_v58, %v1022_v53 }
 0x1c1   : > { %v2078_v2 = vadd.f32 %v5873_v49, %v1885_v54  ;;  %4766 = vmatmul.msk.f32.gmra.mxu0 %vm1270_vm0, %v4702_v39  ;;  %4798 = vmatmul.msk.f32.gmra.mxu3 %vm1270_vm0, %v4734_v3  ;;  %v4735_v28 = vsel %vm1112_vm3, 1.0, %v7178_v32  ;;  %v4704_v54 = vsel %vm1081_vm4, 1.0, %v7178_v32  ;;  %v4661_v39 = vsel %vm654_vm5, 1.0, %v7178_v32  ;;  %v1037_v8 = vpop.permute.xlu2 %1036 }
 0x1c2   : > { %4851 = vmatmul.msk.f32.gmra.mxu1 %vm1270_vm0, %v4659_v26  ;;  %v4736_v26 = vsel %vm1113_vm6, 1.0, %v7178_v32  ;;  %vm658_vm3 = vcmp.eq.s32.totalorder %v5296_v58, %v5435_v18  ;;  %vm1117_vm4 = vcmp.eq.s32.totalorder %v5296_v58, %v1037_v8  ;;  %vm1086_vm5 = vcmp.eq.s32.totalorder %v5296_v58, %v5734_v9 }
 0x1c3   : > { %v2142_v25 = vmax.f32 %v2078_v2, 0.0  ;;  %vm659_vm6 = vcmp.eq.s32.totalorder %v5296_v58, %v5491_v23 }
 0x1c5   : > { %4878 = vmatmul.msk.f32.gmra.mxu2 %vm2213_vm12, %v2142_v25  ;;  %v4705_v25 = vsel %vm1082_vm7, 1.0, %v7178_v32 }
 0x1c6   : > { %v1486_v31 = vpop.f32.mrf.mxu0  ;;  %v1034_v12 = vpop.permute.xlu1 %1033 }
 0x1c7   : > { %v1888_v38 = vadd.f32 %v5604_v6, %v1486_v31  ;;  %v5927_v6 = vpop.f32.mrf.mxu1  ;;  %v4662_v31 = vsel %vm655_vm8, 1.0, %v7178_v32  ;;  %v1031_v16 = vpop.permute.xlu0 %1030  ;;  %vm1116_vm1 = vcmp.eq.s32.totalorder %v5296_v58, %v1034_v12  ;;  %vm1087_vm8 = vcmp.eq.s32.totalorder %v5296_v58, %v5712_v56 }
 0x1c8   : > { %vm1115_vm13 = vcmp.eq.s32.totalorder %v5296_v58, %v1031_v16  ;;  %v4709_v16 = vsel %vm1086_vm5, 1.0, %v7178_v32 }
 0x1c9   : > { %v2079_v24 = vadd.f32 %v5873_v49, %v1888_v38  ;;  %4767 = vmatmul.msk.f32.gmra.mxu0 %vm1270_vm0, %v4703_v60  ;;  %4799 = vmatmul.msk.f32.gmra.mxu3 %vm1270_vm0, %v4735_v28  ;;  %v4737_v38 = vsel %vm1114_vm9, 1.0, %v7178_v32  ;;  %v4663_v28 = vsel %vm656_vm11, 1.0, %v7178_v32  ;;  %v4738_v63 = vsel %vm1115_vm13, 1.0, %v7178_v32 }
 0x1ca   : > { %4852 = vmatmul.msk.f32.gmra.mxu1 %vm1270_vm0, %v4660_v7  ;;  %vm660_vm9 = vcmp.eq.s32.totalorder %v5296_v58, %v5489_v22  ;;  %v1046_v22 = vpop.permute.xlu2 %1045  ;;  %vm1088_vm11 = vcmp.eq.s32.totalorder %v5296_v58, %v5752_v51  ;;  %vm661_vm13 = vcmp.eq.s32.totalorder %v5296_v58, %v5448_v59 }
 0x1cb   : > { %v2143_v45 = vmax.f32 %v2079_v24, 0.0  ;;  %v4706_v24 = vsel %vm1083_vm10, 1.0, %v7178_v32 }
 0x1cd   : > { %4879 = vmatmul.msk.f32.gmra.mxu2 %vm2213_vm12, %v2143_v45 }
 0x1ce   : > { %v1489_v13 = vpop.f32.mrf.mxu0  ;;  %v1043_v23 = vpop.permute.xlu1 %1042 }
 0x1cf   : > { %v1891_v42 = vadd.f32 %v5624_v17, %v1489_v13  ;;  %v5945_v53 = vpop.f32.mrf.mxu1  ;;  %v1040_v18 = vpop.permute.xlu0 %1039  ;;  %vm1119_vm10 = vcmp.eq.s32.totalorder %v5296_v58, %v1043_v23 }
 0x1d0   : > { %vm1118_vm7 = vcmp.eq.s32.totalorder %v5296_v58, %v1040_v18  ;;  %v4742_v12 = vsel %vm1119_vm10, 1.0, %v7178_v32  ;;  %vm1095_vm10 = vcmp.eq.s32.totalorder %v5296_v58, %v5778_v19  ;;  %v6118_v19 = vld [vmem:[%s7152_s7] ss:$0 sm:$0xff] }
 0x1d1   : > { %v2080_v34 = vadd.f32 %v5873_v49, %v1891_v42  ;;  %4768 = vmatmul.msk.f32.gmra.mxu0 %vm1270_vm0, %v4704_v54  ;;  %4800 = vmatmul.msk.f32.gmra.mxu3 %vm1270_vm0, %v4736_v26  ;;  %v4707_v54 = vsel %vm1084_vm14, 1.0, %v7178_v32  ;;  %v4739_v26 = vsel %vm1116_vm1, 1.0, %v7178_v32  ;;  %vm1120_vm14 = vcmp.eq.s32.totalorder %v5296_v58, %v1046_v22 }
 0x1d2   : > { %4853 = vmatmul.msk.f32.gmra.mxu1 %vm1270_vm0, %v4661_v39  ;;  %v4664_v39 = vsel %vm657_vm15, 1.0, %v7178_v32  ;;  %vm1089_vm15 = vcmp.eq.s32.totalorder %v5296_v58, %v5748_v46 }
 0x1d3   : > { %v2144_v3 = vmax.f32 %v2080_v34, 0.0 }
 0x1d5   : > { %4880 = vmatmul.msk.f32.gmra.mxu2 %vm2213_vm12, %v2144_v3 }
 0x1d6   : > { %v1492_v17 = vpop.f32.mrf.mxu0 }
 0x1d7   : > { %v1894_v2 = vadd.f32 %v5642_v44, %v1492_v17  ;;  %v5966_v11 = vpop.f32.mrf.mxu1  ;;  %v4708_v17 = vsel %vm1085_vm2, 1.0, %v7178_v32  ;;  %v1049_v59 = vpop.permute.xlu0 %1048  ;;  %vm1090_vm2 = vcmp.eq.s32.totalorder %v5296_v58, %v5730_v43 }
 0x1d8   : > { %vm1121_vm1 = vcmp.eq.s32.totalorder %v5296_v58, %v1049_v59 }
 0x1d9   : > { %v2081_v48 = vadd.f32 %v5873_v49, %v1894_v2  ;;  %4769 = vmatmul.msk.f32.gmra.mxu0 %vm1270_vm0, %v4705_v25  ;;  %4801 = vmatmul.msk.f32.gmra.mxu3 %vm1270_vm0, %v4737_v38  ;;  %v4665_v2 = vsel %vm658_vm3, 1.0, %v7178_v32  ;;  %v4740_v25 = vsel %vm1117_vm4, 1.0, %v7178_v32  ;;  %vm1091_vm4 = vcmp.eq.s32.totalorder %v5296_v58, %v5764_v40 }
 0x1da   : > { %4854 = vmatmul.msk.f32.gmra.mxu1 %vm1270_vm0, %v4662_v31 }
 0x1db   : > { %v2145_v60 = vmax.f32 %v2081_v48, 0.0 }
 0x1dd   : > { %4881 = vmatmul.msk.f32.gmra.mxu2 %vm2213_vm12, %v2145_v60  ;;  %v4666_v60 = vsel %vm659_vm6, 1.0, %v7178_v32  ;;  %vm1092_vm6 = vcmp.eq.s32.totalorder %v5296_v58, %v5762_v20 }
 0x1de   : > { %v1495_v44 = vpop.f32.mrf.mxu0  ;;  %v4715_v23 = vsel %vm1092_vm6, 1.0, %v7178_v32 }
 0x1df   : > { %v1897_v7 = vadd.f32 %v5664_v4, %v1495_v44  ;;  %v5984_v61 = vpop.f32.mrf.mxu1  ;;  %v4741_v44 = vsel %vm1118_vm7, 1.0, %v7178_v32 }
 0x1e1   : > { %v2082_v45 = vadd.f32 %v5873_v49, %v1897_v7  ;;  %4770 = vmatmul.msk.f32.gmra.mxu0 %vm1270_vm0, %v4706_v24  ;;  %4802 = vmatmul.msk.f32.gmra.mxu3 %vm1270_vm0, %v4738_v63 }
 0x1e2   : > { %4855 = vmatmul.msk.f32.gmra.mxu1 %vm1270_vm0, %v4663_v28  ;;  %v4710_v28 = vsel %vm1087_vm8, 1.0, %v7178_v32  ;;  %vm1093_vm8 = vcmp.eq.s32.totalorder %v5296_v58, %v5750_v10 }
 0x1e3   : > { %v2146_v13 = vmax.f32 %v2082_v45, 0.0  ;;  %v4667_v45 = vsel %vm660_vm9, 1.0, %v7178_v32  ;;  %vm1094_vm9 = vcmp.eq.s32.totalorder %v5296_v58, %v5780_v29  ;;  %v6108_v29 = vld [vmem:[%s7151_s6] ss:$0 sm:$0xff] }
 0x1e4   : > { %v4717_v22 = vsel %vm1094_vm9, 1.0, %v7178_v32 }
 0x1e5   : > { %4882 = vmatmul.msk.f32.gmra.mxu2 %vm2213_vm12, %v2146_v13 }
 0x1e6   : > { %v1498_v4 = vpop.f32.mrf.mxu0 }
 0x1e7   : > { %v1900_v42 = vadd.f32 %v5686_v33, %v1498_v4 }
 0x1e9   : > { %v2083_v34 = vadd.f32 %v5873_v49, %v1900_v42  ;;  %4771 = vmatmul.msk.f32.gmra.mxu0 %vm1270_vm0, %v4707_v54  ;;  %4803 = vmatmul.msk.f32.gmra.mxu3 %vm1270_vm0, %v4739_v26  ;;  %v4711_v42 = vsel %vm1088_vm11, 1.0, %v7178_v32  ;;  %v4668_v54 = vsel %vm661_vm13, 1.0, %v7178_v32  ;;  %vm1096_vm11 = vcmp.eq.s32.totalorder %v5296_v58, %v5770_v0 }
 0x1ea   : > { %4856 = vmatmul.msk.f32.gmra.mxu1 %vm1270_vm0, %v4664_v39  ;;  %v4743_v39 = vsel %vm1120_vm14, 1.0, %v7178_v32  ;;  %vm1097_vm13 = vcmp.eq.s32.totalorder %v5296_v58, %v5802_v50  ;;  %vm1098_vm14 = vcmp.eq.s32.totalorder %v5296_v58, %v5800_v14 }
 0x1eb   : > { %v2147_v21 = vmax.f32 %v2083_v34, 0.0 }
 0x1ed   : > { %4883 = vmatmul.msk.f32.gmra.mxu2 %vm2213_vm12, %v2147_v21  ;;  %v4712_v21 = vsel %vm1089_vm15, 1.0, %v7178_v32  ;;  %vm1099_vm15 = vcmp.eq.s32.totalorder %v5296_v58, %v5793_v55 }
 0x1ee   : > { %v1501_v33 = vpop.f32.mrf.mxu0 }
 0x1ef   : > { %v1903_v3 = vadd.f32 %v5708_v15, %v1501_v33  ;;  %v6005_v15 = vpop.f32.mrf.mxu1  ;;  %v4744_v33 = vsel %vm1121_vm1, 1.0, %v7178_v32  ;;  %vm1100_vm1 = vcmp.eq.s32.totalorder %v5296_v58, %v5830_v62 }
 0x1f1   : > { %v2084_v31 = vadd.f32 %v5873_v49, %v1903_v3  ;;  %4772 = vmatmul.msk.f32.gmra.mxu0 %vm1270_vm0, %v4708_v17  ;;  %4804 = vmatmul.msk.f32.gmra.mxu3 %vm1270_vm0, %v4740_v25  ;;  %v1052_v17 = vpop.permute.xlu1 %1051  ;;  %v4713_v25 = vsel %vm1090_vm2, 1.0, %v7178_v32 }
 0x1f2   : > { %4857 = vmatmul.msk.f32.gmra.mxu1 %vm1270_vm0, %v4665_v2  ;;  %vm1122_vm3 = vcmp.eq.s32.totalorder %v5296_v58, %v1052_v17 }
 0x1f3   : > { %v2148_v57 = vmax.f32 %v2084_v31, 0.0  ;;  %v4745_v31 = vsel %vm1122_vm3, 1.0, %v7178_v32 }
 0x1f5   : > { %4884 = vmatmul.msk.f32.gmra.mxu2 %vm2213_vm12, %v2148_v57  ;;  %v1055_v57 = vpop.permute.xlu2 %1054 }
 0x1f6   : > { %v1504_v38 = vpop.f32.mrf.mxu0  ;;  %vm1123_vm5 = vcmp.eq.s32.totalorder %v5296_v58, %v1055_v57 }
 0x1f7   : > { %v1906_v48 = vadd.f32 %v5726_v47, %v1504_v38  ;;  %v6024_v63 = vpop.f32.mrf.mxu1 }
 0x1f9   : > { %v2085_v9 = vadd.f32 %v5873_v49, %v1906_v48  ;;  %4773 = vmatmul.msk.f32.gmra.mxu0 %vm1270_vm0, %v4709_v16  ;;  %4805 = vmatmul.msk.f32.gmra.mxu3 %vm1270_vm0, %v4741_v44  ;;  %v4714_v48 = vsel %vm1091_vm4, 1.0, %v7178_v32  ;;  %v4746_v16 = vsel %vm1123_vm5, 1.0, %v7178_v32  ;;  %v1058_v44 = vpop.permute.xlu0 %1057 }
 0x1fa   : > { %4858 = vmatmul.msk.f32.gmra.mxu1 %vm1270_vm0, %v4666_v60  ;;  %vm1124_vm7 = vcmp.eq.s32.totalorder %v5296_v58, %v1058_v44 }
 0x1fb   : > { %v2149_v7 = vmax.f32 %v2085_v9, 0.0 }
 0x1fd   : > { %4885 = vmatmul.msk.f32.gmra.mxu2 %vm2213_vm12, %v2149_v7  ;;  %v4747_v7 = vsel %vm1124_vm7, 1.0, %v7178_v32 }
 0x1fe   : > { %v1507_v47 = vpop.f32.mrf.mxu0 }
 0x1ff   : > { %v1909_v24 = vadd.f32 %v5746_v41, %v1507_v47  ;;  %v6044_v51 = vpop.f32.mrf.mxu1 }
 0x201   : > { %v2086_v56 = vadd.f32 %v5873_v49, %v1909_v24  ;;  %4774 = vmatmul.msk.f32.gmra.mxu0 %vm1270_vm0, %v4710_v28  ;;  %4806 = vmatmul.msk.f32.gmra.mxu3 %vm1270_vm0, %v4742_v12 }
 0x202   : > { %4859 = vmatmul.msk.f32.gmra.mxu1 %vm1270_vm0, %v4667_v45 }
 0x203   : > { %v2150_v13 = vmax.f32 %v2086_v56, 0.0 }
 0x205   : > { %4886 = vmatmul.msk.f32.gmra.mxu2 %vm2213_vm12, %v2150_v13 }
 0x206   : > { %v1510_v41 = vpop.f32.mrf.mxu0 }
 0x207   : > { %v1912_v4 = vadd.f32 %v5766_v36, %v1510_v41 }
 0x209   : > { %v2087_v26 = vadd.f32 %v5873_v49, %v1912_v4  ;;  %4775 = vmatmul.msk.f32.gmra.mxu0 %vm1270_vm0, %v4711_v42  ;;  %4807 = vmatmul.msk.f32.gmra.mxu3 %vm1270_vm0, %v4743_v39  ;;  %v4718_v4 = vsel %vm1095_vm10, 1.0, %v7178_v32  ;;  %vm1109_vm10 = vcmp.eq.s32.totalorder %v5296_v58, %v5882_v37 }
 0x20a   : > { %4860 = vmatmul.msk.f32.gmra.mxu1 %vm1270_vm0, %v4668_v54 }
 0x20b   : > { %v2151_v34 = vmax.f32 %v2087_v26, 0.0 }
 0x20d   : > { %4887 = vmatmul.msk.f32.gmra.mxu2 %vm2213_vm12, %v2151_v34 }
 0x20e   : > { %v1513_v36 = vpop.f32.mrf.mxu0 }
 0x20f   : > { %v1915_v8 = vadd.f32 %v5785_v5, %v1513_v36 }
 0x211   : > { %v2088_v3 = vadd.f32 %v5873_v49, %v1915_v8  ;;  %4776 = vmatmul.msk.f32.gmra.mxu0 %vm1270_vm0, %v4712_v21  ;;  %4808 = vmatmul.msk.f32.gmra.mxu3 %vm1270_vm0, %v4744_v33  ;;  %v4719_v21 = vsel %vm1096_vm11, 1.0, %v7178_v32 }
 0x213   : > { %v2152_v2 = vmax.f32 %v2088_v3, 0.0 }
 0x215   : > { %4888 = vmatmul.msk.f32.gmra.mxu2 %vm2213_vm12, %v2152_v2 }
 0x216   : > { %v1516_v5 = vpop.f32.mrf.mxu0 }
 0x217   : > { %v1918_v46 = vadd.f32 %v5819_v27, %v1516_v5 }
 0x219   : > { %v2089_v18 = vadd.f32 %v5873_v49, %v1918_v46  ;;  %4777 = vmatmul.msk.f32.gmra.mxu0 %vm1270_vm0, %v4713_v25  ;;  %4809 = vmatmul.msk.f32.gmra.mxu3 %vm1270_vm0, %v4745_v31  ;;  %v4720_v31 = vsel %vm1097_vm13, 1.0, %v7178_v32 }
 0x21b   : > { %v2153_v38 = vmax.f32 %v2089_v18, 0.0 }
 0x21d   : > { %4889 = vmatmul.msk.f32.gmra.mxu2 %vm2213_vm12, %v2153_v38 }
 0x21e   : > { %v1519_v27 = vpop.f32.mrf.mxu0 }
 0x21f   : > { %v1921_v43 = vadd.f32 %v5840_v30, %v1519_v27 }
 0x221   : > { %v2090_v60 = vadd.f32 %v5873_v49, %v1921_v43  ;;  %4778 = vmatmul.msk.f32.gmra.mxu0 %vm1270_vm0, %v4714_v48  ;;  %4810 = vmatmul.msk.f32.gmra.mxu3 %vm1270_vm0, %v4746_v16 }
 0x223   : > { %v2154_v9 = vmax.f32 %v2090_v60, 0.0  ;;  %v4721_v60 = vsel %vm1098_vm14, 1.0, %v7178_v32 }
 0x225   : > { %4890 = vmatmul.msk.f32.gmra.mxu2 %vm2213_vm12, %v2154_v9 }
 0x226   : > { %v1522_v40 = vpop.f32.mrf.mxu0 }
 0x227   : > { %v1924_v30 = vadd.f32 %v5860_v52, %v1522_v40  ;;  %v4716_v52 = vsel %vm1093_vm8, 1.0, %v7178_v32 }
 0x229   : > { %v2091_v47 = vadd.f32 %v5873_v49, %v1924_v30  ;;  %4779 = vmatmul.msk.f32.gmra.mxu0 %vm1270_vm0, %v4715_v23  ;;  %4811 = vmatmul.msk.f32.gmra.mxu3 %vm1270_vm0, %v4747_v7  ;;  %v1953_v7 = vpop.f32.mrf.mxu1 }
 0x22b   : > { %v2155_v24 = vmax.f32 %v2091_v47, 0.0 }
 0x22d   : > { %4891 = vmatmul.msk.f32.gmra.mxu2 %vm2213_vm12, %v2155_v24 }
 0x22e   : > { %v1525_v20 = vpop.f32.mrf.mxu0 }
 0x22f   : > { %v1927_v28 = vadd.f32 %v5886_v1, %v1525_v20  ;;  %v4722_v20 = vsel %vm1099_vm15, 1.0, %v7178_v32 }
 0x231   : > { %v2092_v45 = vadd.f32 %v5873_v49, %v1927_v28  ;;  %4780 = vmatmul.msk.f32.gmra.mxu0 %vm1270_vm0, %v4716_v52 }
 0x233   : > { %v2156_v12 = vmax.f32 %v2092_v45, 0.0 }
 0x235   : > { %4892 = vmatmul.msk.f32.gmra.mxu2 %vm2213_vm12, %v2156_v12 }
 0x236   : > { %v1528_v56 = vpop.f32.mrf.mxu0 }
 0x237   : > { %v1930_v10 = vadd.f32 %v5906_v35, %v1528_v56 }
 0x239   : > { %v2093_v13 = vadd.f32 %v5873_v49, %v1930_v10  ;;  %4781 = vmatmul.msk.f32.gmra.mxu0 %vm1270_vm0, %v4717_v22 }
 0x23b   : > { %v2157_v1 = vmax.f32 %v2093_v13, 0.0 }
 0x23d   : > { %4893 = vmatmul.msk.f32.gmra.mxu2 %vm2213_vm12, %v2157_v1  ;;  %v4723_v1 = vsel %vm1100_vm1, 1.0, %v7178_v32 }
 0x23e   : > { %v1531_v41 = vpop.f32.mrf.mxu0 }
 0x23f   : > { %v1933_v35 = vadd.f32 %v5927_v6, %v1531_v41 }
 0x240   : > { %v2423_v42 = vpop.f32.mrf.mxu2 }
 0x241   : > { %v2094_v54 = vadd.f32 %v5873_v49, %v1933_v35  ;;  %v2424_v39 = vadd.f32 %v6108_v29, %v2423_v42  ;;  %4782 = vmatmul.msk.f32.gmra.mxu0 %vm1270_vm0, %v4718_v4  ;;  %v1956_v35 = vpop.f32.mrf.mxu1 }
 0x243   : > { %v2615_v26 = vmax.f32 %v2424_v39, 0.0  ;;  %v2158_v59 = vmax.f32 %v2094_v54, 0.0  ;;  %v7185_v39 = vld [vmem:[#allocation23_spill] sm:$0xff] }
 0x244   : > { %vm1101_vm2 = vcmp.eq.s32.totalorder %v5296_v58, %v7185_v39 }
 0x245   : > { %4894 = vmatmul.msk.f32.gmra.mxu2 %vm2213_vm12, %v2158_v59  ;;  %v2683_v6 = vmul.f32 %v6118_v19, %v2615_v26 }
 0x246   : > { %v1534_v34 = vpop.f32.mrf.mxu0 }
 0x247   : > { %v1936_v36 = vadd.f32 %v5945_v53, %v1534_v34  ;;  %v2747_v8 = vsel %vm2213_vm12, %v2683_v6, 0.0  ;;  %v4724_v34 = vsel %vm1101_vm2, 1.0, %v7178_v32 }
 0x248   : > { %2748 = vadd.xlane.f32.xlu1 %v2747_v8  ;;  %v2426_v33 = vpop.f32.mrf.mxu2 }
 0x249   : > { %v2095_v3 = vadd.f32 %v5873_v49, %v1936_v36  ;;  %v2427_v17 = vadd.f32 %v6108_v29, %v2426_v33  ;;  %4783 = vmatmul.msk.f32.gmra.mxu0 %vm1270_vm0, %v4719_v21  ;;  %v1959_v33 = vpop.f32.mrf.mxu1 }
 0x24b   : > { %v2616_v0 = vmax.f32 %v2427_v17, 0.0  ;;  %v2159_v2 = vmax.f32 %v2095_v3, 0.0 }
 0x24d   : > { %4895 = vmatmul.msk.f32.gmra.mxu2 %vm2213_vm12, %v2159_v2  ;;  %v2684_v53 = vmul.f32 %v6118_v19, %v2616_v0  ;;  %v7186_v0 = vld [vmem:[#allocation22_spill] sm:$0xff] }
 0x24e   : > { %v1537_v5 = vpop.f32.mrf.mxu0  ;;  %vm1102_vm3 = vcmp.eq.s32.totalorder %v5296_v58, %v7186_v0 }
 0x24f   : > { %v1939_v46 = vadd.f32 %v5966_v11, %v1537_v5  ;;  %v2750_v25 = vsel %vm2213_vm12, %v2684_v53, 0.0 }
 0x250   : > { %2751 = vadd.xlane.f32.xlu2 %v2750_v25  ;;  %v2429_v18 = vpop.f32.mrf.mxu2 }
 0x251   : > { %v2096_v57 = vadd.f32 %v5873_v49, %v1939_v46  ;;  %v2430_v38 = vadd.f32 %v6108_v29, %v2429_v18  ;;  %4784 = vmatmul.msk.f32.gmra.mxu0 %vm1270_vm0, %v4720_v31  ;;  %v4725_v46 = vsel %vm1102_vm3, 1.0, %v7178_v32 }
 0x253   : > { %v2617_v50 = vmax.f32 %v2430_v38, 0.0  ;;  %v2160_v27 = vmax.f32 %v2096_v57, 0.0 }
 0x255   : > { %4896 = vmatmul.msk.f32.gmra.mxu2 %vm2213_vm12, %v2160_v27  ;;  %v2685_v11 = vmul.f32 %v6118_v19, %v2617_v50  ;;  %v7187_v50 = vld [vmem:[#allocation26_spill] sm:$0xff]  ;;  %v1962_v27 = vpop.f32.mrf.mxu1 }
 0x256   : > { %v1540_v43 = vpop.f32.mrf.mxu0  ;;  %vm1103_vm4 = vcmp.eq.s32.totalorder %v5296_v58, %v7187_v50 }
 0x257   : > { %v1942_v48 = vadd.f32 %v5984_v61, %v1540_v43  ;;  %v2753_v16 = vsel %vm2213_vm12, %v2685_v11, 0.0 }
 0x258   : > { %2754 = vadd.xlane.f32.xlu0 %v2753_v16  ;;  %v2432_v44 = vpop.f32.mrf.mxu2 }
 0x259   : > { %v2097_v9 = vadd.f32 %v5873_v49, %v1942_v48  ;;  %v2433_v40 = vadd.f32 %v6108_v29, %v2432_v44  ;;  %4785 = vmatmul.msk.f32.gmra.mxu0 %vm1270_vm0, %v4721_v60  ;;  %v4726_v60 = vsel %vm1103_vm4, 1.0, %v7178_v32 }
 0x25b   : > { %v2618_v14 = vmax.f32 %v2433_v40, 0.0  ;;  %v2161_v30 = vmax.f32 %v2097_v9, 0.0 }
 0x25d   : > { %4897 = vmatmul.msk.f32.gmra.mxu2 %vm2213_vm12, %v2161_v30  ;;  %v2686_v61 = vmul.f32 %v6118_v19, %v2618_v14  ;;  %v7188_v30 = vld [vmem:[#allocation24_spill] sm:$0xff] }
 0x25e   : > { %v1543_v23 = vpop.f32.mrf.mxu0  ;;  %vm1104_vm5 = vcmp.eq.s32.totalorder %v5296_v58, %v7188_v30 }
 0x25f   : > { %v1945_v47 = vadd.f32 %v6005_v15, %v1543_v23  ;;  %v2756_v24 = vsel %vm2213_vm12, %v2686_v61, 0.0  ;;  %v869_v15 = vld [vmem:[%s5372_s24 + $0x1f8] sm:$0xff]  ;;  %v1965_v23 = vpop.f32.mrf.mxu1  ;;  %s2939_s24 = sld [smem:[#allocation2]] }
 0x260   : > { %2757 = vadd.xlane.f32.xlu1 %v2756_v24  ;;  %v2435_v28 = vpop.f32.mrf.mxu2 }
 0x261   : > { %v2098_v52 = vadd.f32 %v5873_v49, %v1945_v47  ;;  %v2436_v45 = vadd.f32 %v6108_v29, %v2435_v28  ;;  %4786 = vmatmul.msk.f32.gmra.mxu0 %vm1270_vm0, %v4722_v20  ;;  %v4727_v47 = vsel %vm1104_vm5, 1.0, %v7178_v32 }
 0x263   : > { %v2619_v55 = vmax.f32 %v2436_v45, 0.0  ;;  %v2162_v12 = vmax.f32 %v2098_v52, 0.0 }
 0x265   : > { %4898 = vmatmul.msk.f32.gmra.mxu2 %vm2213_vm12, %v2162_v12  ;;  %v2687_v56 = vmul.f32 %v6118_v19, %v2619_v55 }
 0x266   : > { %v1546_v10 = vpop.f32.mrf.mxu0 }
 0x267   : > { %v1948_v22 = vadd.f32 %v6024_v63, %v1546_v10  ;;  %v2759_v13 = vsel %vm2213_vm12, %v2687_v56, 0.0 }
 0x268   : > { %1060 = vperm.xlu2 %5008, %v869_v15   ;;  %2760 = vadd.xlane.f32.xlu0 %v2759_v13  ;;  %v2438_v41 = vpop.f32.mrf.mxu2  ;;  %v7189_v15 = vld [vmem:[#allocation25_spill] sm:$0xff] }
 0x269   : > { %v2099_v4 = vadd.f32 %v5873_v49, %v1948_v22  ;;  %v2439_v62 = vadd.f32 %v6108_v29, %v2438_v41  ;;  %4787 = vmatmul.msk.f32.gmra.mxu0 %vm1270_vm0, %v4723_v1  ;;  %vm1105_vm6 = vcmp.eq.s32.totalorder %v5296_v58, %v7189_v15 }
 0x26a   : > { %v4728_v1 = vsel %vm1105_vm6, 1.0, %v7178_v32 }
 0x26b   : > { %v2620_v42 = vmax.f32 %v2439_v62, 0.0  ;;  %v2163_v54 = vmax.f32 %v2099_v4, 0.0  ;;  %v1968_v4 = vpop.f32.mrf.mxu1 }
 0x26d   : > { %4899 = vmatmul.msk.f32.gmra.mxu2 %vm2213_vm12, %v2163_v54  ;;  %v2688_v63 = vmul.f32 %v6118_v19, %v2620_v42 }
 0x26e   : > { %v1549_v26 = vpop.f32.mrf.mxu0 }
 0x26f   : > { %v1951_v59 = vadd.f32 %v6044_v51, %v1549_v26  ;;  %v2762_v6 = vsel %vm2213_vm12, %v2688_v63, 0.0  ;;  %v7190_v63 = vld [vmem:[#allocation28_spill] sm:$0xff] }
 0x270   : > { %2763 = vadd.xlane.f32.xlu1 %v2762_v6  ;;  %v2441_v36 = vpop.f32.mrf.mxu2  ;;  %vm1106_vm7 = vcmp.eq.s32.totalorder %v5296_v58, %v7190_v63 }
 0x271   : > { %v2100_v8 = vadd.f32 %v5873_v49, %v1951_v59  ;;  %v2442_v21 = vadd.f32 %v6108_v29, %v2441_v36  ;;  %4788 = vmatmul.msk.f32.gmra.mxu0 %vm1270_vm0, %v4724_v34  ;;  %v4729_v36 = vsel %vm1106_vm7, 1.0, %v7178_v32 }
 0x273   : > { %v2621_v3 = vmax.f32 %v2442_v21, 0.0  ;;  %v2164_v17 = vmax.f32 %v2100_v8, 0.0 }
 0x275   : > { %4900 = vmatmul.msk.f32.gmra.mxu2 %vm2213_vm12, %v2164_v17  ;;  %v2689_v51 = vmul.f32 %v6118_v19, %v2621_v3  ;;  %v1971_v3 = vpop.f32.mrf.mxu1 }
 0x276   : > { %v1552_v2 = vpop.f32.mrf.mxu0 }
 0x277   : > { %v1954_v53 = vadd.f32 %v1953_v7, %v1552_v2  ;;  %v2765_v5 = vsel %vm2213_vm12, %v2689_v51, 0.0  ;;  %v7191_v51 = vld [vmem:[#allocation27_spill] sm:$0xff] }
 0x278   : > { %2766 = vadd.xlane.f32.xlu0 %v2765_v5  ;;  %v2444_v25 = vpop.f32.mrf.mxu2  ;;  %vm1107_vm8 = vcmp.eq.s32.totalorder %v5296_v58, %v7191_v51 }
 0x279   : > { %v2101_v31 = vadd.f32 %v5873_v49, %v1954_v53  ;;  %v2445_v18 = vadd.f32 %v6108_v29, %v2444_v25  ;;  %4789 = vmatmul.msk.f32.gmra.mxu0 %vm1270_vm0, %v4725_v46  ;;  %v4730_v25 = vsel %vm1107_vm8, 1.0, %v7178_v32 }
 0x27b   : > { %v2165_v57 = vmax.f32 %v2101_v31, 0.0  ;;  %v2622_v38 = vmax.f32 %v2445_v18, 0.0 }
 0x27d   : > { %4901 = vmatmul.msk.f32.gmra.mxu2 %vm2213_vm12, %v2165_v57  ;;  %v2690_v11 = vmul.f32 %v6118_v19, %v2622_v38 }
 0x27e   : > { %v1555_v43 = vpop.f32.mrf.mxu0 }
 0x27f   : > { %v1957_v48 = vadd.f32 %v1956_v35, %v1555_v43  ;;  %v2768_v16 = vsel %vm2213_vm12, %v2690_v11, 0.0  ;;  %v1974_v11 = vpop.f32.mrf.mxu1 }
 0x280   : > { %2769 = vadd.xlane.f32.xlu1 %v2768_v16  ;;  %v2447_v44 = vpop.f32.mrf.mxu2 }
 0x281   : > { %v2102_v9 = vadd.f32 %v5873_v49, %v1957_v48  ;;  %4790 = vmatmul.msk.f32.gmra.mxu0 %vm1270_vm0, %v4726_v60  ;;  %v2448_v14 = vadd.f32 %v6108_v29, %v2447_v44 }
 0x283   : > { %v2166_v40 = vmax.f32 %v2102_v9, 0.0  ;;  %v2623_v24 = vmax.f32 %v2448_v14, 0.0 }
 0x285   : > { %4902 = vmatmul.msk.f32.gmra.mxu2 %vm2213_vm12, %v2166_v40  ;;  %v2691_v12 = vmul.f32 %v6118_v19, %v2623_v24 }
 0x286   : > { %v1558_v61 = vpop.f32.mrf.mxu0 }
 0x287   : > { %v1960_v7 = vadd.f32 %v1959_v33, %v1558_v61  ;;  %v2771_v35 = vsel %vm2213_vm12, %v2691_v12, 0.0 }
 0x288   : > { %v2450_v20 = vpop.f32.mrf.mxu2 }
 0x289   : > { %v2103_v28 = vadd.f32 %v5873_v49, %v1960_v7  ;;  %v2451_v52 = vadd.f32 %v6108_v29, %v2450_v20  ;;  %4791 = vmatmul.msk.f32.gmra.mxu0 %vm1270_vm0, %v4727_v47  ;;  %v1977_v47 = vpop.f32.mrf.mxu1 }
 0x28b   : > { %v2167_v45 = vmax.f32 %v2103_v28, 0.0  ;;  %v2624_v55 = vmax.f32 %v2451_v52, 0.0  ;;  %v4732_v28 = vsel %vm1109_vm10, 1.0, %v7178_v32 }
 0x28d   : > { %4903 = vmatmul.msk.f32.gmra.mxu2 %vm2213_vm12, %v2167_v45  ;;  %v2692_v56 = vmul.f32 %v6118_v19, %v2624_v55 }
 0x28e   : > { %v1561_v10 = vpop.f32.mrf.mxu0 }
 0x28f   : > { %v1963_v22 = vadd.f32 %v1962_v27, %v1561_v10  ;;  %v2774_v13 = vsel %vm2213_vm12, %v2692_v56, 0.0  ;;  %v7192_v27 = vld [vmem:[#allocation29_spill] sm:$0xff] }
 0x290   : > { %2775 = vadd.xlane.f32.xlu0 %v2774_v13  ;;  %v2453_v41 = vpop.f32.mrf.mxu2  ;;  %vm1108_vm9 = vcmp.eq.s32.totalorder %v5296_v58, %v7192_v27 }
 0x291   : > { %v2104_v62 = vadd.f32 %v5873_v49, %v1963_v22  ;;  %v2454_v42 = vadd.f32 %v6108_v29, %v2453_v41  ;;  %2772 = vadd.xlane.f32.xlu2 %v2771_v35  ;;  %4792 = vmatmul.msk.f32.gmra.mxu0 %vm1270_vm0, %v4728_v1  ;;  %v4731_v44 = vsel %vm1108_vm9, 1.0, %v7178_v32  ;;  %v1980_v1 = vpop.f32.mrf.mxu1 }
 0x293   : > { %v2168_v54 = vmax.f32 %v2104_v62, 0.0  ;;  %v2625_v39 = vmax.f32 %v2454_v42, 0.0 }
 0x295   : > { %4904 = vmatmul.msk.f32.gmra.mxu2 %vm2213_vm12, %v2168_v54  ;;  %v2693_v26 = vmul.f32 %v6118_v19, %v2625_v39 }
 0x296   : > { %v1564_v59 = vpop.f32.mrf.mxu0 }
 0x297   : > { %v1966_v6 = vadd.f32 %v1965_v23, %v1564_v59  ;;  %v2777_v34 = vsel %vm2213_vm12, %v2693_v26, 0.0 }
 0x298   : > { %2778 = vadd.xlane.f32.xlu1 %v2777_v34  ;;  %v2456_v8 = vpop.f32.mrf.mxu2 }
 0x299   : > { %v2105_v21 = vadd.f32 %v5873_v49, %v1966_v6  ;;  %v2457_v33 = vadd.f32 %v6108_v29, %v2456_v8  ;;  %4793 = vmatmul.msk.f32.gmra.mxu0 %vm1270_vm0, %v4729_v36 }
 0x29b   : > { %v2169_v17 = vmax.f32 %v2105_v21, 0.0  ;;  %v2626_v0 = vmax.f32 %v2457_v33, 0.0 }
 0x29d   : > { %4905 = vmatmul.msk.f32.gmra.mxu2 %vm2213_vm12, %v2169_v17  ;;  %v2694_v2 = vmul.f32 %v6118_v19, %v2626_v0 }
 0x29e   : > { %v1567_v53 = vpop.f32.mrf.mxu0 }
 0x29f   : > { %v1969_v5 = vadd.f32 %v1968_v4, %v1567_v53  ;;  %v2780_v46 = vsel %vm2213_vm12, %v2694_v2, 0.0  ;;  %v6258_v4 = vstv %s2939_s24  ;;  %v1983_v53 = vpop.f32.mrf.mxu1  ;;  %s341_s24 = sand.u32 1, %s5072_s12  }
 0x2a0   : > { %2781 = vadd.xlane.f32.xlu0 %v2780_v46  ;;  %v2459_v31 = vpop.f32.mrf.mxu2  ;;  %s4616_s29 = sshll.u32 %s341_s24, 2  ;;  %s4526_s23 = scalar_lea.sflag [#allocation4], %s341_s24 }
 0x2a1   : > { %v2106_v18 = vadd.f32 %v5873_v49, %v1969_v5  ;;  %v2460_v57 = vadd.f32 %v6108_v29, %v2459_v31  ;;  %4794 = vmatmul.msk.f32.gmra.mxu0 %vm1270_vm0, %v4730_v25  ;;  %s343_s8 = scalar_lea.vmem [#allocation3], %s4616_s29  ;;  %s5038_s29 = scalar_lea.hbm %s7154_s9, 8 }
 0x2a2   : > { %s4538_s18 = sshll.u32 %s343_s8, 4  ;;  %p5040_p1 = scmp.lt.s32.totalorder %s5038_s29, %s5034_s25  ;;  %s4539_s18 = int_to_ptr.vmem [resolvable:$true] %s4538_s18 }
 0x2a3   : > { %v2170_v38 = vmax.f32 %v2106_v18, 0.0  ;;  %v2627_v50 = vmax.f32 %v2460_v57, 0.0 }
 0x2a4   : > { %p5041_p2 = por %p5040_p1, %p5039_p0 }
 0x2a5   : > { %4906 = vmatmul.msk.f32.gmra.mxu2 %vm2213_vm12, %v2170_v38  ;;  %v2695_v43 = vmul.f32 %v6118_v19, %v2627_v50 }
 0x2a6   : > { %v1570_v48 = vpop.f32.mrf.mxu0  ;;  %p5042_p3 = pnand %p5041_p2, %p5037_p13 }
 0x2a7   : > { %v1972_v16 = vadd.f32 %v1971_v3, %v1570_v48  ;;  %v2783_v60 = vsel %vm2213_vm12, %v2695_v43, 0.0  ;;  %v6274_v43 = vld [vmem:[%s7149_s4] ss:$0 sm:$0xff] }
 0x2a8   : > { %2784 = vadd.xlane.f32.xlu1 %v2783_v60  ;;  %v2462_v9 = vpop.f32.mrf.mxu2 }
 0x2a9   : > { %v2107_v40 = vadd.f32 %v5873_v49, %v1972_v16  ;;  %v2463_v14 = vadd.f32 %v6108_v29, %v2462_v9  ;;  %4795 = vmatmul.msk.f32.gmra.mxu0 %vm1270_vm0, %v4731_v44 }
 0x2ab   : > { %v2171_v30 = vmax.f32 %v2107_v40, 0.0  ;;  %v2628_v61 = vmax.f32 %v2463_v14, 0.0  ;;  %v1986_v14 = vpop.f32.mrf.mxu1 }
 0x2ad   : > { %4907 = vmatmul.msk.f32.gmra.mxu2 %vm2213_vm12, %v2171_v30  ;;  %v2696_v23 = vmul.f32 %v6118_v19, %v2628_v61 }
 0x2ae   : > { %v1573_v7 = vpop.f32.mrf.mxu0 }
 0x2af   : > { %v1975_v24 = vadd.f32 %v1974_v11, %v1573_v7  ;;  %v2786_v20 = vsel %vm2213_vm12, %v2696_v23, 0.0 }
 0x2b0   : > { %2787 = vadd.xlane.f32.xlu0 %v2786_v20  ;;  %v2465_v52 = vpop.f32.mrf.mxu2 }
 0x2b1   : > { %v2108_v45 = vadd.f32 %v5873_v49, %v1975_v24  ;;  %v2466_v55 = vadd.f32 %v6108_v29, %v2465_v52  ;;  %4796 = vmatmul.msk.f32.gmra.mxu0 %vm1270_vm0, %v4732_v28 }
 0x2b3   : > { %v2172_v37 = vmax.f32 %v2108_v45, 0.0  ;;  %v2629_v12 = vmax.f32 %v2466_v55, 0.0 }
 0x2b5   : > { %4908 = vmatmul.msk.f32.gmra.mxu2 %vm2213_vm12, %v2172_v37  ;;  %v2697_v15 = vmul.f32 %v6118_v19, %v2629_v12 }
 0x2b6   : > { %v1576_v56 = vpop.f32.mrf.mxu0 }
 0x2b7   : > { %v1978_v10 = vadd.f32 %v1977_v47, %v1576_v56  ;;  %v2789_v22 = vsel %vm2213_vm12, %v2697_v15, 0.0  ;;  %v7193_v15 = vld [vmem:[#allocation11_spill] sm:$0xff] }
 0x2b8   : > { %2790 = vadd.xlane.f32.xlu1 %v2789_v22  ;;  %v2468_v13 = vpop.f32.mrf.mxu2  ;;  %vm662_vm13 = vcmp.eq.s32.totalorder %v5296_v58, %v7193_v15 }
 0x2b9   : > { %v2109_v41 = vadd.f32 %v5873_v49, %v1978_v10  ;;  %v2469_v35 = vadd.f32 %v6108_v29, %v2468_v13 }
 0x2bb   : > { %v2173_v62 = vmax.f32 %v2109_v41, 0.0  ;;  %v2630_v42 = vmax.f32 %v2469_v35, 0.0  ;;  %v2749_v54 = vpop.xlane.xlu1 %2748  ;;  %v4669_v41 = vsel %vm662_vm13, 1.0, %v7178_v32 }
 0x2bc   : > { %v2941_v39 = vadd.f32 %v6258_v4, %v2749_v54 }
 0x2bd   : > { %4909 = vmatmul.msk.f32.gmra.mxu2 %vm2213_vm12, %v2173_v62  ;;  %v2698_v63 = vmul.f32 %v6118_v19, %v2630_v42  ;;  %v1989_v42 = vpop.f32.mrf.mxu1 }
 0x2be   : > { %v3069_v26 = vperm.slane %v2941_v39, 0  ;;  %v3070_v59 = vperm.slane %v2941_v39, 1  ;;  %v3071_v6 = vperm.slane %v2941_v39, 2  ;;  %v1579_v34 = vpop.f32.mrf.mxu0  ;;  %v3072_v36 = vperm.slane %v2941_v39, 3 }
 0x2bf   : > { %v3073_v8 = vperm.slane %v2941_v39, 4  ;;  %v1981_v21 = vadd.f32 %v1980_v1, %v1579_v34  ;;  %v2792_v33 = vsel %vm2213_vm12, %v2698_v63, 0.0  ;;  %v3074_v17 = vperm.slane %v2941_v39, 5  ;;  %v7194_v63 = vld [vmem:[#allocation10_spill] sm:$0xff] }
 0x2c0   : > { %3581 = vst [vmem:[#allocation1] ss:$9 sm:$0xff] %v3069_v26  ;;  %v2471_v3 = vpop.f32.mrf.mxu2  ;;  %2793 = vadd.xlane.f32.xlu0 %v2792_v33  ;;  %v3075_v51 = vperm.slane %v2941_v39, 6  ;;  %v3076_v5 = vperm.slane %v2941_v39, 7  ;;  %vm663_vm14 = vcmp.eq.s32.totalorder %v5296_v58, %v7194_v63 }
 0x2c1   : > { %3583 = vst [vmem:[#allocation1 + $0x1] ss:$9 sm:$0xff] %v3070_v59  ;;  %v2472_v0 = vadd.f32 %v6108_v29, %v2471_v3  ;;  %v2110_v2 = vadd.f32 %v5873_v49, %v1981_v21  ;;  %v4670_v21 = vsel %vm663_vm14, 1.0, %v7178_v32 }
 0x2c2   : > { %3585 = vst [vmem:[#allocation1 + $0x2] ss:$9 sm:$0xff] %v3071_v6 }
 0x2c3   : > { %3587 = vst [vmem:[#allocation1 + $0x3] ss:$9 sm:$0xff] %v3072_v36  ;;  %v2631_v46 = vmax.f32 %v2472_v0, 0.0  ;;  %v2752_v25 = vpop.xlane.xlu2 %2751  ;;  %v2174_v31 = vmax.f32 %v2110_v2, 0.0 }
 0x2c4   : > { %3589 = vst [vmem:[#allocation1 + $0x4] ss:$9 sm:$0xff] %v3073_v8  ;;  %v2942_v38 = vadd.f32 %v6258_v4, %v2752_v25 }
 0x2c5   : > { %3591 = vst [vmem:[#allocation1 + $0x5] ss:$9 sm:$0xff] %v3074_v17  ;;  %v2699_v18 = vmul.f32 %v6118_v19, %v2631_v46  ;;  %4910 = vmatmul.msk.f32.gmra.mxu2 %vm2213_vm12, %v2174_v31  ;;  %v1992_v0 = vpop.f32.mrf.mxu1 }
 0x2c6   : > { %3593 = vst [vmem:[#allocation1 + $0x6] ss:$9 sm:$0xff] %v3075_v51  ;;  %v1582_v57 = vpop.f32.mrf.mxu0  ;;  %v3077_v16 = vperm.slane %v2942_v38, 0  ;;  %v3078_v9 = vperm.slane %v2942_v38, 1  ;;  %v3079_v30 = vperm.slane %v2942_v38, 2  ;;  %v3080_v47 = vperm.slane %v2942_v38, 3 }
 0x2c7   : > { %3595 = vst [vmem:[#allocation1 + $0x7] ss:$9 sm:$0xff] %v3076_v5  ;;  %v1984_v50 = vadd.f32 %v1983_v53, %v1582_v57  ;;  %v2795_v49 = vsel %vm2213_vm12, %v2699_v18, 0.0  ;;  %v3081_v20 = vperm.slane %v2942_v38, 4  ;;  %v3082_v28 = vperm.slane %v2942_v38, 5  ;;  %v7195_v53 = vld [vmem:[#allocation6_spill] sm:$0xff] }
 0x2c8   : > { %v2474_v27 = vpop.f32.mrf.mxu2  ;;  %2796 = vadd.xlane.f32.xlu1 %v2795_v49  ;;  %v3083_v37 = vperm.slane %v2942_v38, 6  ;;  %v3084_v56 = vperm.slane %v2942_v38, 7  ;;  %vm664_vm15 = vcmp.eq.s32.totalorder %v5296_v58, %v7195_v53 }
 0x2c9   : > { %v2475_v11 = vadd.f32 %v6108_v29, %v2474_v27  ;;  %v2111_v48 = vadd.f32 %v6274_v43, %v1984_v50  ;;  %v4671_v18 = vsel %vm664_vm15, 1.0, %v7178_v32  ;;  %v7196_v50 = vld [vmem:[#allocation14_spill] sm:$0xff]  ;;  %vm4367_vm15 = vcmask 261312  }
 0x2ca   : > { %vm665_vm1 = vcmp.eq.s32.totalorder %v5296_v58, %v7196_v50 }
 0x2cb   : > { %v2632_v60 = vmax.f32 %v2475_v11, 0.0  ;;  %v1061_v44 = vpop.permute.xlu2 %1060  ;;  %v2175_v40 = vmax.f32 %v2111_v48, 0.0  ;;  %v2755_v22 = vpop.xlane.xlu0 %2754 }
 0x2cc   : > { %vm1125_vm11 = vcmp.eq.s32.totalorder %v5296_v58, %v1061_v44 }
 0x2cd   : > { %v4748_v61 = vsel %vm1125_vm11, 1.0, %v7178_v32  ;;  %v2700_v23 = vmul.f32 %v6118_v19, %v2632_v60  ;;  %4911 = vmatmul.msk.f32.gmra.mxu2 %vm2213_vm12, %v2175_v40  ;;  %v4672_v60 = vsel %vm665_vm1, 1.0, %v7178_v32  ;;  %v1995_v40 = vpop.f32.mrf.mxu1  ;;  %vm4371_vm1 = vcmask 326912  }
 0x2ce   : > { %v6280_v7 = vld [vmem:[#allocation1] sm:$0xff]  ;;  %v1585_v24 = vpop.f32.mrf.mxu0  ;;  %4812 = vmatmul.msk.f32.gmra.mxu3 %vm1270_vm0, %v4748_v61 }
 0x2cf   : > { %3597 = vst [vmem:[#allocation1] ss:$9 sm:$0xff] %v3077_v16  ;;  %v1987_v52 = vadd.f32 %v1986_v14, %v1585_v24  ;;  %v2798_v45 = vsel %vm2213_vm12, %v2700_v23, 0.0 }
 0x2d0   : > { %3598 = vst [vmem:[#allocation1 + $0x1] ss:$9 sm:$0xff] %v3078_v9  ;;  %v2477_v55 = vpop.f32.mrf.mxu2  ;;  %2799 = vadd.xlane.f32.xlu0 %v2798_v45 }
 0x2d1   : > { %3599 = vst [vmem:[#allocation1 + $0x2] ss:$9 sm:$0xff] %v3079_v30  ;;  %v2478_v12 = vadd.f32 %v6108_v29, %v2477_v55  ;;  %v2112_v10 = vadd.f32 %v6274_v43, %v1987_v52  ;;  %v2943_v29 = vadd.f32 %v6258_v4, %v2755_v22 }
 0x2d2   : > { %3600 = vst [vmem:[#allocation1 + $0x3] ss:$9 sm:$0xff] %v3080_v47  ;;  %v7197_v47 = vld [vmem:[#allocation13_spill] sm:$0xff] }
 0x2d3   : > { %3601 = vst [vmem:[#allocation1 + $0x4] ss:$9 sm:$0xff] %v3081_v20  ;;  %v2633_v13 = vmax.f32 %v2478_v12, 0.0  ;;  %v2176_v1 = vmax.f32 %v2112_v10, 0.0  ;;  %v3085_v26 = vperm.slane %v2943_v29, 0  ;;  %v3087_v6 = vperm.slane %v2943_v29, 2  ;;  %v2758_v5 = vpop.xlane.xlu1 %2757 }
 0x2d4   : > { %3602 = vst [vmem:[#allocation1 + $0x5] ss:$9 sm:$0xff] %v3082_v28  ;;  %v3088_v8 = vperm.slane %v2943_v29, 3  ;;  %v3089_v33 = vperm.slane %v2943_v29, 4  ;;  %v3090_v3 = vperm.slane %v2943_v29, 5  ;;  %v3091_v17 = vperm.slane %v2943_v29, 6 }
 0x2d5   : > { %3603 = vst [vmem:[#allocation1 + $0x6] ss:$9 sm:$0xff] %v3083_v37  ;;  %v2701_v35 = vmul.f32 %v6118_v19, %v2633_v13  ;;  %4912 = vmatmul.msk.f32.gmra.mxu2 %vm2213_vm12, %v2176_v1  ;;  %v3086_v19 = vperm.slane %v2943_v29, 1  ;;  %v3092_v51 = vperm.slane %v2943_v29, 7  ;;  %v2944_v31 = vadd.f32 %v6258_v4, %v2758_v5  ;;  %v7198_v37 = vld [vmem:[#allocation7_spill] sm:$0xff] }
 0x2d6   : > { %3604 = vst [vmem:[#allocation1 + $0x7] ss:$9 sm:$0xff] %v3084_v56  ;;  %v1588_v62 = vpop.f32.mrf.mxu0  ;;  %4861 = vmatmul.msk.f32.vlgmr.msrb.gmra.mxu3 %vm1270_vm0, %v4669_v41  ;;  %vm666_vm2 = vcmp.eq.s32.totalorder %v5296_v58, %v7197_v47  ;;  %vm667_vm3 = vcmp.eq.s32.totalorder %v5296_v58, %v7198_v37  ;;  %v1998_v41 = vpop.f32.mrf.mxu1 }
 0x2d7   : > { %v1990_v54 = vadd.f32 %v1989_v42, %v1588_v62  ;;  %v2801_v39 = vsel %vm2213_vm12, %v2701_v35, 0.0  ;;  %v3093_v38 = vperm.slane %v2944_v31, 0  ;;  %v3094_v49 = vperm.slane %v2944_v31, 1 }
 0x2d8   : > { %2802 = vadd.xlane.f32.xlu1 %v2801_v39  ;;  %v3095_v27 = vperm.slane %v2944_v31, 2  ;;  %v3096_v48 = vperm.slane %v2944_v31, 3  ;;  %v3097_v16 = vperm.slane %v2944_v31, 4  ;;  %v3098_v44 = vperm.slane %v2944_v31, 5 }
 0x2d9   : > { %v2113_v59 = vadd.f32 %v6274_v43, %v1990_v54  ;;  %v3099_v9 = vperm.slane %v2944_v31, 6  ;;  %v3100_v14 = vperm.slane %v2944_v31, 7  ;;  %v4673_v52 = vsel %vm666_vm2, 1.0, %v7178_v32  ;;  %v7199_v54 = vld [vmem:[#allocation16_spill] sm:$0xff] }
 0x2da   : > { %v4674_v13 = vsel %vm667_vm3, 1.0, %v7178_v32  ;;  %vm668_vm4 = vcmp.eq.s32.totalorder %v5296_v58, %v7199_v54  ;;  %vm4375_vm2 = vcmask 392512   ;;  %vm4379_vm3 = vcmask 458112  }
 0x2db   : > { %v2177_v34 = vmax.f32 %v2113_v59, 0.0  ;;  %v2761_v61 = vpop.xlane.xlu0 %2760  ;;  %v4675_v59 = vsel %vm668_vm4, 1.0, %v7178_v32  ;;  %vm4383_vm4 = vcmask 523712  }
 0x2dc   : > { %v2945_v20 = vadd.f32 %v6258_v4, %v2761_v61 }
 0x2dd   : > { %v6298_v36 = vld [vmem:[#allocation1] sm:$0xff]  ;;  %4913 = vmatmul.msk.f32.gmra.mxu2 %vm2213_vm12, %v2177_v34 }
 0x2de   : > { %3606 = vst [vmem:[#allocation1] ss:$9 sm:$0xff] %v3085_v26  ;;  %4862 = vmatmul.msk.f32.gmra.mxu3 %vm1270_vm0, %v4670_v21  ;;  %v1591_v2 = vpop.f32.mrf.mxu0  ;;  %v3101_v45 = vperm.slane %v2945_v20, 0  ;;  %v3102_v55 = vperm.slane %v2945_v20, 1  ;;  %v3103_v12 = vperm.slane %v2945_v20, 2  ;;  %v3104_v56 = vperm.slane %v2945_v20, 3 }
 0x2df   : > { %3607 = vst [vmem:[#allocation1 + $0x1] ss:$9 sm:$0xff] %v3086_v19  ;;  %v1993_v46 = vadd.f32 %v1992_v0, %v1591_v2  ;;  %v3105_v10 = vperm.slane %v2945_v20, 4  ;;  %v3106_v22 = vperm.slane %v2945_v20, 5  ;;  %v3107_v1 = vperm.slane %v2945_v20, 6  ;;  %v7200_v21 = vld [vmem:[#allocation15_spill] sm:$0xff]  ;;  %v2001_v0 = vpop.f32.mrf.mxu1 }
 0x2e0   : > { %3608 = vst [vmem:[#allocation1 + $0x2] ss:$9 sm:$0xff] %v3087_v6  ;;  %v3108_v35 = vperm.slane %v2945_v20, 7  ;;  %v6336_v6 = vpop.f32.mrf.mxu3  ;;  %vm669_vm5 = vcmp.eq.s32.totalorder %v5296_v58, %v7200_v21 }
 0x2e1   : > { %3609 = vst [vmem:[#allocation1 + $0x3] ss:$9 sm:$0xff] %v3088_v8  ;;  %v2114_v25 = vadd.f32 %v6274_v43, %v1993_v46  ;;  %v4676_v53 = vsel %vm669_vm5, 1.0, %v7178_v32  ;;  %vm4387_vm5 = vcmask 589312  }
 0x2e2   : > { %3610 = vst [vmem:[#allocation1 + $0x4] ss:$9 sm:$0xff] %v3089_v33 }
 0x2e3   : > { %3611 = vst [vmem:[#allocation1 + $0x5] ss:$9 sm:$0xff] %v3090_v3  ;;  %v2178_v57 = vmax.f32 %v2114_v25, 0.0  ;;  %v2764_v62 = vpop.xlane.xlu1 %2763 }
 0x2e4   : > { %3612 = vst [vmem:[#allocation1 + $0x6] ss:$9 sm:$0xff] %v3091_v17  ;;  %v2946_v63 = vadd.f32 %v6258_v4, %v2764_v62 }
 0x2e5   : > { %3613 = vst [vmem:[#allocation1 + $0x7] ss:$9 sm:$0xff] %v3092_v51  ;;  %4914 = vmatmul.msk.f32.gmra.mxu2 %vm2213_vm12, %v2178_v57  ;;  %v7201_v57 = vld [vmem:[#allocation8_spill] sm:$0xff] }
 0x2e6   : > { %4863 = vmatmul.msk.f32.gmra.mxu3 %vm1270_vm0, %v4671_v18  ;;  %v1594_v30 = vpop.f32.mrf.mxu0  ;;  %v3109_v19 = vperm.slane %v2946_v63, 0  ;;  %v3110_v34 = vperm.slane %v2946_v63, 1  ;;  %v3111_v8 = vperm.slane %v2946_v63, 2  ;;  %v3112_v3 = vperm.slane %v2946_v63, 3 }
 0x2e7   : > { %v1996_v23 = vadd.f32 %v1995_v40, %v1594_v30  ;;  %v3113_v17 = vperm.slane %v2946_v63, 4  ;;  %v3114_v51 = vperm.slane %v2946_v63, 5  ;;  %v3115_v2 = vperm.slane %v2946_v63, 6 }
 0x2e8   : > { %v3116_v5 = vperm.slane %v2946_v63, 7  ;;  %vm670_vm6 = vcmp.eq.s32.totalorder %v5296_v58, %v7201_v57 }
 0x2e9   : > { %v2115_v24 = vadd.f32 %v6274_v43, %v1996_v23  ;;  %v7202_v23 = vld [vmem:[#allocation18_spill] sm:$0xff] }
 0x2ea   : > { %vm671_vm7 = vcmp.eq.s32.totalorder %v5296_v58, %v7202_v23 }
 0x2eb   : > { %v2179_v28 = vmax.f32 %v2115_v24, 0.0  ;;  %v2767_v25 = vpop.xlane.xlu0 %2766 }
 0x2ec   : > { %v6312_v11 = vld [vmem:[#allocation1] sm:$0xff]  ;;  %v2947_v50 = vadd.f32 %v6258_v4, %v2767_v25 }
 0x2ed   : > { %3615 = vst [vmem:[#allocation1] ss:$9 sm:$0xff] %v3093_v38  ;;  %4915 = vmatmul.msk.f32.gmra.mxu2 %vm2213_vm12, %v2179_v28  ;;  %v6347_v38 = vpop.f32.mrf.mxu3 }
 0x2ee   : > { %3616 = vst [vmem:[#allocation1 + $0x1] ss:$9 sm:$0xff] %v3094_v49  ;;  %4864 = vmatmul.msk.f32.gmra.mxu3 %vm1270_vm0, %v4672_v60  ;;  %v1597_v29 = vpop.f32.mrf.mxu0  ;;  %v3119_v40 = vperm.slane %v2947_v50, 2  ;;  %v3120_v30 = vperm.slane %v2947_v50, 3  ;;  %v3121_v47 = vperm.slane %v2947_v50, 4  ;;  %v3122_v24 = vperm.slane %v2947_v50, 5 }
 0x2ef   : > { %3617 = vst [vmem:[#allocation1 + $0x2] ss:$9 sm:$0xff] %v3095_v27  ;;  %v1999_v42 = vadd.f32 %v1998_v41, %v1597_v29  ;;  %v4677_v27 = vsel %vm670_vm6, 1.0, %v7178_v32  ;;  %vm4391_vm6 = vcmask 654912  }
 0x2f0   : > { %3618 = vst [vmem:[#allocation1 + $0x3] ss:$9 sm:$0xff] %v3096_v48  ;;  %v2004_v48 = vpop.f32.mrf.mxu1 }
 0x2f1   : > { %3619 = vst [vmem:[#allocation1 + $0x4] ss:$9 sm:$0xff] %v3097_v16  ;;  %v2116_v39 = vadd.f32 %v6274_v43, %v1999_v42  ;;  %v3117_v16 = vperm.slane %v2947_v50, 0 }
 0x2f2   : > { %3620 = vst [vmem:[#allocation1 + $0x5] ss:$9 sm:$0xff] %v3098_v44  ;;  %v3118_v44 = vperm.slane %v2947_v50, 1 }
 0x2f3   : > { %3621 = vst [vmem:[#allocation1 + $0x6] ss:$9 sm:$0xff] %v3099_v9  ;;  %v2180_v26 = vmax.f32 %v2116_v39, 0.0  ;;  %v2770_v37 = vpop.xlane.xlu1 %2769 }
 0x2f4   : > { %3622 = vst [vmem:[#allocation1 + $0x7] ss:$9 sm:$0xff] %v3100_v14 }
 0x2f5   : > { %4916 = vmatmul.msk.f32.gmra.mxu2 %vm2213_vm12, %v2180_v26  ;;  %v6358_v28 = vpop.f32.mrf.mxu3 }
 0x2f6   : > { %4865 = vmatmul.msk.f32.gmra.mxu3 %vm1270_vm0, %v4673_v52  ;;  %v1600_v46 = vpop.f32.mrf.mxu0  ;;  %v3123_v52 = vperm.slane %v2947_v50, 6 }
 0x2f7   : > { %v2002_v31 = vadd.f32 %v2001_v0, %v1600_v46 }
 0x2f9   : > { %v2117_v18 = vadd.f32 %v6274_v43, %v2002_v31 }
 0x2fb   : > { %v6325_v15 = vld [vmem:[#allocation1] sm:$0xff]  ;;  %v2181_v49 = vmax.f32 %v2117_v18, 0.0 }
 0x2fc   : > { %3624 = vst [vmem:[#allocation1] ss:$9 sm:$0xff] %v3101_v45  ;;  %v4678_v45 = vsel %vm671_vm7, 1.0, %v7178_v32  ;;  %vm4395_vm7 = vcmask 720512  }
 0x2fd   : > { %3625 = vst [vmem:[#allocation1 + $0x1] ss:$9 sm:$0xff] %v3102_v55  ;;  %4917 = vmatmul.msk.f32.gmra.mxu2 %vm2213_vm12, %v2181_v49  ;;  %v3124_v55 = vperm.slane %v2947_v50, 7 }
 0x2fe   : > { %3626 = vst [vmem:[#allocation1 + $0x2] ss:$9 sm:$0xff] %v3103_v12  ;;  %4866 = vmatmul.msk.f32.gmra.mxu3 %vm1270_vm0, %v4674_v13  ;;  %v1603_v60 = vpop.f32.mrf.mxu0  ;;  %v2948_v12 = vadd.f32 %v6258_v4, %v2770_v37 }
 0x2ff   : > { %3627 = vst [vmem:[#allocation1 + $0x3] ss:$9 sm:$0xff] %v3104_v56  ;;  %v2005_v9 = vadd.f32 %v2004_v48, %v1603_v60  ;;  %v7203_v56 = vld [vmem:[#allocation17_spill] sm:$0xff] }
 0x300   : > { %3628 = vst [vmem:[#allocation1 + $0x4] ss:$9 sm:$0xff] %v3105_v10  ;;  %vm672_vm8 = vcmp.eq.s32.totalorder %v5296_v58, %v7203_v56  ;;  %v2007_v10 = vpop.f32.mrf.mxu1  ;;  %v3125_v41 = vperm.slane %v2948_v12, 0  ;;  %v3126_v29 = vperm.slane %v2948_v12, 1  ;;  %v3127_v42 = vperm.slane %v2948_v12, 2 }
 0x301   : > { %3629 = vst [vmem:[#allocation1 + $0x5] ss:$9 sm:$0xff] %v3106_v22  ;;  %v2118_v61 = vadd.f32 %v6274_v43, %v2005_v9  ;;  %v3128_v39 = vperm.slane %v2948_v12, 3  ;;  %v3129_v26 = vperm.slane %v2948_v12, 4 }
 0x302   : > { %3630 = vst [vmem:[#allocation1 + $0x6] ss:$9 sm:$0xff] %v3107_v1  ;;  %v4679_v1 = vsel %vm672_vm8, 1.0, %v7178_v32  ;;  %vm4399_vm8 = vcmask 786112  }
 0x303   : > { %3631 = vst [vmem:[#allocation1 + $0x7] ss:$9 sm:$0xff] %v3108_v35  ;;  %v2182_v20 = vmax.f32 %v2118_v61, 0.0  ;;  %v6367_v35 = vpop.f32.mrf.mxu3  ;;  %v2776_v23 = vpop.xlane.xlu0 %2775 }
 0x305   : > { %4918 = vmatmul.msk.f32.gmra.mxu2 %vm2213_vm12, %v2182_v20 }
 0x306   : > { %4867 = vmatmul.msk.f32.gmra.mxu3 %vm1270_vm0, %v4675_v59  ;;  %v1606_v22 = vpop.f32.mrf.mxu0  ;;  %v7204_v59 = vld [vmem:[#allocation9_spill] sm:$0xff] }
 0x307   : > { %v2008_v13 = vadd.f32 %v2007_v10, %v1606_v22  ;;  %vm673_vm9 = vcmp.eq.s32.totalorder %v5296_v58, %v7204_v59 }
 0x308   : > { %v4680_v21 = vsel %vm673_vm9, 1.0, %v7178_v32  ;;  %vm4403_vm9 = vcmask 851712  }
 0x309   : > { %v2119_v62 = vadd.f32 %v6274_v43, %v2008_v13 }
 0x30a   : > { %v6340_v33 = vld [vmem:[#allocation1] sm:$0xff] }
 0x30b   : > { %3633 = vst [vmem:[#allocation1] ss:$9 sm:$0xff] %v3109_v19  ;;  %v2183_v63 = vmax.f32 %v2119_v62, 0.0  ;;  %v3130_v19 = vperm.slane %v2948_v12, 5 }
 0x30c   : > { %3634 = vst [vmem:[#allocation1 + $0x1] ss:$9 sm:$0xff] %v3110_v34  ;;  %v3131_v34 = vperm.slane %v2948_v12, 6 }
 0x30d   : > { %3635 = vst [vmem:[#allocation1 + $0x2] ss:$9 sm:$0xff] %v3111_v8  ;;  %4919 = vmatmul.msk.f32.gmra.mxu2 %vm2213_vm12, %v2183_v63  ;;  %v3132_v8 = vperm.slane %v2948_v12, 7 }
 0x30e   : > { %3636 = vst [vmem:[#allocation1 + $0x3] ss:$9 sm:$0xff] %v3112_v3  ;;  %4868 = vmatmul.msk.f32.gmra.mxu3 %vm1270_vm0, %v4676_v53  ;;  %v2773_v3 = vpop.xlane.xlu2 %2772  ;;  %v1609_v53 = vpop.f32.mrf.mxu0 }
 0x30f   : > { %3637 = vst [vmem:[#allocation1 + $0x4] ss:$9 sm:$0xff] %v3113_v17  ;;  %v6378_v17 = vpop.f32.mrf.mxu3  ;;  %v2949_v0 = vadd.f32 %v6258_v4, %v2773_v3 }
 0x310   : > { %3638 = vst [vmem:[#allocation1 + $0x5] ss:$9 sm:$0xff] %v3114_v51  ;;  %v7205_v51 = vld [vmem:[#allocation20_spill] sm:$0xff] }
 0x311   : > { %3639 = vst [vmem:[#allocation1 + $0x6] ss:$9 sm:$0xff] %v3115_v2  ;;  %vm674_vm10 = vcmp.eq.s32.totalorder %v5296_v58, %v7205_v51  ;;  %v2010_v2 = vpop.f32.mrf.mxu1  ;;  %v3133_v46 = vperm.slane %v2949_v0, 0  ;;  %v3134_v31 = vperm.slane %v2949_v0, 1  ;;  %v3135_v57 = vperm.slane %v2949_v0, 2 }
 0x312   : > { %3640 = vst [vmem:[#allocation1 + $0x7] ss:$9 sm:$0xff] %v3116_v5  ;;  %v2011_v5 = vadd.f32 %v2010_v2, %v1609_v53  ;;  %v4681_v25 = vsel %vm674_vm10, 1.0, %v7178_v32  ;;  %v3136_v49 = vperm.slane %v2949_v0, 3  ;;  %v3137_v48 = vperm.slane %v2949_v0, 4 }
 0x313   : > { %v3138_v60 = vperm.slane %v2949_v0, 5  ;;  %vm4407_vm10 = vcmask 917312  }
 0x314   : > { %v2120_v18 = vadd.f32 %v6274_v43, %v2011_v5 }
 0x316   : > { %4869 = vmatmul.msk.f32.gmra.mxu3 %vm1270_vm0, %v4677_v27  ;;  %v2184_v27 = vmax.f32 %v2120_v18, 0.0  ;;  %v1612_v20 = vpop.f32.mrf.mxu0 }
 0x317   : > { %v6393_v9 = vpop.f32.mrf.mxu3 }
 0x319   : > { %v6353_v14 = vld [vmem:[#allocation1] sm:$0xff] }
 0x31a   : > { %3642 = vst [vmem:[#allocation1] ss:$9 sm:$0xff] %v3117_v16  ;;  %v6388_v16 = vpop.f32.mrf.mxu2  ;;  %4920 = vmatmul.msk.f32.gmra.mxu2 %vm2213_vm12, %v2184_v27 }
 0x31b   : > { %3643 = vst [vmem:[#allocation1 + $0x1] ss:$9 sm:$0xff] %v3118_v44  ;;  %v7206_v44 = vld [vmem:[#allocation19_spill] sm:$0xff] }
 0x31c   : > { %3644 = vst [vmem:[#allocation1 + $0x2] ss:$9 sm:$0xff] %v3119_v40  ;;  %vm675_vm11 = vcmp.eq.s32.totalorder %v5296_v58, %v7206_v44  ;;  %v3139_v40 = vperm.slane %v2949_v0, 6 }
 0x31d   : > { %3645 = vst [vmem:[#allocation1 + $0x3] ss:$9 sm:$0xff] %v3120_v30  ;;  %v3140_v30 = vperm.slane %v2949_v0, 7  ;;  %v4682_v61 = vsel %vm675_vm11, 1.0, %v7178_v32  ;;  %vm4411_vm11 = vcmask 982912  }
 0x31e   : > { %3646 = vst [vmem:[#allocation1 + $0x4] ss:$9 sm:$0xff] %v3121_v47  ;;  %4870 = vmatmul.msk.f32.gmra.mxu3 %vm1270_vm0, %v4678_v45  ;;  %v2013_v47 = vpop.f32.mrf.mxu1  ;;  %v1615_v3 = vpop.f32.mrf.mxu0 }
 0x31f   : > { %3647 = vst [vmem:[#allocation1 + $0x5] ss:$9 sm:$0xff] %v3122_v24  ;;  %v2950_v24 = vadd.f32 %v6258_v4, %v2776_v23  ;;  %v2014_v45 = vadd.f32 %v2013_v47, %v1612_v20 }
 0x320   : > { %3648 = vst [vmem:[#allocation1 + $0x6] ss:$9 sm:$0xff] %v3123_v52  ;;  %v7207_v52 = vld [vmem:[#allocation12_spill] sm:$0xff] }
 0x321   : > { %3649 = vst [vmem:[#allocation1 + $0x7] ss:$9 sm:$0xff] %v3124_v55  ;;  %vm676_vm13 = vcmp.eq.s32.totalorder %v5296_v58, %v7207_v52  ;;  %v6400_v55 = vpop.f32.mrf.mxu3  ;;  %v2121_v37 = vadd.f32 %v6274_v43, %v2014_v45  ;;  %v3141_v56 = vperm.slane %v2950_v24, 0  ;;  %v3142_v10 = vperm.slane %v2950_v24, 1 }
 0x322   : > { %v4683_v12 = vsel %vm676_vm13, 1.0, %v7178_v32  ;;  %v3145_v62 = vperm.slane %v2950_v24, 4  ;;  %v3147_v63 = vperm.slane %v2950_v24, 6  ;;  %vm4415_vm13 = vcmask 1048512  }
 0x323   : > { %v2185_v13 = vmax.f32 %v2121_v37, 0.0 }
 0x326   : > { %4871 = vmatmul.msk.f32.gmra.mxu3 %vm1270_vm0, %v4679_v1  ;;  %v3143_v1 = vperm.slane %v2950_v24, 2 }
 0x328   : > { %v6371_v54 = vld [vmem:[#allocation1] sm:$0xff] }
 0x329   : > { %3651 = vst [vmem:[#allocation1] ss:$9 sm:$0xff] %v3125_v41  ;;  %v6407_v41 = vpop.f32.mrf.mxu2  ;;  %4921 = vmatmul.msk.f32.gmra.mxu2 %vm2213_vm12, %v2185_v13 }
 0x32a   : > { %3652 = vst [vmem:[#allocation1 + $0x1] ss:$9 sm:$0xff] %v3126_v29  ;;  %v3144_v29 = vperm.slane %v2950_v24, 3 }
 0x32b   : > { %3653 = vst [vmem:[#allocation1 + $0x2] ss:$9 sm:$0xff] %v3127_v42  ;;  %v7208_v42 = vld [vmem:[#allocation21_spill] sm:$0xff] }
 0x32c   : > { %3654 = vst [vmem:[#allocation1 + $0x3] ss:$9 sm:$0xff] %v3128_v39  ;;  %vm677_vm14 = vcmp.eq.s32.totalorder %v5296_v58, %v7208_v42  ;;  %v3146_v39 = vperm.slane %v2950_v24, 5 }
 0x32d   : > { %3655 = vst [vmem:[#allocation1 + $0x4] ss:$9 sm:$0xff] %v3129_v26  ;;  %v3148_v26 = vperm.slane %v2950_v24, 7  ;;  %v4684_v59 = vsel %vm677_vm14, 1.0, %v7178_v32  ;;  %vm4513_vm14 = vcmask 1040384  }
 0x32e   : > { %3656 = vst [vmem:[#allocation1 + $0x5] ss:$9 sm:$0xff] %v3130_v19  ;;  %4872 = vmatmul.msk.f32.gmra.mxu3 %vm1270_vm0, %v4680_v21  ;;  %v2779_v19 = vpop.xlane.xlu1 %2778 }
 0x32f   : > { %3657 = vst [vmem:[#allocation1 + $0x6] ss:$9 sm:$0xff] %v3131_v34  ;;  %v6413_v34 = vpop.f32.mrf.mxu3  ;;  %v2951_v21 = vadd.f32 %v6258_v4, %v2779_v19 }
 0x330   : > { %3658 = vst [vmem:[#allocation1 + $0x7] ss:$9 sm:$0xff] %v3132_v8  ;;  %v2016_v8 = vpop.f32.mrf.mxu1 }
 0x331   : > { %v2017_v0 = vadd.f32 %v2016_v8, %v1615_v3  ;;  %v3149_v2 = vperm.slane %v2951_v21, 0  ;;  %v3150_v5 = vperm.slane %v2951_v21, 1  ;;  %v3151_v32 = vperm.slane %v2951_v21, 2 }
 0x332   : > { %v3153_v18 = vperm.slane %v2951_v21, 4  ;;  %v3156_v27 = vperm.slane %v2951_v21, 7 }
 0x333   : > { %v2122_v51 = vadd.f32 %v6274_v43, %v2017_v0 }
 0x336   : > { %4873 = vmatmul.msk.f32.gmra.mxu3 %vm1270_vm0, %v4681_v25  ;;  %v6420_v25 = vpop.f32.mrf.mxu2 }
 0x337   : > { %v6386_v50 = vld [vmem:[#allocation1] sm:$0xff] }
 0x338   : > { %3660 = vst [vmem:[#allocation1] ss:$9 sm:$0xff] %v3133_v46  ;;  %v2186_v46 = vmax.f32 %v2122_v51, 0.0 }
 0x339   : > { %3661 = vst [vmem:[#allocation1 + $0x1] ss:$9 sm:$0xff] %v3134_v31  ;;  %v3152_v31 = vperm.slane %v2951_v21, 3 }
 0x33a   : > { %3662 = vst [vmem:[#allocation1 + $0x2] ss:$9 sm:$0xff] %v3135_v57  ;;  %4922 = vmatmul.msk.f32.gmra.mxu2 %vm2213_vm12, %v2186_v46  ;;  %v3154_v57 = vperm.slane %v2951_v21, 5 }
 0x33b   : > { %3663 = vst [vmem:[#allocation1 + $0x3] ss:$9 sm:$0xff] %v3136_v49  ;;  %v3155_v49 = vperm.slane %v2951_v21, 6 }
 0x33c   : > { %3664 = vst [vmem:[#allocation1 + $0x4] ss:$9 sm:$0xff] %v3137_v48  ;;  %v2782_v48 = vpop.xlane.xlu0 %2781 }
 0x33d   : > { %3665 = vst [vmem:[#allocation1 + $0x5] ss:$9 sm:$0xff] %v3138_v60  ;;  %v2019_v60 = vpop.f32.mrf.mxu1  ;;  %v2952_v44 = vadd.f32 %v6258_v4, %v2782_v48 }
 0x33e   : > { %3666 = vst [vmem:[#allocation1 + $0x6] ss:$9 sm:$0xff] %v3139_v40  ;;  %4874 = vmatmul.msk.f32.gmra.mxu3 %vm1270_vm0, %v4682_v61  ;;  %v1618_v40 = vpop.f32.mrf.mxu0  ;;  %v6427_v45 = vpop.f32.mrf.mxu2 }
 0x33f   : > { %3667 = vst [vmem:[#allocation1 + $0x7] ss:$9 sm:$0xff] %v3140_v30  ;;  %v2020_v30 = vadd.f32 %v2019_v60, %v1618_v40  ;;  %v3157_v23 = vperm.slane %v2952_v44, 0  ;;  %v3158_v24 = vperm.slane %v2952_v44, 1  ;;  %v3159_v52 = vperm.slane %v2952_v44, 2 }
 0x340   : > { %v3160_v37 = vperm.slane %v2952_v44, 3  ;;  %v3163_v13 = vperm.slane %v2952_v44, 6 }
 0x341   : > { %v2123_v61 = vadd.f32 %v6274_v43, %v2020_v30 }
 0x343   : > { %v2187_v20 = vmax.f32 %v2123_v61, 0.0 }
 0x345   : > { %4923 = vmatmul.msk.f32.gmra.mxu2 %vm2213_vm12, %v2187_v20 }
 0x346   : > { %v6404_v22 = vld [vmem:[#allocation1] sm:$0xff]  ;;  %4875 = vmatmul.msk.f32.gmra.mxu3 %vm1270_vm0, %v4683_v12  ;;  %v3161_v12 = vperm.slane %v2952_v44, 4  ;;  %v6438_v51 = vpop.f32.mrf.mxu2 }
 0x347   : > { %3669 = vst [vmem:[#allocation1] ss:$9 sm:$0xff] %v3141_v56  ;;  %v3162_v56 = vperm.slane %v2952_v44, 5 }
 0x348   : > { %3670 = vst [vmem:[#allocation1 + $0x1] ss:$9 sm:$0xff] %v3142_v10  ;;  %v6430_v10 = vpop.f32.mrf.mxu3 }
 0x349   : > { %3671 = vst [vmem:[#allocation1 + $0x2] ss:$9 sm:$0xff] %v3143_v1  ;;  %v3164_v1 = vperm.slane %v2952_v44, 7 }
 0x34a   : > { %3672 = vst [vmem:[#allocation1 + $0x3] ss:$9 sm:$0xff] %v3144_v29  ;;  %v2785_v29 = vpop.xlane.xlu1 %2784 }
 0x34b   : > { %3673 = vst [vmem:[#allocation1 + $0x4] ss:$9 sm:$0xff] %v3145_v62  ;;  %v2022_v62 = vpop.f32.mrf.mxu1  ;;  %v2953_v42 = vadd.f32 %v6258_v4, %v2785_v29 }
 0x34c   : > { %3674 = vst [vmem:[#allocation1 + $0x5] ss:$9 sm:$0xff] %v3146_v39  ;;  %v1621_v39 = vpop.f32.mrf.mxu0 }
 0x34d   : > { %3675 = vst [vmem:[#allocation1 + $0x6] ss:$9 sm:$0xff] %v3147_v63  ;;  %v2023_v63 = vadd.f32 %v2022_v62, %v1621_v39  ;;  %v3166_v21 = vperm.slane %v2953_v42, 1  ;;  %v3167_v0 = vperm.slane %v2953_v42, 2  ;;  %v3170_v46 = vperm.slane %v2953_v42, 5 }
 0x34e   : > { %3676 = vst [vmem:[#allocation1 + $0x7] ss:$9 sm:$0xff] %v3148_v26  ;;  %4876 = vmatmul.msk.f32.gmra.mxu3 %vm1270_vm0, %v4684_v59  ;;  %v3165_v59 = vperm.slane %v2953_v42, 0  ;;  %vm4359_vm0 = vcmask 130112  }
 0x34f   : > { %v2124_v26 = vadd.f32 %v6274_v43, %v2023_v63 }
 0x350   : > { %v6434_v19 = vpop.f32.mrf.mxu3 }
 0x351   : > { %v2188_v3 = vmax.f32 %v2124_v26, 0.0 }
 0x353   : > { %4924 = vmatmul.msk.f32.gmra.mxu2 %vm2213_vm12, %v2188_v3 }
 0x355   : > { %v6418_v53 = vld [vmem:[#allocation1] sm:$0xff] }
 0x356   : > { %3678 = vst [vmem:[#allocation1] ss:$9 sm:$0xff] %v3149_v2  ;;  %v3168_v2 = vperm.slane %v2953_v42, 3 }
 0x357   : > { %3679 = vst [vmem:[#allocation1 + $0x1] ss:$9 sm:$0xff] %v3150_v5  ;;  %v3169_v5 = vperm.slane %v2953_v42, 4 }
 0x358   : > { %3680 = vst [vmem:[#allocation1 + $0x2] ss:$9 sm:$0xff] %v3151_v32  ;;  %v3171_v32 = vperm.slane %v2953_v42, 6 }
 0x359   : > { %3681 = vst [vmem:[#allocation1 + $0x3] ss:$9 sm:$0xff] %v3152_v31  ;;  %v3172_v31 = vperm.slane %v2953_v42, 7 }
 0x35a   : > { %3682 = vst [vmem:[#allocation1 + $0x4] ss:$9 sm:$0xff] %v3153_v18  ;;  %v2788_v18 = vpop.xlane.xlu0 %2787 }
 0x35b   : > { %3683 = vst [vmem:[#allocation1 + $0x5] ss:$9 sm:$0xff] %v3154_v57  ;;  %v6441_v57 = vpop.f32.mrf.mxu3 }
 0x35c   : > { %3684 = vst [vmem:[#allocation1 + $0x6] ss:$9 sm:$0xff] %v3155_v49  ;;  %v2954_v49 = vadd.f32 %v6258_v4, %v2788_v18 }
 0x35d   : > { %3685 = vst [vmem:[#allocation1 + $0x7] ss:$9 sm:$0xff] %v3156_v27 }
 0x35e   : > { %v3173_v27 = vperm.slane %v2954_v49, 0  ;;  %v3174_v60 = vperm.slane %v2954_v49, 1  ;;  %v3175_v44 = vperm.slane %v2954_v49, 2  ;;  %v3176_v40 = vperm.slane %v2954_v49, 3 }
 0x35f   : > { %v3177_v30 = vperm.slane %v2954_v49, 4  ;;  %v3178_v61 = vperm.slane %v2954_v49, 5  ;;  %v3180_v20 = vperm.slane %v2954_v49, 7 }
 0x364   : > { %v6425_v47 = vld [vmem:[#allocation1] sm:$0xff] }
 0x365   : > { %3687 = vst [vmem:[#allocation1] ss:$9 sm:$0xff] %v3157_v23  ;;  %v6446_v23 = vpop.f32.mrf.mxu3 }
 0x366   : > { %3688 = vst [vmem:[#allocation1 + $0x1] ss:$9 sm:$0xff] %v3158_v24  ;;  %v3179_v24 = vperm.slane %v2954_v49, 6 }
 0x367   : > { %3689 = vst [vmem:[#allocation1 + $0x2] ss:$9 sm:$0xff] %v3159_v52  ;;  %v2791_v52 = vpop.xlane.xlu1 %2790 }
 0x368   : > { %3690 = vst [vmem:[#allocation1 + $0x3] ss:$9 sm:$0xff] %v3160_v37  ;;  %v2955_v37 = vadd.f32 %v6258_v4, %v2791_v52 }
 0x369   : > { %3691 = vst [vmem:[#allocation1 + $0x4] ss:$9 sm:$0xff] %v3161_v12 }
 0x36a   : > { %3692 = vst [vmem:[#allocation1 + $0x5] ss:$9 sm:$0xff] %v3162_v56  ;;  %v3181_v12 = vperm.slane %v2955_v37, 0  ;;  %v3183_v29 = vperm.slane %v2955_v37, 2  ;;  %v3184_v62 = vperm.slane %v2955_v37, 3  ;;  %v3185_v42 = vperm.slane %v2955_v37, 4 }
 0x36b   : > { %3693 = vst [vmem:[#allocation1 + $0x6] ss:$9 sm:$0xff] %v3163_v13  ;;  %v3186_v39 = vperm.slane %v2955_v37, 5  ;;  %v3187_v63 = vperm.slane %v2955_v37, 6  ;;  %v3188_v26 = vperm.slane %v2955_v37, 7 }
 0x36c   : > { %3694 = vst [vmem:[#allocation1 + $0x7] ss:$9 sm:$0xff] %v3164_v1  ;;  %v3182_v1 = vperm.slane %v2955_v37, 1 }
 0x36d   : > { %v6449_v56 = vpop.f32.mrf.mxu3 }
 0x373   : > { %v6436_v8 = vld [vmem:[#allocation1] sm:$0xff] }
 0x374   : > { %3696 = vst [vmem:[#allocation1] ss:$9 sm:$0xff] %v3165_v59  ;;  %v2794_v59 = vpop.xlane.xlu0 %2793 }
 0x375   : > { %3697 = vst [vmem:[#allocation1 + $0x1] ss:$9 sm:$0xff] %v3166_v21  ;;  %v6453_v21 = vpop.f32.mrf.mxu3  ;;  %v2956_v3 = vadd.f32 %v6258_v4, %v2794_v59 }
 0x376   : > { %3698 = vst [vmem:[#allocation1 + $0x2] ss:$9 sm:$0xff] %v3167_v0 }
 0x377   : > { %3699 = vst [vmem:[#allocation1 + $0x3] ss:$9 sm:$0xff] %v3168_v2  ;;  %v3189_v0 = vperm.slane %v2956_v3, 0  ;;  %v3194_v18 = vperm.slane %v2956_v3, 5 }
 0x378   : > { %3700 = vst [vmem:[#allocation1 + $0x4] ss:$9 sm:$0xff] %v3169_v5  ;;  %v3190_v5 = vperm.slane %v2956_v3, 1 }
 0x379   : > { %3701 = vst [vmem:[#allocation1 + $0x5] ss:$9 sm:$0xff] %v3170_v46  ;;  %v3191_v46 = vperm.slane %v2956_v3, 2 }
 0x37a   : > { %3702 = vst [vmem:[#allocation1 + $0x6] ss:$9 sm:$0xff] %v3171_v32  ;;  %v3192_v32 = vperm.slane %v2956_v3, 3 }
 0x37b   : > { %3703 = vst [vmem:[#allocation1 + $0x7] ss:$9 sm:$0xff] %v3172_v31  ;;  %v3193_v31 = vperm.slane %v2956_v3, 4 }
 0x37d   : > { %v6458_v49 = vpop.f32.mrf.mxu3 }
 0x382   : > { %v6444_v48 = vld [vmem:[#allocation1] sm:$0xff] }
 0x383   : > { %3705 = vst [vmem:[#allocation1] ss:$9 sm:$0xff] %v3173_v27  ;;  %v3195_v27 = vperm.slane %v2956_v3, 6 }
 0x384   : > { %3706 = vst [vmem:[#allocation1 + $0x1] ss:$9 sm:$0xff] %v3174_v60  ;;  %v3196_v60 = vperm.slane %v2956_v3, 7 }
 0x385   : > { %3707 = vst [vmem:[#allocation1 + $0x2] ss:$9 sm:$0xff] %v3175_v44  ;;  %v2797_v44 = vpop.xlane.xlu1 %2796 }
 0x386   : > { %3708 = vst [vmem:[#allocation1 + $0x3] ss:$9 sm:$0xff] %v3176_v40  ;;  %v2957_v40 = vadd.f32 %v6258_v4, %v2797_v44 }
 0x387   : > { %3709 = vst [vmem:[#allocation1 + $0x4] ss:$9 sm:$0xff] %v3177_v30  ;;  %v6461_v30 = vpop.f32.mrf.mxu3 }
 0x388   : > { %3710 = vst [vmem:[#allocation1 + $0x5] ss:$9 sm:$0xff] %v3178_v61  ;;  %v3197_v61 = vperm.slane %v2957_v40, 0  ;;  %v3199_v52 = vperm.slane %v2957_v40, 2  ;;  %v3200_v37 = vperm.slane %v2957_v40, 3 }
 0x389   : > { %3711 = vst [vmem:[#allocation1 + $0x6] ss:$9 sm:$0xff] %v3179_v24 }
 0x38a   : > { %3712 = vst [vmem:[#allocation1 + $0x7] ss:$9 sm:$0xff] %v3180_v20  ;;  %v3198_v20 = vperm.slane %v2957_v40, 1 }
 0x391   : > { %v6451_v13 = vld [vmem:[#allocation1] sm:$0xff] }
 0x392   : > { %3714 = vst [vmem:[#allocation1] ss:$9 sm:$0xff] %v3181_v12  ;;  %v3201_v12 = vperm.slane %v2957_v40, 4 }
 0x393   : > { %3715 = vst [vmem:[#allocation1 + $0x1] ss:$9 sm:$0xff] %v3182_v1  ;;  %v3202_v1 = vperm.slane %v2957_v40, 5 }
 0x394   : > { %3716 = vst [vmem:[#allocation1 + $0x2] ss:$9 sm:$0xff] %v3183_v29  ;;  %v3203_v29 = vperm.slane %v2957_v40, 6 }
 0x395   : > { %3717 = vst [vmem:[#allocation1 + $0x3] ss:$9 sm:$0xff] %v3184_v62  ;;  %v3204_v62 = vperm.slane %v2957_v40, 7 }
 0x396   : > { %3718 = vst [vmem:[#allocation1 + $0x4] ss:$9 sm:$0xff] %v3185_v42  ;;  %v2025_v42 = vpop.f32.mrf.mxu3 }
 0x397   : > { %3719 = vst [vmem:[#allocation1 + $0x5] ss:$9 sm:$0xff] %v3186_v39  ;;  %v2800_v39 = vpop.xlane.xlu0 %2799 }
 0x398   : > { %3720 = vst [vmem:[#allocation1 + $0x6] ss:$9 sm:$0xff] %v3187_v63  ;;  %v2026_v63 = vadd.f32 %v2025_v42, %v6336_v6  ;;  %v2958_v59 = vadd.f32 %v6258_v4, %v2800_v39 }
 0x399   : > { %3721 = vst [vmem:[#allocation1 + $0x7] ss:$9 sm:$0xff] %v3188_v26 }
 0x39a   : > { %v2125_v26 = vadd.f32 %v6274_v43, %v2026_v63  ;;  %v3208_v6 = vperm.slane %v2958_v59, 3  ;;  %v3209_v44 = vperm.slane %v2958_v59, 4  ;;  %v3210_v40 = vperm.slane %v2958_v59, 5 }
 0x39c   : > { %v2189_v3 = vmax.f32 %v2125_v26, 0.0 }
 0x3a0   : > { %v6456_v2 = vld [vmem:[#allocation1] sm:$0xff] }
 0x3a1   : > { %3723 = vst [vmem:[#allocation1] ss:$9 sm:$0xff] %v3189_v0  ;;  %v6468_v0 = vpop.f32.mrf.mxu2  ;;  %4925 = vmatmul.msk.f32.gmra.mxu2 %vm2213_vm12, %v2189_v3 }
 0x3a2   : > { %3724 = vst [vmem:[#allocation1 + $0x1] ss:$9 sm:$0xff] %v3190_v5  ;;  %v3205_v5 = vperm.slane %v2958_v59, 0 }
 0x3a3   : > { %3725 = vst [vmem:[#allocation1 + $0x2] ss:$9 sm:$0xff] %v3191_v46  ;;  %v2028_v46 = vpop.f32.mrf.mxu3 }
 0x3a4   : > { %3726 = vst [vmem:[#allocation1 + $0x3] ss:$9 sm:$0xff] %v3192_v32 }
 0x3a5   : > { %3727 = vst [vmem:[#allocation1 + $0x4] ss:$9 sm:$0xff] %v3193_v31  ;;  %v3206_v31 = vperm.slane %v2958_v59, 1 }
 0x3a6   : > { %3728 = vst [vmem:[#allocation1 + $0x5] ss:$9 sm:$0xff] %v3194_v18  ;;  %v2029_v18 = vadd.f32 %v2028_v46, %v6347_v38 }
 0x3a7   : > { %3729 = vst [vmem:[#allocation1 + $0x6] ss:$9 sm:$0xff] %v3195_v27  ;;  %v3207_v27 = vperm.slane %v2958_v59, 2 }
 0x3a8   : > { %3730 = vst [vmem:[#allocation1 + $0x7] ss:$9 sm:$0xff] %v3196_v60  ;;  %v2126_v60 = vadd.f32 %v6274_v43, %v2029_v18 }
 0x3ab   : > { %v2031_v38 = vpop.f32.mrf.mxu3 }
 0x3af   : > { %v6463_v24 = vld [vmem:[#allocation1] sm:$0xff] }
 0x3b0   : > { %3732 = vst [vmem:[#allocation1] ss:$9 sm:$0xff] %v3197_v61  ;;  %v2190_v61 = vmax.f32 %v2126_v60, 0.0 }
 0x3b1   : > { %3733 = vst [vmem:[#allocation1 + $0x1] ss:$9 sm:$0xff] %v3198_v20  ;;  %v3211_v20 = vperm.slane %v2958_v59, 6 }
 0x3b2   : > { %3734 = vst [vmem:[#allocation1 + $0x2] ss:$9 sm:$0xff] %v3199_v52  ;;  %v3212_v52 = vperm.slane %v2958_v59, 7  ;;  %4926 = vmatmul.msk.f32.vlgmr.msra.gmra.mxu3 %vm2213_vm12, %v2190_v61 }
 0x3b3   : > { %3735 = vst [vmem:[#allocation1 + $0x3] ss:$9 sm:$0xff] %v3200_v37  ;;  %v2803_v37 = vpop.xlane.xlu1 %2802  ;;  %v2034_v26 = vpop.f32.mrf.mxu3 }
 0x3b4   : > { %3736 = vst [vmem:[#allocation1 + $0x4] ss:$9 sm:$0xff] %v3201_v12  ;;  %v2032_v12 = vadd.f32 %v2031_v38, %v6358_v28  ;;  %v2035_v3 = vadd.f32 %v2034_v26, %v6367_v35 }
 0x3b5   : > { %3737 = vst [vmem:[#allocation1 + $0x5] ss:$9 sm:$0xff] %v3202_v1  ;;  %v2959_v1 = vadd.f32 %v6258_v4, %v2803_v37 }
 0x3b6   : > { %3738 = vst [vmem:[#allocation1 + $0x6] ss:$9 sm:$0xff] %v3203_v29  ;;  %v2127_v29 = vadd.f32 %v6274_v43, %v2032_v12  ;;  %v6486_v43 = vld [vmem:[%s7149_s4] ss:$0 sm:$0xff] }
 0x3b7   : > { %3739 = vst [vmem:[#allocation1 + $0x7] ss:$9 sm:$0xff] %v3204_v62  ;;  %v3213_v42 = vperm.slane %v2959_v1, 0  ;;  %v3214_v63 = vperm.slane %v2959_v1, 1  ;;  %v3215_v59 = vperm.slane %v2959_v1, 2  ;;  %v3217_v46 = vperm.slane %v2959_v1, 4 }
 0x3b8   : > { %v2191_v62 = vmax.f32 %v2127_v29, 0.0  ;;  %v2128_v28 = vadd.f32 %v6486_v43, %v2035_v3  ;;  %v3219_v18 = vperm.slane %v2959_v1, 6 }
 0x3ba   : > { %4927 = vmatmul.msk.f32.gmra.mxu3 %vm2213_vm12, %v2191_v62 }
 0x3bb   : > { %v2037_v35 = vpop.f32.mrf.mxu3 }
 0x3bc   : > { %v2038_v60 = vadd.f32 %v2037_v35, %v6378_v17 }
 0x3be   : > { %v6471_v32 = vld [vmem:[#allocation1] sm:$0xff] }
 0x3bf   : > { %3741 = vst [vmem:[#allocation1] ss:$9 sm:$0xff] %v3205_v5  ;;  %v3216_v5 = vperm.slane %v2959_v1, 3 }
 0x3c0   : > { %3742 = vst [vmem:[#allocation1 + $0x1] ss:$9 sm:$0xff] %v3206_v31  ;;  %v3218_v31 = vperm.slane %v2959_v1, 5 }
 0x3c1   : > { %3743 = vst [vmem:[#allocation1 + $0x2] ss:$9 sm:$0xff] %v3207_v27  ;;  %v2192_v27 = vmax.f32 %v2128_v28, 0.0 }
 0x3c2   : > { %3744 = vst [vmem:[#allocation1 + $0x3] ss:$9 sm:$0xff] %v3208_v6  ;;  %v3220_v6 = vperm.slane %v2959_v1, 7 }
 0x3c3   : > { %3745 = vst [vmem:[#allocation1 + $0x4] ss:$9 sm:$0xff] %v3209_v44  ;;  %4928 = vmatmul.msk.f32.gmra.mxu3 %vm2213_vm12, %v2192_v27  ;;  %v2129_v44 = vadd.f32 %v6486_v43, %v2038_v60  ;;  %v2040_v61 = vpop.f32.mrf.mxu3 }
 0x3c4   : > { %3746 = vst [vmem:[#allocation1 + $0x5] ss:$9 sm:$0xff] %v3210_v40 }
 0x3c5   : > { %3747 = vst [vmem:[#allocation1 + $0x6] ss:$9 sm:$0xff] %v3211_v20  ;;  %v2193_v40 = vmax.f32 %v2129_v44, 0.0  ;;  %v2041_v20 = vadd.f32 %v2040_v61, %v6393_v9 }
 0x3c6   : > { %3748 = vst [vmem:[#allocation1 + $0x7] ss:$9 sm:$0xff] %v3212_v52 }
 0x3c7   : > { %v2130_v52 = vadd.f32 %v6486_v43, %v2041_v20 }
 0x3c9   : > { %v2194_v37 = vmax.f32 %v2130_v52, 0.0 }
 0x3cb   : > { %4929 = vmatmul.msk.f32.gmra.mxu3 %vm2213_vm12, %v2193_v40  ;;  %v2043_v38 = vpop.f32.mrf.mxu3 }
 0x3cc   : > { %v2044_v12 = vadd.f32 %v2043_v38, %v6400_v55 }
 0x3cd   : > { %v6480_v39 = vld [vmem:[#allocation1] sm:$0xff] }
 0x3ce   : > { %3750 = vst [vmem:[#allocation1] ss:$9 sm:$0xff] %v3213_v42  ;;  %v2131_v1 = vadd.f32 %v6486_v43, %v2044_v12 }
 0x3cf   : > { %3751 = vst [vmem:[#allocation1 + $0x1] ss:$9 sm:$0xff] %v3214_v63 }
 0x3d0   : > { %3752 = vst [vmem:[#allocation1 + $0x2] ss:$9 sm:$0xff] %v3215_v59  ;;  %v2195_v29 = vmax.f32 %v2131_v1, 0.0 }
 0x3d1   : > { %3753 = vst [vmem:[#allocation1 + $0x3] ss:$9 sm:$0xff] %v3216_v5 }
 0x3d2   : > { %3754 = vst [vmem:[#allocation1 + $0x4] ss:$9 sm:$0xff] %v3217_v46 }
 0x3d3   : > { %3755 = vst [vmem:[#allocation1 + $0x5] ss:$9 sm:$0xff] %v3218_v31  ;;  %4930 = vmatmul.msk.f32.gmra.mxu3 %vm2213_vm12, %v2194_v37  ;;  %v2046_v17 = vpop.f32.mrf.mxu3 }
 0x3d4   : > { %3756 = vst [vmem:[#allocation1 + $0x6] ss:$9 sm:$0xff] %v3219_v18  ;;  %v2047_v62 = vadd.f32 %v2046_v17, %v6413_v34 }
 0x3d5   : > { %3757 = vst [vmem:[#allocation1 + $0x7] ss:$9 sm:$0xff] %v3220_v6 }
 0x3d6   : > { %v2132_v42 = vadd.f32 %v6486_v43, %v2047_v62 }
 0x3d8   : > { %v2196_v63 = vmax.f32 %v2132_v42, 0.0  ;;  %v6529_v42 = vld [vmem:[%s7151_s6] ss:$0 sm:$0xff] }
 0x3db   : > { %4931 = vmatmul.msk.f32.gmra.mxu3 %vm2213_vm12, %v2195_v29  ;;  %v2049_v9 = vpop.f32.mrf.mxu3 }
 0x3dc   : > { %v2050_v26 = vadd.f32 %v2049_v9, %v6430_v10  ;;  %v6534_v9 = vpop.f32.mrf.mxu2 }
 0x3de   : > { %v2133_v59 = vadd.f32 %v6486_v43, %v2050_v26 }
 0x3e0   : > { %v2197_v3 = vmax.f32 %v2133_v59, 0.0 }
 0x3e3   : > { %4932 = vmatmul.msk.f32.gmra.mxu3 %vm2213_vm12, %v2196_v63  ;;  %v2052_v55 = vpop.f32.mrf.mxu3  ;;  %v2481_v63 = vadd.f32 %v6529_v42, %v6388_v16  ;;  %v2484_v16 = vadd.f32 %v6529_v42, %v6407_v41  ;;  %v2487_v41 = vadd.f32 %v6529_v42, %v6420_v25  ;;  %v2490_v25 = vadd.f32 %v6529_v42, %v6427_v45 }
 0x3e4   : > { %v2053_v5 = vadd.f32 %v2052_v55, %v6434_v19 }
 0x3e5   : > { %v2634_v59 = vmax.f32 %v2481_v63, 0.0 }
 0x3e6   : > { %v2134_v46 = vadd.f32 %v6486_v43, %v2053_v5 }
 0x3e8   : > { %v2198_v28 = vmax.f32 %v2134_v46, 0.0 }
 0x3eb   : > { %4933 = vmatmul.msk.f32.gmra.mxu3 %vm2213_vm12, %v2197_v3  ;;  %v2055_v34 = vpop.f32.mrf.mxu3 }
 0x3ec   : > { %v2056_v31 = vadd.f32 %v2055_v34, %v6441_v57  ;;  %v6547_v34 = vpop.f32.mrf.mxu2 }
 0x3ee   : > { %v2135_v18 = vadd.f32 %v6486_v43, %v2056_v31 }
 0x3f0   : > { %v2199_v27 = vmax.f32 %v2135_v18, 0.0  ;;  %v2635_v18 = vmax.f32 %v2484_v16, 0.0  ;;  %v2496_v16 = vadd.f32 %v6529_v42, %v6468_v0 }
 0x3f3   : > { %4934 = vmatmul.msk.f32.gmra.mxu3 %vm2213_vm12, %v2198_v28  ;;  %v2058_v10 = vpop.f32.mrf.mxu3 }
 0x3f4   : > { %v2059_v6 = vadd.f32 %v2058_v10, %v6446_v23 }
 0x3f6   : > { %v2136_v35 = vadd.f32 %v6486_v43, %v2059_v6 }
 0x3f8   : > { %v2200_v60 = vmax.f32 %v2136_v35, 0.0 }
 0x3fb   : > { %4935 = vmatmul.msk.f32.gmra.mxu3 %vm2213_vm12, %v2199_v27  ;;  %v2061_v19 = vpop.f32.mrf.mxu3 }
 0x3fc   : > { %v2062_v44 = vadd.f32 %v2061_v19, %v6449_v56 }
 0x3fe   : > { %v2137_v40 = vadd.f32 %v6486_v43, %v2062_v44 }
 0x400   : > { %v2201_v61 = vmax.f32 %v2137_v40, 0.0  ;;  %v2636_v40 = vmax.f32 %v2487_v41, 0.0  ;;  %v2499_v41 = vadd.f32 %v6529_v42, %v6534_v9  ;;  %v2502_v9 = vadd.f32 %v6529_v42, %v6547_v34 }
 0x403   : > { %4936 = vmatmul.msk.f32.gmra.mxu3 %vm2213_vm12, %v2200_v60  ;;  %v2064_v57 = vpop.f32.mrf.mxu3 }
 0x404   : > { %v2065_v20 = vadd.f32 %v2064_v57, %v6453_v21 }
 0x406   : > { %v2138_v52 = vadd.f32 %v6486_v43, %v2065_v20 }
 0x408   : > { %v2202_v37 = vmax.f32 %v2138_v52, 0.0 }
 0x40b   : > { %4937 = vmatmul.msk.f32.gmra.mxu3 %vm2213_vm12, %v2201_v61  ;;  %v2067_v23 = vpop.f32.mrf.mxu3  ;;  %v6557_v61 = vpop.f32.mrf.mxu2 }
 0x40c   : > { %v2068_v38 = vadd.f32 %v2067_v23, %v6458_v49 }
 0x40e   : > { %v2139_v12 = vadd.f32 %v6486_v43, %v2068_v38 }
 0x410   : > { %v2203_v1 = vmax.f32 %v2139_v12, 0.0 }
 0x413   : > { %4938 = vmatmul.msk.f32.gmra.mxu3 %vm2213_vm12, %v2202_v37  ;;  %v2070_v56 = vpop.f32.mrf.mxu3 }
 0x414   : > { %v2071_v29 = vadd.f32 %v2070_v56, %v6461_v30  ;;  %v6539_v30 = vld [vmem:[%s7152_s7] ss:$0 sm:$0xff] }
 0x415   : > { %v2702_v28 = vmul.f32 %v6539_v30, %v2634_v59  ;;  %v2703_v19 = vmul.f32 %v6539_v30, %v2635_v18  ;;  %v2704_v38 = vmul.f32 %v6539_v30, %v2636_v40  ;;  %v2639_v18 = vmax.f32 %v2496_v16, 0.0 }
 0x416   : > { %v2140_v17 = vadd.f32 %v6486_v43, %v2071_v29  ;;  %v2640_v40 = vmax.f32 %v2499_v41, 0.0 }
 0x417   : > { %v2804_v10 = vsel %vm2213_vm12, %v2702_v28, 0.0  ;;  %v2807_v20 = vsel %vm2213_vm12, %v2703_v19, 0.0  ;;  %v2810_v56 = vsel %vm2213_vm12, %v2704_v38, 0.0 }
 0x418   : > { %v2204_v62 = vmax.f32 %v2140_v17, 0.0 }
 0x41b   : > { %4939 = vmatmul.msk.f32.gmra.mxu3 %vm2213_vm12, %v2203_v1  ;;  %v2637_v1 = vmax.f32 %v2490_v25, 0.0  ;;  %v2708_v25 = vmul.f32 %v6539_v30, %v2640_v40 }
 0x41d   : > { %v2705_v63 = vmul.f32 %v6539_v30, %v2637_v1 }
 0x423   : > { %4940 = vmatmul.msk.f32.gmra.mxu3 %vm2213_vm12, %v2204_v62  ;;  %v2507_v62 = vpop.f32.mrf.mxu2 }
 0x435   : > { %v2570_v21 = vpop.f32.mrf.mxu3 }
 0x436   : > { %v2571_v49 = vadd.f32 %v6529_v42, %v2570_v21 }
 0x438   : > { %v2664_v26 = vmax.f32 %v2571_v49, 0.0  ;;  %v2493_v49 = vadd.f32 %v6529_v42, %v6438_v51 }
 0x43a   : > { %v2732_v43 = vmul.f32 %v6539_v30, %v2664_v26 }
 0x43c   : > { %v2894_v3 = vsel %vm2213_vm12, %v2732_v43, 0.0  ;;  %v2638_v43 = vmax.f32 %v2493_v49, 0.0 }
 0x43d   : > { %v2573_v55 = vpop.f32.mrf.mxu3  ;;  %2895 = vadd.xlane.f32.xlu0 %v2894_v3  ;;  %v2813_v3 = vsel %vm2213_vm12, %v2705_v63, 0.0 }
 0x43e   : > { %v2574_v5 = vadd.f32 %v6529_v42, %v2573_v55  ;;  %v2706_v28 = vmul.f32 %v6539_v30, %v2638_v43 }
 0x440   : > { %v2665_v46 = vmax.f32 %v2574_v5, 0.0 }
 0x442   : > { %v2733_v31 = vmul.f32 %v6539_v30, %v2665_v46  ;;  %v2510_v46 = vpop.f32.mrf.mxu2 }
 0x443   : > { %v2511_v41 = vadd.f32 %v6529_v42, %v2510_v46 }
 0x444   : > { %v2897_v27 = vsel %vm2213_vm12, %v2733_v31, 0.0 }
 0x445   : > { %2898 = vadd.xlane.f32.xlu1 %v2897_v27  ;;  %2805 = vadd.xlane.f32.xlu0 %v2804_v10  ;;  %v2816_v10 = vsel %vm2213_vm12, %v2706_v28, 0.0 }
 0x446   : > { %v2576_v6 = vpop.f32.mrf.mxu3 }
 0x447   : > { %v2577_v35 = vadd.f32 %v6529_v42, %v2576_v6 }
 0x449   : > { %v2666_v60 = vmax.f32 %v2577_v35, 0.0 }
 0x44a   : > { %v2513_v19 = vpop.f32.mrf.mxu2 }
 0x44b   : > { %v2734_v44 = vmul.f32 %v6539_v30, %v2666_v60  ;;  %v2707_v60 = vmul.f32 %v6539_v30, %v2639_v18 }
 0x44d   : > { %v2900_v57 = vsel %vm2213_vm12, %v2734_v44, 0.0  ;;  %2808 = vadd.xlane.f32.xlu1 %v2807_v20 }
 0x44e   : > { %v2579_v52 = vpop.f32.mrf.mxu3  ;;  %2901 = vadd.xlane.f32.xlu2 %v2900_v57  ;;  %v2819_v57 = vsel %vm2213_vm12, %v2707_v60, 0.0 }
 0x44f   : > { %v2580_v37 = vadd.f32 %v6529_v42, %v2579_v52 }
 0x451   : > { %v2667_v23 = vmax.f32 %v2580_v37, 0.0 }
 0x452   : > { %v2516_v1 = vpop.f32.mrf.mxu2 }
 0x453   : > { %v2735_v12 = vmul.f32 %v6539_v30, %v2667_v23 }
 0x455   : > { %v2903_v29 = vsel %vm2213_vm12, %v2735_v12, 0.0  ;;  %v2641_v12 = vmax.f32 %v2502_v9, 0.0 }
 0x456   : > { %v2582_v17 = vpop.f32.mrf.mxu3  ;;  %2811 = vadd.xlane.f32.xlu2 %v2810_v56  ;;  %2904 = vadd.xlane.f32.xlu0 %v2903_v29  ;;  %v2822_v29 = vsel %vm2213_vm12, %v2708_v25, 0.0  ;;  %v2514_v25 = vadd.f32 %v6529_v42, %v2513_v19 }
 0x457   : > { %v2583_v21 = vadd.f32 %v6529_v42, %v2582_v17  ;;  %v2709_v49 = vmul.f32 %v6539_v30, %v2641_v12 }
 0x459   : > { %v2668_v45 = vmax.f32 %v2583_v21, 0.0 }
 0x45b   : > { %v2736_v26 = vmul.f32 %v6539_v30, %v2668_v45  ;;  %v2505_v45 = vadd.f32 %v6529_v42, %v6557_v61 }
 0x45d   : > { %v2906_v59 = vsel %vm2213_vm12, %v2736_v26, 0.0  ;;  %v2642_v26 = vmax.f32 %v2505_v45, 0.0 }
 0x45e   : > { %v2585_v55 = vpop.f32.mrf.mxu3  ;;  %2907 = vadd.xlane.f32.xlu1 %v2906_v59  ;;  %2814 = vadd.xlane.f32.xlu0 %v2813_v3  ;;  %v2825_v59 = vsel %vm2213_vm12, %v2709_v49, 0.0  ;;  %v2517_v49 = vadd.f32 %v6529_v42, %v2516_v1 }
 0x45f   : > { %v2586_v5 = vadd.f32 %v6529_v42, %v2585_v55  ;;  %v2519_v55 = vpop.f32.mrf.mxu2  ;;  %v2710_v16 = vmul.f32 %v6539_v30, %v2642_v26 }
 0x461   : > { %v2669_v51 = vmax.f32 %v2586_v5, 0.0  ;;  %v2828_v18 = vsel %vm2213_vm12, %v2710_v16, 0.0  ;;  %v2520_v16 = vadd.f32 %v6529_v42, %v2519_v55 }
 0x463   : > { %v2737_v31 = vmul.f32 %v6539_v30, %v2669_v51  ;;  %v2508_v51 = vadd.f32 %v6529_v42, %v2507_v62 }
 0x465   : > { %v2909_v27 = vsel %vm2213_vm12, %v2737_v31, 0.0  ;;  %v2643_v31 = vmax.f32 %v2508_v51, 0.0 }
 0x466   : > { %v2588_v6 = vpop.f32.mrf.mxu3  ;;  %2910 = vadd.xlane.f32.xlu2 %v2909_v27  ;;  %2817 = vadd.xlane.f32.xlu1 %v2816_v10 }
 0x467   : > { %v2589_v35 = vadd.f32 %v6529_v42, %v2588_v6 }
 0x469   : > { %v2670_v0 = vmax.f32 %v2589_v35, 0.0  ;;  %v2711_v35 = vmul.f32 %v6539_v30, %v2643_v31 }
 0x46b   : > { %v2738_v44 = vmul.f32 %v6539_v30, %v2670_v0  ;;  %v2522_v0 = vpop.f32.mrf.mxu2 }
 0x46d   : > { %v2912_v20 = vsel %vm2213_vm12, %v2738_v44, 0.0  ;;  %v2644_v44 = vmax.f32 %v2511_v41, 0.0  ;;  %v2523_v41 = vadd.f32 %v6529_v42, %v2522_v0 }
 0x46e   : > { %v2591_v52 = vpop.f32.mrf.mxu3  ;;  %2820 = vadd.xlane.f32.xlu2 %v2819_v57  ;;  %2913 = vadd.xlane.f32.xlu0 %v2912_v20  ;;  %v2831_v57 = vsel %vm2213_vm12, %v2711_v35, 0.0 }
 0x46f   : > { %v2592_v37 = vadd.f32 %v6529_v42, %v2591_v52 }
 0x471   : > { %v2671_v23 = vmax.f32 %v2592_v37, 0.0  ;;  %v2712_v37 = vmul.f32 %v6539_v30, %v2644_v44 }
 0x473   : > { %v2739_v38 = vmul.f32 %v6539_v30, %v2671_v23  ;;  %v2525_v46 = vpop.f32.mrf.mxu2 }
 0x474   : > { %v2526_v51 = vadd.f32 %v6529_v42, %v2525_v46 }
 0x475   : > { %v2915_v56 = vsel %vm2213_vm12, %v2739_v38, 0.0  ;;  %v2645_v38 = vmax.f32 %v2514_v25, 0.0 }
 0x476   : > { %v2594_v17 = vpop.f32.mrf.mxu3  ;;  %2916 = vadd.xlane.f32.xlu1 %v2915_v56  ;;  %2823 = vadd.xlane.f32.xlu0 %v2822_v29  ;;  %v2834_v56 = vsel %vm2213_vm12, %v2712_v37, 0.0 }
 0x477   : > { %v2595_v21 = vadd.f32 %v6529_v42, %v2594_v17 }
 0x479   : > { %v2672_v34 = vmax.f32 %v2595_v21, 0.0  ;;  %v2713_v21 = vmul.f32 %v6539_v30, %v2645_v38 }
 0x47b   : > { %v2740_v63 = vmul.f32 %v6539_v30, %v2672_v34  ;;  %v2646_v34 = vmax.f32 %v2517_v49, 0.0  ;;  %v2837_v26 = vsel %vm2213_vm12, %v2713_v21, 0.0  ;;  %v6657_v21 = vld [vmem:[#allocation1] sm:$0xff] }
 0x47d   : > { %v2918_v43 = vsel %vm2213_vm12, %v2740_v63, 0.0  ;;  %v6625_v63 = vpop.f32.mrf.mxu2 }
 0x47e   : > { %v2597_v3 = vpop.f32.mrf.mxu3  ;;  %2919 = vadd.xlane.f32.xlu2 %v2918_v43  ;;  %2826 = vadd.xlane.f32.xlu1 %v2825_v59 }
 0x47f   : > { %v2598_v5 = vadd.f32 %v6529_v42, %v2597_v3 }
 0x481   : > { %v2673_v28 = vmax.f32 %v2598_v5, 0.0  ;;  %v2714_v5 = vmul.f32 %v6539_v30, %v2646_v34 }
 0x483   : > { %v2741_v61 = vmul.f32 %v6539_v30, %v2673_v28 }
 0x485   : > { %v2921_v27 = vsel %vm2213_vm12, %v2741_v61, 0.0  ;;  %v2647_v61 = vmax.f32 %v2520_v16, 0.0 }
 0x486   : > { %v2600_v10 = vpop.f32.mrf.mxu3  ;;  %2829 = vadd.xlane.f32.xlu2 %v2828_v18  ;;  %2922 = vadd.xlane.f32.xlu0 %v2921_v27  ;;  %v2840_v18 = vsel %vm2213_vm12, %v2714_v5, 0.0  ;;  %v2649_v27 = vmax.f32 %v2526_v51, 0.0 }
 0x487   : > { %v2601_v6 = vadd.f32 %v6529_v42, %v2600_v10  ;;  %v2715_v55 = vmul.f32 %v6539_v30, %v2647_v61 }
 0x489   : > { %v2674_v60 = vmax.f32 %v2601_v6, 0.0  ;;  %v6636_v6 = vpop.f32.mrf.mxu2 }
 0x48b   : > { %v2742_v62 = vmul.f32 %v6539_v30, %v2674_v60 }
 0x48d   : > { %v2924_v40 = vsel %vm2213_vm12, %v2742_v62, 0.0  ;;  %v2717_v62 = vmul.f32 %v6539_v30, %v2649_v27 }
 0x48e   : > { %v2603_v20 = vpop.f32.mrf.mxu3  ;;  %2925 = vadd.xlane.f32.xlu1 %v2924_v40  ;;  %2832 = vadd.xlane.f32.xlu0 %v2831_v57  ;;  %v2648_v40 = vmax.f32 %v2523_v41, 0.0 }
 0x48f   : > { %v2604_v52 = vadd.f32 %v6529_v42, %v2603_v20  ;;  %v2843_v20 = vsel %vm2213_vm12, %v2715_v55, 0.0 }
 0x490   : > { %v2716_v37 = vmul.f32 %v6539_v30, %v2648_v40 }
 0x491   : > { %v2675_v9 = vmax.f32 %v2604_v52, 0.0  ;;  %v2849_v52 = vsel %vm2213_vm12, %v2717_v62, 0.0  ;;  %v6647_v25 = vpop.f32.mrf.mxu2 }
 0x493   : > { %v2743_v23 = vmul.f32 %v6539_v30, %v2675_v9  ;;  %v2846_v9 = vsel %vm2213_vm12, %v2716_v37, 0.0 }
 0x495   : > { %v2927_v12 = vsel %vm2213_vm12, %v2743_v23, 0.0 }
 0x496   : > { %v2606_v29 = vpop.f32.mrf.mxu3  ;;  %2928 = vadd.xlane.f32.xlu2 %v2927_v12  ;;  %2835 = vadd.xlane.f32.xlu1 %v2834_v56 }
 0x497   : > { %v2607_v17 = vadd.f32 %v6529_v42, %v2606_v29 }
 0x499   : > { %v2676_v45 = vmax.f32 %v2607_v17, 0.0  ;;  %v6655_v12 = vpop.f32.mrf.mxu2 }
 0x49b   : > { %v2744_v19 = vmul.f32 %v6539_v30, %v2676_v45 }
 0x49d   : > { %v2930_v43 = vsel %vm2213_vm12, %v2744_v19, 0.0 }
 0x49e   : > { %v2609_v59 = vpop.f32.mrf.mxu3  ;;  %2838 = vadd.xlane.f32.xlu2 %v2837_v26  ;;  %2931 = vadd.xlane.f32.xlu0 %v2930_v43 }
 0x49f   : > { %v2610_v3 = vadd.f32 %v6529_v42, %v2609_v59 }
 0x4a1   : > { %v2677_v1 = vmax.f32 %v2610_v3, 0.0  ;;  %v6660_v59 = vpop.f32.mrf.mxu2 }
 0x4a3   : > { %v2745_v28 = vmul.f32 %v6539_v30, %v2677_v1 }
 0x4a5   : > { %v2933_v31 = vsel %vm2213_vm12, %v2745_v28, 0.0 }
 0x4a6   : > { %v2612_v10 = vpop.f32.mrf.mxu3  ;;  %2934 = vadd.xlane.f32.xlu1 %v2933_v31  ;;  %2841 = vadd.xlane.f32.xlu0 %v2840_v18 }
 0x4a7   : > { %v2613_v35 = vadd.f32 %v6529_v42, %v2612_v10 }
 0x4a9   : > { %v2678_v60 = vmax.f32 %v2613_v35, 0.0 }
 0x4ab   : > { %v2746_v44 = vmul.f32 %v6539_v30, %v2678_v60 }
 0x4ad   : > { %v2936_v57 = vsel %vm2213_vm12, %v2746_v44, 0.0 }
 0x4ae   : > { %2937 = vadd.xlane.f32.xlu2 %v2936_v57  ;;  %2844 = vadd.xlane.f32.xlu1 %v2843_v20 }
 0x4af   : > { %2850 = vadd.xlane.f32.xlu0 %v2849_v52  ;;  %v2535_v52 = vadd.f32 %v6529_v42, %v6647_v25 }
 0x4b0   : > { %v6649_v0 = vpop.xlane.xlu0 %2895 }
 0x4b6   : > { %2847 = vadd.xlane.f32.xlu2 %v2846_v9 }
 0x4b8   : > { %v2806_v46 = vpop.xlane.xlu0 %2805  ;;  %v6652_v23 = vpop.xlane.xlu1 %2898 }
 0x4b9   : > { %v2960_v38 = vadd.f32 %v6258_v4, %v2806_v46 }
 0x4bb   : > { %v3221_v56 = vperm.slane %v2960_v38, 0  ;;  %v3222_v29 = vperm.slane %v2960_v38, 1  ;;  %v3223_v17 = vperm.slane %v2960_v38, 2  ;;  %v3224_v49 = vperm.slane %v2960_v38, 3 }
 0x4bc   : > { %v3225_v45 = vperm.slane %v2960_v38, 4  ;;  %v3226_v19 = vperm.slane %v2960_v38, 5  ;;  %v3227_v34 = vperm.slane %v2960_v38, 6  ;;  %v3228_v26 = vperm.slane %v2960_v38, 7 }
 0x4bd   : > { %3759 = vst [vmem:[#allocation1] ss:$9 sm:$0xff] %v3221_v56  ;;  %v2529_v56 = vadd.f32 %v6529_v42, %v6625_v63  ;;  %v2538_v63 = vadd.f32 %v6529_v42, %v6655_v12 }
 0x4be   : > { %3760 = vst [vmem:[#allocation1 + $0x1] ss:$9 sm:$0xff] %v3222_v29  ;;  %v2652_v29 = vmax.f32 %v2535_v52, 0.0 }
 0x4bf   : > { %3761 = vst [vmem:[#allocation1 + $0x2] ss:$9 sm:$0xff] %v3223_v17 }
 0x4c0   : > { %3762 = vst [vmem:[#allocation1 + $0x3] ss:$9 sm:$0xff] %v3224_v49  ;;  %v2809_v43 = vpop.xlane.xlu1 %2808  ;;  %v2720_v25 = vmul.f32 %v6539_v30, %v2652_v29 }
 0x4c1   : > { %3763 = vst [vmem:[#allocation1 + $0x4] ss:$9 sm:$0xff] %v3225_v45  ;;  %v2961_v3 = vadd.f32 %v6258_v4, %v2809_v43  ;;  %v6664_v5 = vpop.xlane.xlu2 %2901  ;;  %v2650_v45 = vmax.f32 %v2529_v56, 0.0 }
 0x4c2   : > { %3764 = vst [vmem:[#allocation1 + $0x5] ss:$9 sm:$0xff] %v3226_v19 }
 0x4c3   : > { %4165 = vperm.xlu0 %5006, %v6280_v7   ;;  %3765 = vst [vmem:[#allocation1 + $0x6] ss:$9 sm:$0xff] %v3227_v34  ;;  %v3229_v16 = vperm.slane %v2961_v3, 0  ;;  %v3230_v1 = vperm.slane %v2961_v3, 1  ;;  %v3231_v51 = vperm.slane %v2961_v3, 2  ;;  %v3232_v61 = vperm.slane %v2961_v3, 3  ;;  %v2543_v7 = vpop.f32.mrf.mxu2 }
 0x4c4   : > { %3766 = vst [vmem:[#allocation1 + $0x7] ss:$9 sm:$0xff] %v3228_v26  ;;  %v3233_v31 = vperm.slane %v2961_v3, 4  ;;  %v3234_v18 = vperm.slane %v2961_v3, 5  ;;  %v3235_v27 = vperm.slane %v2961_v3, 6  ;;  %v3236_v10 = vperm.slane %v2961_v3, 7 }
 0x4c5   : > { %v2544_v19 = vadd.f32 %v6529_v42, %v2543_v7  ;;  %v2532_v26 = vadd.f32 %v6529_v42, %v6636_v6  ;;  %v2653_v6 = vmax.f32 %v2538_v63, 0.0 }
 0x4c7   : > { %4168 = vperm.xlu1 %5007, %v6298_v36   ;;  %v2651_v7 = vmax.f32 %v2532_v26, 0.0 }
 0x4c9   : > { %v2812_v36 = vpop.xlane.xlu2 %2811  ;;  %v6670_v55 = vpop.xlane.xlu0 %2904 }
 0x4ca   : > { %v2962_v35 = vadd.f32 %v6258_v4, %v2812_v36 }
 0x4cb   : > { %v6666_v28 = vld [vmem:[#allocation1] sm:$0xff]  ;;  %v2546_v41 = vpop.f32.mrf.mxu2 }
 0x4cc   : > { %3768 = vst [vmem:[#allocation1] ss:$9 sm:$0xff] %v3229_v16  ;;  %v3238_v60 = vperm.slane %v2962_v35, 1  ;;  %v3239_v62 = vperm.slane %v2962_v35, 2  ;;  %v3240_v40 = vperm.slane %v2962_v35, 3  ;;  %v3241_v57 = vperm.slane %v2962_v35, 4 }
 0x4cd   : > { %3769 = vst [vmem:[#allocation1 + $0x1] ss:$9 sm:$0xff] %v3230_v1  ;;  %v3242_v20 = vperm.slane %v2962_v35, 5  ;;  %v3243_v37 = vperm.slane %v2962_v35, 6  ;;  %v3244_v9 = vperm.slane %v2962_v35, 7  ;;  %v2718_v16 = vmul.f32 %v6539_v30, %v2650_v45 }
 0x4ce   : > { %4171 = vperm.xlu2 %5008, %v6312_v11   ;;  %3770 = vst [vmem:[#allocation1 + $0x2] ss:$9 sm:$0xff] %v3231_v51  ;;  %v3237_v11 = vperm.slane %v2962_v35, 0  ;;  %v2655_v1 = vmax.f32 %v2544_v19, 0.0  ;;  %v2547_v52 = vadd.f32 %v6529_v42, %v2546_v41 }
 0x4cf   : > { %3771 = vst [vmem:[#allocation1 + $0x3] ss:$9 sm:$0xff] %v3232_v61 }
 0x4d0   : > { %3772 = vst [vmem:[#allocation1 + $0x4] ss:$9 sm:$0xff] %v3233_v31  ;;  %v2858_v31 = vsel %vm2213_vm12, %v2720_v25, 0.0  ;;  %v2723_v12 = vmul.f32 %v6539_v30, %v2655_v1 }
 0x4d1   : > { %3773 = vst [vmem:[#allocation1 + $0x5] ss:$9 sm:$0xff] %v3234_v18  ;;  %v2815_v46 = vpop.xlane.xlu0 %2814  ;;  %v6679_v49 = vpop.xlane.xlu1 %2907 }
 0x4d2   : > { %3774 = vst [vmem:[#allocation1 + $0x6] ss:$9 sm:$0xff] %v3235_v27  ;;  %v2963_v17 = vadd.f32 %v6258_v4, %v2815_v46  ;;  %v2867_v46 = vsel %vm2213_vm12, %v2723_v12, 0.0 }
 0x4d3   : > { %3775 = vst [vmem:[#allocation1 + $0x7] ss:$9 sm:$0xff] %v3236_v10  ;;  %v2549_v38 = vpop.f32.mrf.mxu2 }
 0x4d4   : > { %v3245_v34 = vperm.slane %v2963_v17, 0  ;;  %v3246_v43 = vperm.slane %v2963_v17, 1  ;;  %v3247_v3 = vperm.slane %v2963_v17, 2  ;;  %v3248_v61 = vperm.slane %v2963_v17, 3 }
 0x4d5   : > { %v3249_v27 = vperm.slane %v2963_v17, 4  ;;  %v3250_v10 = vperm.slane %v2963_v17, 5  ;;  %v3251_v36 = vperm.slane %v2963_v17, 6 }
 0x4d9   : > { %v6701_v29 = vpop.xlane.xlu2 %2910 }
 0x4da   : > { %v6672_v44 = vld [vmem:[#allocation1] sm:$0xff] }
 0x4db   : > { %3777 = vst [vmem:[#allocation1] ss:$9 sm:$0xff] %v3237_v11  ;;  %v2552_v18 = vpop.f32.mrf.mxu2  ;;  %v3252_v11 = vperm.slane %v2963_v17, 7 }
 0x4dc   : > { %3778 = vst [vmem:[#allocation1 + $0x1] ss:$9 sm:$0xff] %v3238_v60  ;;  %v2553_v35 = vadd.f32 %v6529_v42, %v2552_v18  ;;  %v2852_v60 = vsel %vm2213_vm12, %v2718_v16, 0.0 }
 0x4dd   : > { %3779 = vst [vmem:[#allocation1 + $0x2] ss:$9 sm:$0xff] %v3239_v62  ;;  %v2818_v62 = vpop.xlane.xlu1 %2817 }
 0x4de   : > { %3780 = vst [vmem:[#allocation1 + $0x3] ss:$9 sm:$0xff] %v3240_v40  ;;  %v2719_v40 = vmul.f32 %v6539_v30, %v2651_v7 }
 0x4df   : > { %3781 = vst [vmem:[#allocation1 + $0x4] ss:$9 sm:$0xff] %v3241_v57  ;;  %v2541_v57 = vadd.f32 %v6529_v42, %v6660_v59  ;;  %v2656_v59 = vmax.f32 %v2547_v52, 0.0 }
 0x4e0   : > { %3782 = vst [vmem:[#allocation1 + $0x5] ss:$9 sm:$0xff] %v3242_v20  ;;  %v2721_v20 = vmul.f32 %v6539_v30, %v2653_v6  ;;  %v2855_v17 = vsel %vm2213_vm12, %v2719_v40, 0.0 }
 0x4e1   : > { %3783 = vst [vmem:[#allocation1 + $0x6] ss:$9 sm:$0xff] %v3243_v37  ;;  %v2658_v37 = vmax.f32 %v2553_v35, 0.0  ;;  %v2654_v56 = vmax.f32 %v2541_v57, 0.0  ;;  %v2724_v1 = vmul.f32 %v6539_v30, %v2656_v59  ;;  %v2821_v12 = vpop.xlane.xlu2 %2820  ;;  %v6718_v40 = vpop.xlane.xlu0 %2913 }
 0x4e2   : > { %3784 = vst [vmem:[#allocation1 + $0x7] ss:$9 sm:$0xff] %v3244_v9  ;;  %v2964_v9 = vadd.f32 %v6258_v4, %v2818_v62  ;;  %v2861_v19 = vsel %vm2213_vm12, %v2721_v20, 0.0 }
 0x4e3   : > { %v2726_v45 = vmul.f32 %v6539_v30, %v2658_v37  ;;  %v2555_v41 = vpop.f32.mrf.mxu2  ;;  %v2722_v26 = vmul.f32 %v6539_v30, %v2654_v56  ;;  %v2870_v35 = vsel %vm2213_vm12, %v2724_v1, 0.0 }
 0x4e4   : > { %v3253_v25 = vperm.slane %v2964_v9, 0  ;;  %v3255_v63 = vperm.slane %v2964_v9, 2  ;;  %v3256_v16 = vperm.slane %v2964_v9, 3  ;;  %v3260_v6 = vperm.slane %v2964_v9, 7 }
 0x4e5   : > { %v2876_v18 = vsel %vm2213_vm12, %v2726_v45, 0.0 }
 0x4e9   : > { %v6688_v51 = vld [vmem:[#allocation1] sm:$0xff] }
 0x4ea   : > { %3786 = vst [vmem:[#allocation1] ss:$9 sm:$0xff] %v3245_v34  ;;  %v3254_v34 = vperm.slane %v2964_v9, 1 }
 0x4eb   : > { %3787 = vst [vmem:[#allocation1 + $0x1] ss:$9 sm:$0xff] %v3246_v43  ;;  %v2550_v43 = vadd.f32 %v6529_v42, %v2549_v38  ;;  %v2864_v38 = vsel %vm2213_vm12, %v2722_v26, 0.0 }
 0x4ec   : > { %3788 = vst [vmem:[#allocation1 + $0x2] ss:$9 sm:$0xff] %v3247_v3 }
 0x4ed   : > { %2859 = vadd.xlane.f32.xlu0 %v2858_v31  ;;  %3789 = vst [vmem:[#allocation1 + $0x3] ss:$9 sm:$0xff] %v3248_v61  ;;  %v2556_v61 = vadd.f32 %v6529_v42, %v2555_v41  ;;  %v3257_v31 = vperm.slane %v2964_v9, 4  ;;  %v2657_v7 = vmax.f32 %v2550_v43, 0.0 }
 0x4ee   : > { %3790 = vst [vmem:[#allocation1 + $0x4] ss:$9 sm:$0xff] %v3249_v27  ;;  %v3258_v27 = vperm.slane %v2964_v9, 5 }
 0x4ef   : > { %3791 = vst [vmem:[#allocation1 + $0x5] ss:$9 sm:$0xff] %v3250_v10  ;;  %v3259_v10 = vperm.slane %v2964_v9, 6 }
 0x4f0   : > { %3792 = vst [vmem:[#allocation1 + $0x6] ss:$9 sm:$0xff] %v3251_v36  ;;  %v2659_v36 = vmax.f32 %v2556_v61, 0.0 }
 0x4f1   : > { %2853 = vadd.xlane.f32.xlu1 %v2852_v60  ;;  %3793 = vst [vmem:[#allocation1 + $0x7] ss:$9 sm:$0xff] %v3252_v11  ;;  %v2725_v11 = vmul.f32 %v6539_v30, %v2657_v7  ;;  %v2965_v60 = vadd.f32 %v6258_v4, %v2821_v12  ;;  %v2558_v7 = vpop.f32.mrf.mxu2 }
 0x4f2   : > { %v2727_v62 = vmul.f32 %v6539_v30, %v2659_v36 }
 0x4f3   : > { %v2873_v57 = vsel %vm2213_vm12, %v2725_v11, 0.0  ;;  %v3261_v20 = vperm.slane %v2965_v60, 0  ;;  %v3262_v52 = vperm.slane %v2965_v60, 1  ;;  %v3263_v9 = vperm.slane %v2965_v60, 2 }
 0x4f4   : > { %v2879_v37 = vsel %vm2213_vm12, %v2727_v62, 0.0  ;;  %v3264_v56 = vperm.slane %v2965_v60, 3  ;;  %v3266_v59 = vperm.slane %v2965_v60, 5  ;;  %v3267_v45 = vperm.slane %v2965_v60, 6 }
 0x4f5   : > { %2868 = vadd.xlane.f32.xlu0 %v2867_v46 }
 0x4f7   : > { %2856 = vadd.xlane.f32.xlu2 %v2855_v17  ;;  %v3265_v17 = vperm.slane %v2965_v60, 4 }
 0x4f8   : > { %v6708_v3 = vld [vmem:[#allocation1] sm:$0xff] }
 0x4f9   : > { %2862 = vadd.xlane.f32.xlu1 %v2861_v19  ;;  %3795 = vst [vmem:[#allocation1] ss:$9 sm:$0xff] %v3253_v25  ;;  %v3268_v25 = vperm.slane %v2965_v60, 7  ;;  %v2824_v19 = vpop.xlane.xlu0 %2823 }
 0x4fa   : > { %3796 = vst [vmem:[#allocation1 + $0x1] ss:$9 sm:$0xff] %v3254_v34  ;;  %v2966_v41 = vadd.f32 %v6258_v4, %v2824_v19  ;;  %v6726_v34 = vpop.xlane.xlu1 %2916 }
 0x4fb   : > { %3797 = vst [vmem:[#allocation1 + $0x2] ss:$9 sm:$0xff] %v3255_v63 }
 0x4fc   : > { %3798 = vst [vmem:[#allocation1 + $0x3] ss:$9 sm:$0xff] %v3256_v16  ;;  %v3269_v26 = vperm.slane %v2966_v41, 0  ;;  %v3270_v43 = vperm.slane %v2966_v41, 1  ;;  %v3271_v63 = vperm.slane %v2966_v41, 2  ;;  %v3272_v1 = vperm.slane %v2966_v41, 3 }
 0x4fd   : > { %2877 = vadd.xlane.f32.xlu0 %v2876_v18  ;;  %3799 = vst [vmem:[#allocation1 + $0x4] ss:$9 sm:$0xff] %v3257_v31  ;;  %v3273_v61 = vperm.slane %v2966_v41, 4  ;;  %v3274_v31 = vperm.slane %v2966_v41, 5  ;;  %v3275_v18 = vperm.slane %v2966_v41, 6 }
 0x4fe   : > { %3800 = vst [vmem:[#allocation1 + $0x5] ss:$9 sm:$0xff] %v3258_v27  ;;  %v3276_v27 = vperm.slane %v2966_v41, 7 }
 0x4ff   : > { %2865 = vadd.xlane.f32.xlu2 %v2864_v38  ;;  %3801 = vst [vmem:[#allocation1 + $0x6] ss:$9 sm:$0xff] %v3259_v10  ;;  %v6733_v38 = vpop.xlane.xlu2 %2919 }
 0x500   : > { %3802 = vst [vmem:[#allocation1 + $0x7] ss:$9 sm:$0xff] %v3260_v6 }
 0x501   : > { %2871 = vadd.xlane.f32.xlu1 %v2870_v35 }
 0x507   : > { %2874 = vadd.xlane.f32.xlu2 %v2873_v57  ;;  %v6722_v46 = vld [vmem:[#allocation1] sm:$0xff] }
 0x508   : > { %3804 = vst [vmem:[#allocation1] ss:$9 sm:$0xff] %v3261_v20 }
 0x509   : > { %2880 = vadd.xlane.f32.xlu1 %v2879_v37  ;;  %3805 = vst [vmem:[#allocation1 + $0x1] ss:$9 sm:$0xff] %v3262_v52  ;;  %v2830_v52 = vpop.xlane.xlu2 %2829 }
 0x50a   : > { %3806 = vst [vmem:[#allocation1 + $0x2] ss:$9 sm:$0xff] %v3263_v9  ;;  %v2968_v37 = vadd.f32 %v6258_v4, %v2830_v52 }
 0x50b   : > { %3807 = vst [vmem:[#allocation1 + $0x3] ss:$9 sm:$0xff] %v3264_v56  ;;  %v6739_v56 = vpop.xlane.xlu0 %2922 }
 0x50c   : > { %3808 = vst [vmem:[#allocation1 + $0x4] ss:$9 sm:$0xff] %v3265_v17  ;;  %v3285_v17 = vperm.slane %v2968_v37, 0  ;;  %v3288_v41 = vperm.slane %v2968_v37, 3 }
 0x50d   : > { %3809 = vst [vmem:[#allocation1 + $0x5] ss:$9 sm:$0xff] %v3266_v59  ;;  %v3286_v59 = vperm.slane %v2968_v37, 1 }
 0x50e   : > { %3810 = vst [vmem:[#allocation1 + $0x6] ss:$9 sm:$0xff] %v3267_v45 }
 0x50f   : > { %3811 = vst [vmem:[#allocation1 + $0x7] ss:$9 sm:$0xff] %v3268_v25  ;;  %v3287_v25 = vperm.slane %v2968_v37, 2 }
 0x511   : > { %4174 = vperm.xlu0 %5006, %v6325_v15   ;;  %v2827_v15 = vpop.xlane.xlu1 %2826 }
 0x512   : > { %v2967_v10 = vadd.f32 %v6258_v4, %v2827_v15 }
 0x514   : > { %v3277_v6 = vperm.slane %v2967_v10, 0  ;;  %v3278_v36 = vperm.slane %v2967_v10, 1  ;;  %v3279_v12 = vperm.slane %v2967_v10, 2  ;;  %v3280_v11 = vperm.slane %v2967_v10, 3 }
 0x515   : > { %v3281_v60 = vperm.slane %v2967_v10, 4  ;;  %v3282_v62 = vperm.slane %v2967_v10, 5  ;;  %v3283_v57 = vperm.slane %v2967_v10, 6  ;;  %v3284_v20 = vperm.slane %v2967_v10, 7 }
 0x516   : > { %v6728_v16 = vld [vmem:[#allocation1] sm:$0xff] }
 0x517   : > { %3813 = vst [vmem:[#allocation1] ss:$9 sm:$0xff] %v3269_v26  ;;  %v3289_v26 = vperm.slane %v2968_v37, 4 }
 0x518   : > { %3814 = vst [vmem:[#allocation1 + $0x1] ss:$9 sm:$0xff] %v3270_v43  ;;  %v3290_v43 = vperm.slane %v2968_v37, 5 }
 0x519   : > { %3815 = vst [vmem:[#allocation1 + $0x2] ss:$9 sm:$0xff] %v3271_v63  ;;  %v3291_v63 = vperm.slane %v2968_v37, 6 }
 0x51a   : > { %3816 = vst [vmem:[#allocation1 + $0x3] ss:$9 sm:$0xff] %v3272_v1 }
 0x51b   : > { %3817 = vst [vmem:[#allocation1 + $0x4] ss:$9 sm:$0xff] %v3273_v61  ;;  %v2559_v61 = vadd.f32 %v6529_v42, %v2558_v7 }
 0x51c   : > { %3818 = vst [vmem:[#allocation1 + $0x5] ss:$9 sm:$0xff] %v3274_v31  ;;  %v3292_v31 = vperm.slane %v2968_v37, 7 }
 0x51d   : > { %3819 = vst [vmem:[#allocation1 + $0x6] ss:$9 sm:$0xff] %v3275_v18  ;;  %v2660_v15 = vmax.f32 %v2559_v61, 0.0 }
 0x51e   : > { %3820 = vst [vmem:[#allocation1 + $0x7] ss:$9 sm:$0xff] %v3276_v27  ;;  %v2833_v27 = vpop.xlane.xlu0 %2832 }
 0x51f   : > { %4177 = vperm.xlu2 %5008, %v6340_v33   ;;  %v2561_v33 = vpop.f32.mrf.mxu2 }
 0x522   : > { %4180 = vperm.xlu1 %5007, %v6353_v14   ;;  %v2562_v14 = vadd.f32 %v6529_v42, %v2561_v33 }
 0x524   : > { %v2661_v9 = vmax.f32 %v2562_v14, 0.0 }
 0x525   : > { %v6735_v35 = vld [vmem:[#allocation1] sm:$0xff] }
 0x526   : > { %3822 = vst [vmem:[#allocation1] ss:$9 sm:$0xff] %v3277_v6  ;;  %v2729_v45 = vmul.f32 %v6539_v30, %v2661_v9  ;;  %v2969_v6 = vadd.f32 %v6258_v4, %v2833_v27 }
 0x527   : > { %3823 = vst [vmem:[#allocation1 + $0x1] ss:$9 sm:$0xff] %v3278_v36  ;;  %v2564_v18 = vpop.f32.mrf.mxu2  ;;  %v6748_v36 = vpop.xlane.xlu1 %2925 }
 0x528   : > { %3824 = vst [vmem:[#allocation1 + $0x2] ss:$9 sm:$0xff] %v3279_v12  ;;  %v2885_v1 = vsel %vm2213_vm12, %v2729_v45, 0.0  ;;  %v2565_v10 = vadd.f32 %v6529_v42, %v2564_v18  ;;  %v2728_v12 = vmul.f32 %v6539_v30, %v2660_v15  ;;  %v3293_v7 = vperm.slane %v2969_v6, 0  ;;  %v6758_v45 = vpop.xlane.xlu2 %2928  ;;  %v6764_v15 = vpop.xlane.xlu0 %2931 }
 0x529   : > { %3825 = vst [vmem:[#allocation1 + $0x3] ss:$9 sm:$0xff] %v3280_v11  ;;  %v3297_v52 = vperm.slane %v2969_v6, 4  ;;  %v3298_v14 = vperm.slane %v2969_v6, 5  ;;  %v3299_v37 = vperm.slane %v2969_v6, 6  ;;  %v3300_v9 = vperm.slane %v2969_v6, 7 }
 0x52a   : > { %3826 = vst [vmem:[#allocation1 + $0x4] ss:$9 sm:$0xff] %v3281_v60  ;;  %v2662_v11 = vmax.f32 %v2565_v10, 0.0  ;;  %v3294_v60 = vperm.slane %v2969_v6, 1  ;;  %v2882_v42 = vsel %vm2213_vm12, %v2728_v12, 0.0 }
 0x52b   : > { %3827 = vst [vmem:[#allocation1 + $0x5] ss:$9 sm:$0xff] %v3282_v62  ;;  %v3295_v62 = vperm.slane %v2969_v6, 2 }
 0x52c   : > { %3828 = vst [vmem:[#allocation1 + $0x6] ss:$9 sm:$0xff] %v3283_v57  ;;  %v3296_v57 = vperm.slane %v2969_v6, 3 }
 0x52d   : > { %3829 = vst [vmem:[#allocation1 + $0x7] ss:$9 sm:$0xff] %v3284_v20  ;;  %v2730_v20 = vmul.f32 %v6539_v30, %v2662_v11 }
 0x534   : > { %v6742_v19 = vld [vmem:[#allocation1] sm:$0xff] }
 0x535   : > { %3831 = vst [vmem:[#allocation1] ss:$9 sm:$0xff] %v3285_v17  ;;  %v2836_v17 = vpop.xlane.xlu1 %2835 }
 0x536   : > { %3832 = vst [vmem:[#allocation1 + $0x1] ss:$9 sm:$0xff] %v3286_v59  ;;  %v2888_v59 = vsel %vm2213_vm12, %v2730_v20, 0.0  ;;  %v2970_v30 = vadd.f32 %v6258_v4, %v2836_v17 }
 0x537   : > { %3833 = vst [vmem:[#allocation1 + $0x2] ss:$9 sm:$0xff] %v3287_v25 }
 0x538   : > { %3834 = vst [vmem:[#allocation1 + $0x3] ss:$9 sm:$0xff] %v3288_v41  ;;  %v3301_v25 = vperm.slane %v2970_v30, 0  ;;  %v3302_v41 = vperm.slane %v2970_v30, 1  ;;  %v3306_v61 = vperm.slane %v2970_v30, 5  ;;  %v3308_v18 = vperm.slane %v2970_v30, 7 }
 0x539   : > { %3835 = vst [vmem:[#allocation1 + $0x4] ss:$9 sm:$0xff] %v3289_v26  ;;  %v3303_v26 = vperm.slane %v2970_v30, 2 }
 0x53a   : > { %3836 = vst [vmem:[#allocation1 + $0x5] ss:$9 sm:$0xff] %v3290_v43 }
 0x53b   : > { %2886 = vadd.xlane.f32.xlu0 %v2885_v1  ;;  %3837 = vst [vmem:[#allocation1 + $0x6] ss:$9 sm:$0xff] %v3291_v63  ;;  %v3304_v63 = vperm.slane %v2970_v30, 3  ;;  %v3305_v1 = vperm.slane %v2970_v30, 4 }
 0x53c   : > { %3838 = vst [vmem:[#allocation1 + $0x7] ss:$9 sm:$0xff] %v3292_v31  ;;  %v3307_v31 = vperm.slane %v2970_v30, 6 }
 0x53d   : > { %v6774_v20 = vpop.xlane.xlu1 %2934 }
 0x543   : > { %v6751_v33 = vld [vmem:[#allocation1] sm:$0xff] }
 0x544   : > { %3840 = vst [vmem:[#allocation1] ss:$9 sm:$0xff] %v3293_v7 }
 0x545   : > { %3841 = vst [vmem:[#allocation1 + $0x1] ss:$9 sm:$0xff] %v3294_v60 }
 0x546   : > { %3842 = vst [vmem:[#allocation1 + $0x2] ss:$9 sm:$0xff] %v3295_v62 }
 0x547   : > { %3843 = vst [vmem:[#allocation1 + $0x3] ss:$9 sm:$0xff] %v3296_v57 }
 0x548   : > { %2883 = vadd.xlane.f32.xlu2 %v2882_v42  ;;  %3844 = vst [vmem:[#allocation1 + $0x4] ss:$9 sm:$0xff] %v3297_v52 }
 0x549   : > { %3845 = vst [vmem:[#allocation1 + $0x5] ss:$9 sm:$0xff] %v3298_v14 }
 0x54a   : > { %3846 = vst [vmem:[#allocation1 + $0x6] ss:$9 sm:$0xff] %v3299_v37 }
 0x54b   : > { %3847 = vst [vmem:[#allocation1 + $0x7] ss:$9 sm:$0xff] %v3300_v9 }
 0x54c   : > { %2889 = vadd.xlane.f32.xlu1 %v2888_v59 }
 0x54f   : > { %4183 = vperm.xlu0 %5006, %v6371_v54   ;;  %v2839_v54 = vpop.xlane.xlu2 %2838 }
 0x550   : > { %v2971_v27 = vadd.f32 %v6258_v4, %v2839_v54 }
 0x552   : > { %v6760_v43 = vld [vmem:[#allocation1] sm:$0xff]  ;;  %v3309_v10 = vperm.slane %v2971_v27, 0  ;;  %v3310_v6 = vperm.slane %v2971_v27, 1  ;;  %v3312_v11 = vperm.slane %v2971_v27, 3  ;;  %v3313_v7 = vperm.slane %v2971_v27, 4 }
 0x553   : > { %3849 = vst [vmem:[#allocation1] ss:$9 sm:$0xff] %v3301_v25  ;;  %v3314_v60 = vperm.slane %v2971_v27, 5  ;;  %v3315_v62 = vperm.slane %v2971_v27, 6  ;;  %v3316_v57 = vperm.slane %v2971_v27, 7 }
 0x554   : > { %3850 = vst [vmem:[#allocation1 + $0x1] ss:$9 sm:$0xff] %v3302_v41  ;;  %v5016_v25 = vld [vmem:[%s7151_s6] ss:$0 sm:$0xff] }
 0x555   : > { %3851 = vst [vmem:[#allocation1 + $0x2] ss:$9 sm:$0xff] %v3303_v26 }
 0x556   : > { %3852 = vst [vmem:[#allocation1 + $0x3] ss:$9 sm:$0xff] %v3304_v63 }
 0x557   : > { %4192 = vperm.xlu0 %5006, %v6418_v53   ;;  %3853 = vst [vmem:[#allocation1 + $0x4] ss:$9 sm:$0xff] %v3305_v1  ;;  %v3311_v53 = vperm.slane %v2971_v27, 2  ;;  %v5017_v27 = vld [vmem:[%s7152_s7] ss:$0 sm:$0xff] }
 0x558   : > { %3854 = vst [vmem:[#allocation1 + $0x5] ss:$9 sm:$0xff] %v3306_v61 }
 0x559   : > { %3855 = vst [vmem:[#allocation1 + $0x6] ss:$9 sm:$0xff] %v3307_v31 }
 0x55a   : > { %3856 = vst [vmem:[#allocation1 + $0x7] ss:$9 sm:$0xff] %v3308_v18 }
 0x55f   : > { %4201 = vperm.xlu0 %5006, %v6444_v48  }
 0x560   : > { %4186 = vperm.xlu2 %5008, %v6386_v50   ;;  %v2842_v50 = vpop.xlane.xlu0 %2841 }
 0x561   : > { %v6768_v12 = vld [vmem:[#allocation1] sm:$0xff]  ;;  %v2972_v48 = vadd.f32 %v6258_v4, %v2842_v50 }
 0x562   : > { %3858 = vst [vmem:[#allocation1] ss:$9 sm:$0xff] %v3309_v10 }
 0x563   : > { %3859 = vst [vmem:[#allocation1 + $0x1] ss:$9 sm:$0xff] %v3310_v6  ;;  %v3318_v52 = vperm.slane %v2972_v48, 1  ;;  %v3319_v42 = vperm.slane %v2972_v48, 2  ;;  %v3321_v37 = vperm.slane %v2972_v48, 4  ;;  %v3322_v9 = vperm.slane %v2972_v48, 5 }
 0x564   : > { %3860 = vst [vmem:[#allocation1 + $0x2] ss:$9 sm:$0xff] %v3311_v53  ;;  %v3323_v17 = vperm.slane %v2972_v48, 6  ;;  %v3324_v59 = vperm.slane %v2972_v48, 7 }
 0x565   : > { %4189 = vperm.xlu1 %5007, %v6404_v22   ;;  %3861 = vst [vmem:[#allocation1 + $0x3] ss:$9 sm:$0xff] %v3312_v11  ;;  %v3317_v22 = vperm.slane %v2972_v48, 0 }
 0x566   : > { %3862 = vst [vmem:[#allocation1 + $0x4] ss:$9 sm:$0xff] %v3313_v7 }
 0x567   : > { %4210 = vperm.xlu0 %5006, %v6463_v24   ;;  %3863 = vst [vmem:[#allocation1 + $0x5] ss:$9 sm:$0xff] %v3314_v60  ;;  %v3320_v24 = vperm.slane %v2972_v48, 3 }
 0x568   : > { %3864 = vst [vmem:[#allocation1 + $0x6] ss:$9 sm:$0xff] %v3315_v62  ;;  %v2851_v61 = vpop.xlane.xlu0 %2850  ;;  %v6797_v62 = vadd.s32 4294967288, %v5296_v58 }
 0x569   : > { %3865 = vst [vmem:[#allocation1 + $0x7] ss:$9 sm:$0xff] %v3316_v57 }
 0x56d   : > { %4198 = vperm.xlu1 %5007, %v6436_v8   ;;  %v2845_v8 = vpop.xlane.xlu1 %2844 }
 0x56e   : > { %v2973_v30 = vadd.f32 %v6258_v4, %v2845_v8 }
 0x56f   : > { %4219 = vperm.xlu0 %5006, %v6657_v21   ;;  %v2567_v21 = vpop.f32.mrf.mxu2 }
 0x570   : > { %v3866_v14 = vld [vmem:[#allocation1] sm:$0xff]  ;;  %v2568_v41 = vadd.f32 %v5016_v25, %v2567_v21  ;;  %v3325_v26 = vperm.slane %v2973_v30, 0  ;;  %v3326_v63 = vperm.slane %v2973_v30, 1  ;;  %v3327_v1 = vperm.slane %v2973_v30, 2  ;;  %v4166_v7 = vpop.permute.xlu0 %4165 }
 0x571   : > { %3867 = vst [vmem:[#allocation1] ss:$9 sm:$0xff] %v3317_v22  ;;  %v3328_v18 = vperm.slane %v2973_v30, 3  ;;  %v3329_v54 = vperm.slane %v2973_v30, 4  ;;  %v3330_v6 = vperm.slane %v2973_v30, 5 }
 0x572   : > { %3868 = vst [vmem:[#allocation1 + $0x1] ss:$9 sm:$0xff] %v3318_v52 }
 0x573   : > { %3869 = vst [vmem:[#allocation1 + $0x2] ss:$9 sm:$0xff] %v3319_v42 }
 0x574   : > { %3870 = vst [vmem:[#allocation1 + $0x3] ss:$9 sm:$0xff] %v3320_v24 }
 0x575   : > { %4207 = vperm.xlu1 %5007, %v6456_v2   ;;  %3871 = vst [vmem:[#allocation1 + $0x4] ss:$9 sm:$0xff] %v3321_v37  ;;  %v6783_v2 = vpop.xlane.xlu2 %2937  ;;  %v4169_v57 = vpop.permute.xlu1 %4168 }
 0x576   : > { %3872 = vst [vmem:[#allocation1 + $0x5] ss:$9 sm:$0xff] %v3322_v9  ;;  %v4358_v50 = vperm.slane %v4169_v57, %v6797_v62 }
 0x577   : > { %4228 = vperm.xlu0 %5006, %v6688_v51   ;;  %3873 = vst [vmem:[#allocation1 + $0x6] ss:$9 sm:$0xff] %v3323_v17  ;;  %v2663_v51 = vmax.f32 %v2568_v41, 0.0 }
 0x578   : > { %3874 = vst [vmem:[#allocation1 + $0x7] ss:$9 sm:$0xff] %v3324_v59 }
 0x579   : > { %v2731_v10 = vmul.f32 %v5017_v27, %v2663_v51 }
 0x57b   : > { %v2891_v11 = vsel %vm2213_vm12, %v2731_v10, 0.0  ;;  %vm4363_vm12 = vcmask 195712  }
 0x57d   : > { %4216 = vperm.xlu1 %5007, %v6480_v39   ;;  %v3331_v39 = vperm.slane %v2973_v30, 6  ;;  %v2848_v53 = vpop.xlane.xlu2 %2847 }
 0x57e   : > { %v2974_v60 = vadd.f32 %v6258_v4, %v2848_v53 }
 0x57f   : > { %4237 = vperm.xlu0 %5006, %v6728_v16   ;;  %v6787_v31 = vld [vmem:[#allocation1] sm:$0xff]  ;;  %v3332_v16 = vperm.slane %v2973_v30, 7 }
 0x580   : > { %3876 = vst [vmem:[#allocation1] ss:$9 sm:$0xff] %v3325_v26  ;;  %v3334_v22 = vperm.slane %v2974_v60, 1  ;;  %v3335_v52 = vperm.slane %v2974_v60, 2  ;;  %v3336_v24 = vperm.slane %v2974_v60, 3  ;;  %v3337_v37 = vperm.slane %v2974_v60, 4 }
 0x581   : > { %3877 = vst [vmem:[#allocation1 + $0x1] ss:$9 sm:$0xff] %v3326_v63  ;;  %v3338_v9 = vperm.slane %v2974_v60, 5  ;;  %v3339_v17 = vperm.slane %v2974_v60, 6  ;;  %v3340_v59 = vperm.slane %v2974_v60, 7  ;;  %v6808_v26 = vadd.s32 4294967280, %v5296_v58  ;;  %v2854_v63 = vpop.xlane.xlu1 %2853 }
 0x582   : > { %3878 = vst [vmem:[#allocation1 + $0x2] ss:$9 sm:$0xff] %v3327_v1 }
 0x583   : > { %3879 = vst [vmem:[#allocation1 + $0x3] ss:$9 sm:$0xff] %v3328_v18 }
 0x584   : > { %3880 = vst [vmem:[#allocation1 + $0x4] ss:$9 sm:$0xff] %v3329_v54 }
 0x585   : > { %4225 = vperm.xlu1 %5007, %v6672_v44   ;;  %3881 = vst [vmem:[#allocation1 + $0x5] ss:$9 sm:$0xff] %v3330_v6  ;;  %v4356_v44 = vperm.slane %v4166_v7, %v5296_v58 }
 0x586   : > { %3882 = vst [vmem:[#allocation1 + $0x6] ss:$9 sm:$0xff] %v3331_v39 }
 0x587   : > { %4246 = vperm.xlu0 %5006, %v6751_v33   ;;  %3883 = vst [vmem:[#allocation1 + $0x7] ss:$9 sm:$0xff] %v3332_v16  ;;  %v3333_v33 = vperm.slane %v2974_v60, 0  ;;  %v4360_v48 = vsel %vm4359_vm0, %v4358_v50, %v4356_v44 }
 0x589   : > { %2892 = vadd.xlane.f32.xlu2 %v2891_v11 }
 0x58d   : > { %4234 = vperm.xlu1 %5007, %v6722_v46   ;;  %v2975_v46 = vadd.f32 %v6258_v4, %v2851_v61  ;;  %v2976_v61 = vadd.f32 %v6258_v4, %v2854_v63 }
 0x58e   : > { %v3884_v42 = vld [vmem:[#allocation1] sm:$0xff] }
 0x58f   : > { %4255 = vperm.xlu0 %5006, %v3866_v14   ;;  %3885 = vst [vmem:[#allocation1] ss:$9 sm:$0xff] %v3333_v33  ;;  %v3341_v14 = vperm.slane %v2975_v46, 0  ;;  %v3342_v8 = vperm.slane %v2975_v46, 1  ;;  %v3343_v30 = vperm.slane %v2975_v46, 2  ;;  %v3344_v25 = vperm.slane %v2975_v46, 3 }
 0x590   : > { %3886 = vst [vmem:[#allocation1 + $0x1] ss:$9 sm:$0xff] %v3334_v22  ;;  %v3345_v41 = vperm.slane %v2975_v46, 4  ;;  %v3347_v51 = vperm.slane %v2975_v46, 6  ;;  %v3348_v1 = vperm.slane %v2975_v46, 7  ;;  %v3349_v54 = vperm.slane %v2976_v61, 0 }
 0x591   : > { %3887 = vst [vmem:[#allocation1 + $0x2] ss:$9 sm:$0xff] %v3335_v52  ;;  %v3350_v27 = vperm.slane %v2976_v61, 1  ;;  %v3351_v10 = vperm.slane %v2976_v61, 2  ;;  %v3352_v39 = vperm.slane %v2976_v61, 3  ;;  %v3353_v16 = vperm.slane %v2976_v61, 4 }
 0x592   : > { %3888 = vst [vmem:[#allocation1 + $0x3] ss:$9 sm:$0xff] %v3336_v24  ;;  %v3354_v53 = vperm.slane %v2976_v61, 5  ;;  %v3355_v11 = vperm.slane %v2976_v61, 6  ;;  %v3356_v7 = vperm.slane %v2976_v61, 7  ;;  %v2860_v24 = vpop.xlane.xlu0 %2859 }
 0x593   : > { %3889 = vst [vmem:[#allocation1 + $0x4] ss:$9 sm:$0xff] %v3337_v37 }
 0x594   : > { %3890 = vst [vmem:[#allocation1 + $0x5] ss:$9 sm:$0xff] %v3338_v9 }
 0x595   : > { %4243 = vperm.xlu1 %5007, %v6742_v19   ;;  %3891 = vst [vmem:[#allocation1 + $0x6] ss:$9 sm:$0xff] %v3339_v17  ;;  %v3346_v19 = vperm.slane %v2975_v46, 5 }
 0x596   : > { %3892 = vst [vmem:[#allocation1 + $0x7] ss:$9 sm:$0xff] %v3340_v59 }
 0x59d   : > { %4252 = vperm.xlu1 %5007, %v6768_v12   ;;  %v3893_v21 = vld [vmem:[#allocation1] sm:$0xff]  ;;  %v4172_v12 = vpop.permute.xlu2 %4171 }
 0x59e   : > { %3894 = vst [vmem:[#allocation1] ss:$9 sm:$0xff] %v3341_v14  ;;  %4264 = vperm.xlu0 %5006, %v3893_v21  }
 0x59f   : > { %3895 = vst [vmem:[#allocation1 + $0x1] ss:$9 sm:$0xff] %v3342_v8 }
 0x5a0   : > { %3896 = vst [vmem:[#allocation1 + $0x2] ss:$9 sm:$0xff] %v3343_v30 }
 0x5a1   : > { %4195 = vperm.xlu2 %5008, %v6425_v47   ;;  %3897 = vst [vmem:[#allocation1 + $0x3] ss:$9 sm:$0xff] %v3344_v25  ;;  %v4362_v47 = vperm.slane %v4172_v12, %v6808_v26  ;;  %v2869_v12 = vpop.xlane.xlu0 %2868 }
 0x5a2   : > { %3898 = vst [vmem:[#allocation1 + $0x4] ss:$9 sm:$0xff] %v3345_v41 }
 0x5a3   : > { %3899 = vst [vmem:[#allocation1 + $0x5] ss:$9 sm:$0xff] %v3346_v19  ;;  %v6814_v18 = vsel %vm4363_vm12, %v4362_v47, %v4360_v48 }
 0x5a4   : > { %3900 = vst [vmem:[#allocation1 + $0x6] ss:$9 sm:$0xff] %v3347_v51 }
 0x5a5   : > { %4261 = vperm.xlu1 %5007, %v3884_v42   ;;  %3901 = vst [vmem:[#allocation1 + $0x7] ss:$9 sm:$0xff] %v3348_v1 }
 0x5a9   : > { %4204 = vperm.xlu2 %5008, %v6451_v13   ;;  %v2857_v13 = vpop.xlane.xlu2 %2856 }
 0x5aa   : > { %v2977_v60 = vadd.f32 %v6258_v4, %v2857_v13 }
 0x5ac   : > { %v6816_v6 = vld [vmem:[#allocation1] sm:$0xff]  ;;  %v3357_v57 = vperm.slane %v2977_v60, 0  ;;  %v3358_v50 = vperm.slane %v2977_v60, 1  ;;  %v3359_v33 = vperm.slane %v2977_v60, 2  ;;  %v3361_v48 = vperm.slane %v2977_v60, 4 }
 0x5ad   : > { %3903 = vst [vmem:[#allocation1] ss:$9 sm:$0xff] %v3349_v54  ;;  %v3362_v22 = vperm.slane %v2977_v60, 5  ;;  %v3363_v52 = vperm.slane %v2977_v60, 6  ;;  %v3364_v42 = vperm.slane %v2977_v60, 7 }
 0x5ae   : > { %3904 = vst [vmem:[#allocation1 + $0x1] ss:$9 sm:$0xff] %v3350_v27 }
 0x5af   : > { %3905 = vst [vmem:[#allocation1 + $0x2] ss:$9 sm:$0xff] %v3351_v10  ;;  %v6831_v10 = vpop.xlane.xlu0 %2877 }
 0x5b0   : > { %3906 = vst [vmem:[#allocation1 + $0x3] ss:$9 sm:$0xff] %v3352_v39 }
 0x5b1   : > { %4213 = vperm.xlu2 %5008, %v6471_v32   ;;  %3907 = vst [vmem:[#allocation1 + $0x4] ss:$9 sm:$0xff] %v3353_v16  ;;  %v3360_v32 = vperm.slane %v2977_v60, 3  ;;  %v2866_v41 = vpop.xlane.xlu2 %2865  ;;  %v6834_v60 = vadd.s32 4294967264, %v5296_v58 }
 0x5b2   : > { %3908 = vst [vmem:[#allocation1 + $0x5] ss:$9 sm:$0xff] %v3354_v53  ;;  %v2980_v27 = vadd.f32 %v6258_v4, %v2866_v41 }
 0x5b3   : > { %3909 = vst [vmem:[#allocation1 + $0x6] ss:$9 sm:$0xff] %v3355_v11 }
 0x5b4   : > { %3910 = vst [vmem:[#allocation1 + $0x7] ss:$9 sm:$0xff] %v3356_v7  ;;  %v3381_v39 = vperm.slane %v2980_v27, 0  ;;  %v3382_v53 = vperm.slane %v2980_v27, 1  ;;  %v3383_v11 = vperm.slane %v2980_v27, 2  ;;  %v3384_v7 = vperm.slane %v2980_v27, 3 }
 0x5b9   : > { %4222 = vperm.xlu2 %5008, %v6666_v28   ;;  %v2978_v28 = vadd.f32 %v6258_v4, %v2860_v24 }
 0x5bb   : > { %v3911_v44 = vld [vmem:[#allocation1] sm:$0xff]  ;;  %v3365_v37 = vperm.slane %v2978_v28, 0  ;;  %v3366_v9 = vperm.slane %v2978_v28, 1  ;;  %v3367_v59 = vperm.slane %v2978_v28, 2  ;;  %v3369_v46 = vperm.slane %v2978_v28, 4 }
 0x5bc   : > { %3912 = vst [vmem:[#allocation1] ss:$9 sm:$0xff] %v3357_v57  ;;  %4270 = vperm.xlu1 %5007, %v3911_v44   ;;  %v3370_v14 = vperm.slane %v2978_v28, 5  ;;  %v3371_v8 = vperm.slane %v2978_v28, 6  ;;  %v3372_v21 = vperm.slane %v2978_v28, 7  ;;  %v6837_v57 = vadd.s32 4294967272, %v5296_v58 }
 0x5bd   : > { %3913 = vst [vmem:[#allocation1 + $0x1] ss:$9 sm:$0xff] %v3358_v50  ;;  %v3386_v44 = vperm.slane %v2980_v27, 5 }
 0x5be   : > { %3914 = vst [vmem:[#allocation1 + $0x2] ss:$9 sm:$0xff] %v3359_v33  ;;  %v4175_v33 = vpop.permute.xlu0 %4174 }
 0x5bf   : > { %3915 = vst [vmem:[#allocation1 + $0x3] ss:$9 sm:$0xff] %v3360_v32  ;;  %v3387_v32 = vperm.slane %v2980_v27, 6 }
 0x5c0   : > { %3916 = vst [vmem:[#allocation1 + $0x4] ss:$9 sm:$0xff] %v3361_v48 }
 0x5c1   : > { %4231 = vperm.xlu2 %5008, %v6708_v3   ;;  %3917 = vst [vmem:[#allocation1 + $0x5] ss:$9 sm:$0xff] %v3362_v22  ;;  %v3368_v3 = vperm.slane %v2978_v28, 3  ;;  %v4366_v22 = vperm.slane %v4175_v33, %v6837_v57  ;;  %v2981_v28 = vadd.f32 %v6258_v4, %v2869_v12 }
 0x5c2   : > { %3918 = vst [vmem:[#allocation1 + $0x6] ss:$9 sm:$0xff] %v3363_v52  ;;  %v3388_v52 = vperm.slane %v2980_v27, 7 }
 0x5c3   : > { %3919 = vst [vmem:[#allocation1 + $0x7] ss:$9 sm:$0xff] %v3364_v42  ;;  %v4368_v42 = vsel %vm4367_vm15, %v4366_v22, %v6814_v18  ;;  %v3395_v18 = vperm.slane %v2981_v28, 6 }
 0x5c9   : > { %4240 = vperm.xlu2 %5008, %v6735_v35   ;;  %v2863_v35 = vpop.xlane.xlu1 %2862 }
 0x5ca   : > { %v3920_v17 = vld [vmem:[#allocation1] sm:$0xff]  ;;  %v2979_v30 = vadd.f32 %v6258_v4, %v2863_v35  ;;  %v6848_v35 = vadd.s32 4294967256, %v5296_v58 }
 0x5cb   : > { %3921 = vst [vmem:[#allocation1] ss:$9 sm:$0xff] %v3365_v37  ;;  %4273 = vperm.xlu0 %5006, %v3920_v17   ;;  %v3389_v37 = vperm.slane %v2981_v28, 0  ;;  %v3390_v17 = vperm.slane %v2981_v28, 1 }
 0x5cc   : > { %3922 = vst [vmem:[#allocation1 + $0x1] ss:$9 sm:$0xff] %v3366_v9  ;;  %v3373_v25 = vperm.slane %v2979_v30, 0  ;;  %v3374_v51 = vperm.slane %v2979_v30, 1  ;;  %v3375_v63 = vperm.slane %v2979_v30, 2  ;;  %v3376_v1 = vperm.slane %v2979_v30, 3 }
 0x5cd   : > { %3923 = vst [vmem:[#allocation1 + $0x2] ss:$9 sm:$0xff] %v3367_v59  ;;  %v3378_v47 = vperm.slane %v2979_v30, 5  ;;  %v3379_v61 = vperm.slane %v2979_v30, 6  ;;  %v3380_v54 = vperm.slane %v2979_v30, 7 }
 0x5ce   : > { %3924 = vst [vmem:[#allocation1 + $0x3] ss:$9 sm:$0xff] %v3368_v3  ;;  %v3391_v3 = vperm.slane %v2981_v28, 2 }
 0x5cf   : > { %3925 = vst [vmem:[#allocation1 + $0x4] ss:$9 sm:$0xff] %v3369_v46  ;;  %v3392_v46 = vperm.slane %v2981_v28, 3 }
 0x5d0   : > { %3926 = vst [vmem:[#allocation1 + $0x5] ss:$9 sm:$0xff] %v3370_v14  ;;  %v3393_v14 = vperm.slane %v2981_v28, 4 }
 0x5d1   : > { %4249 = vperm.xlu2 %5008, %v6760_v43   ;;  %3927 = vst [vmem:[#allocation1 + $0x6] ss:$9 sm:$0xff] %v3371_v8  ;;  %v3377_v43 = vperm.slane %v2979_v30, 4  ;;  %v2872_v13 = vpop.xlane.xlu1 %2871  ;;  %v3394_v8 = vperm.slane %v2981_v28, 5 }
 0x5d2   : > { %3928 = vst [vmem:[#allocation1 + $0x7] ss:$9 sm:$0xff] %v3372_v21  ;;  %v3396_v21 = vperm.slane %v2981_v28, 7  ;;  %v2982_v41 = vadd.f32 %v6258_v4, %v2872_v13 }
 0x5d9   : > { %4258 = vperm.xlu2 %5008, %v6787_v31   ;;  %v3929_v19 = vld [vmem:[#allocation1] sm:$0xff]  ;;  %v6828_v31 = vpop.xlane.xlu2 %2874  ;;  %v6845_v9 = vpop.xlane.xlu1 %2880 }
 0x5da   : > { %3930 = vst [vmem:[#allocation1] ss:$9 sm:$0xff] %v3373_v25 }
 0x5db   : > { %3931 = vst [vmem:[#allocation1 + $0x1] ss:$9 sm:$0xff] %v3374_v51  ;;  %v3397_v51 = vperm.slane %v2982_v41, 0 }
 0x5dc   : > { %3932 = vst [vmem:[#allocation1 + $0x2] ss:$9 sm:$0xff] %v3375_v63  ;;  %v3398_v63 = vperm.slane %v2982_v41, 1 }
 0x5dd   : > { %3933 = vst [vmem:[#allocation1 + $0x3] ss:$9 sm:$0xff] %v3376_v1  ;;  %v3399_v1 = vperm.slane %v2982_v41, 2 }
 0x5de   : > { %3934 = vst [vmem:[#allocation1 + $0x4] ss:$9 sm:$0xff] %v3377_v43  ;;  %v3400_v43 = vperm.slane %v2982_v41, 3 }
 0x5df   : > { %3935 = vst [vmem:[#allocation1 + $0x5] ss:$9 sm:$0xff] %v3378_v47  ;;  %v3401_v47 = vperm.slane %v2982_v41, 4 }
 0x5e0   : > { %3936 = vst [vmem:[#allocation1 + $0x6] ss:$9 sm:$0xff] %v3379_v61  ;;  %v3402_v61 = vperm.slane %v2982_v41, 5 }
 0x5e1   : > { %4267 = vperm.xlu2 %5008, %v6816_v6   ;;  %3937 = vst [vmem:[#allocation1 + $0x7] ss:$9 sm:$0xff] %v3380_v54  ;;  %v3385_v6 = vperm.slane %v2980_v27, 4  ;;  %v4178_v50 = vpop.permute.xlu2 %4177  ;;  %v4181_v30 = vpop.permute.xlu1 %4180  ;;  %v3403_v54 = vperm.slane %v2982_v41, 6  ;;  %v3404_v27 = vperm.slane %v2982_v41, 7  ;;  %v6862_v41 = vadd.s32 4294967248, %v5296_v58 }
 0x5e2   : > { %v4370_v48 = vperm.slane %v4178_v50, %v6834_v60  ;;  %v4374_v25 = vperm.slane %v4181_v30, %v6848_v35 }
 0x5e4   : > { %v4372_v24 = vsel %vm4371_vm1, %v4370_v48, %v4368_v42 }
 0x5e8   : > { %v3938_v16 = vld [vmem:[#allocation1] sm:$0xff] }
 0x5e9   : > { %4276 = vperm.xlu2 %5008, %v3929_v19   ;;  %3939 = vst [vmem:[#allocation1] ss:$9 sm:$0xff] %v3381_v39  ;;  %4279 = vperm.xlu1 %5007, %v3938_v16   ;;  %v6853_v19 = vsel %vm4375_vm2, %v4374_v25, %v4372_v24  ;;  %v2983_v39 = vadd.f32 %v6258_v4, %v6828_v31 }
 0x5ea   : > { %3940 = vst [vmem:[#allocation1 + $0x1] ss:$9 sm:$0xff] %v3382_v53  ;;  %v2984_v31 = vadd.f32 %v6258_v4, %v6831_v10  ;;  %v2985_v10 = vadd.f32 %v6258_v4, %v6845_v9 }
 0x5eb   : > { %3941 = vst [vmem:[#allocation1 + $0x2] ss:$9 sm:$0xff] %v3383_v11  ;;  %v3405_v16 = vperm.slane %v2983_v39, 0  ;;  %v3406_v11 = vperm.slane %v2983_v39, 1  ;;  %v3409_v13 = vperm.slane %v2983_v39, 4  ;;  %v3411_v50 = vperm.slane %v2983_v39, 6 }
 0x5ec   : > { %3942 = vst [vmem:[#allocation1 + $0x3] ss:$9 sm:$0xff] %v3384_v7  ;;  %v3407_v7 = vperm.slane %v2983_v39, 2  ;;  %v3412_v33 = vperm.slane %v2983_v39, 7  ;;  %v3414_v48 = vperm.slane %v2984_v31, 1  ;;  %v3416_v42 = vperm.slane %v2984_v31, 3 }
 0x5ed   : > { %3943 = vst [vmem:[#allocation1 + $0x4] ss:$9 sm:$0xff] %v3385_v6  ;;  %v3408_v6 = vperm.slane %v2983_v39, 3  ;;  %v3417_v24 = vperm.slane %v2984_v31, 4  ;;  %v3418_v28 = vperm.slane %v2984_v31, 5  ;;  %v3425_v30 = vperm.slane %v2985_v10, 4 }
 0x5ee   : > { %3944 = vst [vmem:[#allocation1 + $0x5] ss:$9 sm:$0xff] %v3386_v44  ;;  %v3410_v44 = vperm.slane %v2983_v39, 5  ;;  %v3426_v25 = vperm.slane %v2985_v10, 5 }
 0x5ef   : > { %3945 = vst [vmem:[#allocation1 + $0x6] ss:$9 sm:$0xff] %v3387_v32  ;;  %v3413_v32 = vperm.slane %v2984_v31, 0 }
 0x5f0   : > { %3946 = vst [vmem:[#allocation1 + $0x7] ss:$9 sm:$0xff] %v3388_v52  ;;  %v3415_v52 = vperm.slane %v2984_v31, 2 }
 0x5f7   : > { %v3947_v59 = vld [vmem:[#allocation1] sm:$0xff] }
 0x5f8   : > { %3948 = vst [vmem:[#allocation1] ss:$9 sm:$0xff] %v3389_v37  ;;  %4282 = vperm.xlu0 %5006, %v3947_v59   ;;  %v3419_v37 = vperm.slane %v2984_v31, 6  ;;  %v2887_v59 = vpop.xlane.xlu0 %2886 }
 0x5f9   : > { %3949 = vst [vmem:[#allocation1 + $0x1] ss:$9 sm:$0xff] %v3390_v17  ;;  %v3420_v17 = vperm.slane %v2984_v31, 7 }
 0x5fa   : > { %3950 = vst [vmem:[#allocation1 + $0x2] ss:$9 sm:$0xff] %v3391_v3  ;;  %v2884_v3 = vpop.xlane.xlu2 %2883 }
 0x5fb   : > { %3951 = vst [vmem:[#allocation1 + $0x3] ss:$9 sm:$0xff] %v3392_v46  ;;  %v3421_v46 = vperm.slane %v2985_v10, 0 }
 0x5fc   : > { %3952 = vst [vmem:[#allocation1 + $0x4] ss:$9 sm:$0xff] %v3393_v14 }
 0x5fd   : > { %3953 = vst [vmem:[#allocation1 + $0x5] ss:$9 sm:$0xff] %v3394_v8  ;;  %v3422_v8 = vperm.slane %v2985_v10, 1 }
 0x5fe   : > { %3954 = vst [vmem:[#allocation1 + $0x6] ss:$9 sm:$0xff] %v3395_v18  ;;  %v3423_v18 = vperm.slane %v2985_v10, 2 }
 0x5ff   : > { %3955 = vst [vmem:[#allocation1 + $0x7] ss:$9 sm:$0xff] %v3396_v21  ;;  %v3424_v21 = vperm.slane %v2985_v10, 3 }
 0x600   : > { %v4184_v9 = vpop.permute.xlu0 %4183 }
 0x606   : > { %v3956_v12 = vld [vmem:[#allocation1] sm:$0xff] }
 0x607   : > { %3957 = vst [vmem:[#allocation1] ss:$9 sm:$0xff] %v3397_v51  ;;  %4285 = vperm.xlu2 %5008, %v3956_v12   ;;  %v3427_v51 = vperm.slane %v2985_v10, 6  ;;  %v3428_v12 = vperm.slane %v2985_v10, 7 }
 0x608   : > { %3958 = vst [vmem:[#allocation1 + $0x1] ss:$9 sm:$0xff] %v3398_v63  ;;  %v4378_v63 = vperm.slane %v4184_v9, %v6862_v41 }
 0x609   : > { %3959 = vst [vmem:[#allocation1 + $0x2] ss:$9 sm:$0xff] %v3399_v1  ;;  %v6866_v1 = vadd.s32 4294967240, %v5296_v58 }
 0x60a   : > { %3960 = vst [vmem:[#allocation1 + $0x3] ss:$9 sm:$0xff] %v3400_v43  ;;  %v2986_v43 = vadd.f32 %v6258_v4, %v2884_v3 }
 0x60b   : > { %3961 = vst [vmem:[#allocation1 + $0x4] ss:$9 sm:$0xff] %v3401_v47  ;;  %v4380_v47 = vsel %vm4379_vm3, %v4378_v63, %v6853_v19 }
 0x60c   : > { %3962 = vst [vmem:[#allocation1 + $0x5] ss:$9 sm:$0xff] %v3402_v61  ;;  %v4187_v61 = vpop.permute.xlu2 %4186  ;;  %v3429_v39 = vperm.slane %v2986_v43, 0  ;;  %v3436_v19 = vperm.slane %v2986_v43, 7 }
 0x60d   : > { %3963 = vst [vmem:[#allocation1 + $0x6] ss:$9 sm:$0xff] %v3403_v54  ;;  %v4382_v54 = vperm.slane %v4187_v61, %v6866_v1 }
 0x60e   : > { %3964 = vst [vmem:[#allocation1 + $0x7] ss:$9 sm:$0xff] %v3404_v27 }
 0x60f   : > { %v4384_v27 = vsel %vm4383_vm4, %v4382_v54, %v4380_v47 }
 0x615   : > { %v3965_v53 = vld [vmem:[#allocation1] sm:$0xff] }
 0x616   : > { %3966 = vst [vmem:[#allocation1] ss:$9 sm:$0xff] %v3405_v16  ;;  %4288 = vperm.xlu1 %5007, %v3965_v53   ;;  %v3430_v16 = vperm.slane %v2986_v43, 1  ;;  %v4193_v53 = vpop.permute.xlu0 %4192 }
 0x617   : > { %3967 = vst [vmem:[#allocation1 + $0x1] ss:$9 sm:$0xff] %v3406_v11  ;;  %v3431_v11 = vperm.slane %v2986_v43, 2 }
 0x618   : > { %3968 = vst [vmem:[#allocation1 + $0x2] ss:$9 sm:$0xff] %v3407_v7 }
 0x619   : > { %3969 = vst [vmem:[#allocation1 + $0x3] ss:$9 sm:$0xff] %v3408_v6  ;;  %v3432_v6 = vperm.slane %v2986_v43, 3 }
 0x61a   : > { %3970 = vst [vmem:[#allocation1 + $0x4] ss:$9 sm:$0xff] %v3409_v13  ;;  %v3433_v13 = vperm.slane %v2986_v43, 4 }
 0x61b   : > { %3971 = vst [vmem:[#allocation1 + $0x5] ss:$9 sm:$0xff] %v3410_v44  ;;  %v3434_v44 = vperm.slane %v2986_v43, 5 }
 0x61c   : > { %3972 = vst [vmem:[#allocation1 + $0x6] ss:$9 sm:$0xff] %v3411_v50  ;;  %v3435_v50 = vperm.slane %v2986_v43, 6 }
 0x61d   : > { %3973 = vst [vmem:[#allocation1 + $0x7] ss:$9 sm:$0xff] %v3412_v33  ;;  %v2890_v33 = vpop.xlane.xlu1 %2889 }
 0x61e   : > { %v6873_v31 = vpop.permute.xlu0 %4201 }
 0x624   : > { %v3974_v22 = vld [vmem:[#allocation1] sm:$0xff] }
 0x625   : > { %3975 = vst [vmem:[#allocation1] ss:$9 sm:$0xff] %v3413_v32  ;;  %4291 = vperm.xlu0 %5006, %v3974_v22   ;;  %v2987_v32 = vadd.f32 %v6258_v4, %v2887_v59  ;;  %v6880_v22 = vadd.s32 4294967232, %v5296_v58 }
 0x626   : > { %3976 = vst [vmem:[#allocation1 + $0x1] ss:$9 sm:$0xff] %v3414_v48  ;;  %v6877_v48 = vadd.s32 4294967224, %v5296_v58  ;;  %v6884_v10 = vpop.permute.xlu0 %4210 }
 0x627   : > { %3977 = vst [vmem:[#allocation1 + $0x2] ss:$9 sm:$0xff] %v3415_v52  ;;  %v4190_v52 = vpop.permute.xlu1 %4189  ;;  %v3439_v3 = vperm.slane %v2987_v32, 2 }
 0x628   : > { %3978 = vst [vmem:[#allocation1 + $0x3] ss:$9 sm:$0xff] %v3416_v42  ;;  %v3437_v42 = vperm.slane %v2987_v32, 0 }
 0x629   : > { %3979 = vst [vmem:[#allocation1 + $0x4] ss:$9 sm:$0xff] %v3417_v24  ;;  %v4386_v24 = vperm.slane %v4190_v52, %v6880_v22 }
 0x62a   : > { %3980 = vst [vmem:[#allocation1 + $0x5] ss:$9 sm:$0xff] %v3418_v28  ;;  %v3438_v28 = vperm.slane %v2987_v32, 1 }
 0x62b   : > { %3981 = vst [vmem:[#allocation1 + $0x6] ss:$9 sm:$0xff] %v3419_v37  ;;  %v4388_v59 = vsel %vm4387_vm5, %v4386_v24, %v4384_v27 }
 0x62c   : > { %3982 = vst [vmem:[#allocation1 + $0x7] ss:$9 sm:$0xff] %v3420_v17  ;;  %v4390_v17 = vperm.slane %v4193_v53, %v6877_v48 }
 0x62e   : > { %v6893_v9 = vpop.permute.xlu0 %4219 }
 0x633   : > { %v3983_v14 = vld [vmem:[#allocation1] sm:$0xff] }
 0x634   : > { %3984 = vst [vmem:[#allocation1] ss:$9 sm:$0xff] %v3421_v46  ;;  %4294 = vperm.xlu2 %5008, %v3983_v14   ;;  %v3440_v46 = vperm.slane %v2987_v32, 3  ;;  %v6888_v14 = vsel %vm4391_vm6, %v4390_v17, %v4388_v59  ;;  %v2990_v59 = vadd.f32 %v6258_v4, %v6649_v0 }
 0x635   : > { %3985 = vst [vmem:[#allocation1 + $0x1] ss:$9 sm:$0xff] %v3422_v8  ;;  %v3441_v8 = vperm.slane %v2987_v32, 4 }
 0x636   : > { %3986 = vst [vmem:[#allocation1 + $0x2] ss:$9 sm:$0xff] %v3423_v18  ;;  %v3442_v18 = vperm.slane %v2987_v32, 5  ;;  %v6897_v53 = vpop.permute.xlu0 %4228 }
 0x637   : > { %3987 = vst [vmem:[#allocation1 + $0x3] ss:$9 sm:$0xff] %v3424_v21  ;;  %v3443_v21 = vperm.slane %v2987_v32, 6 }
 0x638   : > { %3988 = vst [vmem:[#allocation1 + $0x4] ss:$9 sm:$0xff] %v3425_v30  ;;  %v3444_v30 = vperm.slane %v2987_v32, 7 }
 0x639   : > { %3989 = vst [vmem:[#allocation1 + $0x5] ss:$9 sm:$0xff] %v3426_v25  ;;  %v6890_v25 = vpop.permute.xlu1 %4198 }
 0x63a   : > { %3990 = vst [vmem:[#allocation1 + $0x6] ss:$9 sm:$0xff] %v3427_v51  ;;  %v2988_v51 = vadd.f32 %v6258_v4, %v2890_v33 }
 0x63b   : > { %3991 = vst [vmem:[#allocation1 + $0x7] ss:$9 sm:$0xff] %v3428_v12 }
 0x63c   : > { %v3445_v12 = vperm.slane %v2988_v51, 0  ;;  %v3446_v47 = vperm.slane %v2988_v51, 1  ;;  %v3447_v61 = vperm.slane %v2988_v51, 2  ;;  %v3448_v54 = vperm.slane %v2988_v51, 3 }
 0x63d   : > { %v3449_v27 = vperm.slane %v2988_v51, 4 }
 0x63e   : > { %v6902_v32 = vpop.permute.xlu0 %4237 }
 0x641   : > { %v6895_v63 = vpop.permute.xlu1 %4207 }
 0x642   : > { %v3992_v7 = vld [vmem:[#allocation1] sm:$0xff] }
 0x643   : > { %3993 = vst [vmem:[#allocation1] ss:$9 sm:$0xff] %v3429_v39  ;;  %4297 = vperm.xlu1 %5007, %v3992_v7   ;;  %v3450_v39 = vperm.slane %v2988_v51, 5  ;;  %v3452_v7 = vperm.slane %v2988_v51, 7 }
 0x644   : > { %3994 = vst [vmem:[#allocation1 + $0x1] ss:$9 sm:$0xff] %v3430_v16  ;;  %v3451_v16 = vperm.slane %v2988_v51, 6  ;;  %v3461_v51 = vperm.slane %v2990_v59, 0 }
 0x645   : > { %3995 = vst [vmem:[#allocation1 + $0x2] ss:$9 sm:$0xff] %v3431_v11  ;;  %v2893_v11 = vpop.xlane.xlu2 %2892 }
 0x646   : > { %3996 = vst [vmem:[#allocation1 + $0x3] ss:$9 sm:$0xff] %v3432_v6 }
 0x647   : > { %3997 = vst [vmem:[#allocation1 + $0x4] ss:$9 sm:$0xff] %v3433_v13  ;;  %v2989_v13 = vadd.f32 %v6258_v4, %v2893_v11 }
 0x648   : > { %3998 = vst [vmem:[#allocation1 + $0x5] ss:$9 sm:$0xff] %v3434_v44 }
 0x649   : > { %3999 = vst [vmem:[#allocation1 + $0x6] ss:$9 sm:$0xff] %v3435_v50  ;;  %v6899_v6 = vpop.permute.xlu1 %4216  ;;  %v3453_v44 = vperm.slane %v2989_v13, 0  ;;  %v3454_v50 = vperm.slane %v2989_v13, 1  ;;  %v3457_v24 = vperm.slane %v2989_v13, 4  ;;  %v3460_v17 = vperm.slane %v2989_v13, 7 }
 0x64a   : > { %4000 = vst [vmem:[#allocation1 + $0x7] ss:$9 sm:$0xff] %v3436_v19  ;;  %v3455_v19 = vperm.slane %v2989_v13, 2 }
 0x651   : > { %v4001_v37 = vld [vmem:[#allocation1] sm:$0xff]  ;;  %v6904_v52 = vpop.permute.xlu1 %4225 }
 0x652   : > { %4002 = vst [vmem:[#allocation1] ss:$9 sm:$0xff] %v3437_v42  ;;  %4300 = vperm.xlu0 %5006, %v4001_v37   ;;  %v3456_v42 = vperm.slane %v2989_v13, 3  ;;  %v3459_v37 = vperm.slane %v2989_v13, 6 }
 0x653   : > { %4003 = vst [vmem:[#allocation1 + $0x1] ss:$9 sm:$0xff] %v3438_v28  ;;  %v3458_v28 = vperm.slane %v2989_v13, 5  ;;  %v3466_v13 = vperm.slane %v2990_v59, 5 }
 0x654   : > { %4004 = vst [vmem:[#allocation1 + $0x2] ss:$9 sm:$0xff] %v3439_v3 }
 0x655   : > { %4005 = vst [vmem:[#allocation1 + $0x3] ss:$9 sm:$0xff] %v3440_v46  ;;  %v6910_v46 = vpop.permute.xlu0 %4246 }
 0x656   : > { %4006 = vst [vmem:[#allocation1 + $0x4] ss:$9 sm:$0xff] %v3441_v8  ;;  %v6913_v8 = vadd.s32 4294967208, %v5296_v58 }
 0x657   : > { %4007 = vst [vmem:[#allocation1 + $0x5] ss:$9 sm:$0xff] %v3442_v18  ;;  %v6916_v18 = vadd.s32 4294967200, %v5296_v58 }
 0x658   : > { %4008 = vst [vmem:[#allocation1 + $0x6] ss:$9 sm:$0xff] %v3443_v21  ;;  %v6919_v21 = vadd.s32 4294967216, %v5296_v58 }
 0x659   : > { %4009 = vst [vmem:[#allocation1 + $0x7] ss:$9 sm:$0xff] %v3444_v30  ;;  %v6906_v3 = vpop.permute.xlu1 %4234  ;;  %v4196_v30 = vpop.permute.xlu2 %4195 }
 0x660   : > { %v4010_v43 = vld [vmem:[#allocation1] sm:$0xff] }
 0x661   : > { %4011 = vst [vmem:[#allocation1] ss:$9 sm:$0xff] %v3445_v12  ;;  %4303 = vperm.xlu2 %5008, %v4010_v43   ;;  %v4394_v12 = vperm.slane %v4196_v30, %v6919_v21  ;;  %v3462_v43 = vperm.slane %v2990_v59, 1 }
 0x662   : > { %4012 = vst [vmem:[#allocation1 + $0x1] ss:$9 sm:$0xff] %v3446_v47  ;;  %v4398_v47 = vperm.slane %v6890_v25, %v6913_v8  ;;  %v3465_v25 = vperm.slane %v2990_v59, 4 }
 0x663   : > { %4013 = vst [vmem:[#allocation1 + $0x2] ss:$9 sm:$0xff] %v3447_v61  ;;  %v3463_v61 = vperm.slane %v2990_v59, 2 }
 0x664   : > { %4014 = vst [vmem:[#allocation1 + $0x3] ss:$9 sm:$0xff] %v3448_v54  ;;  %v4402_v54 = vperm.slane %v6873_v31, %v6916_v18  ;;  %v6933_v31 = vadd.s32 4294967184, %v5296_v58 }
 0x665   : > { %4015 = vst [vmem:[#allocation1 + $0x4] ss:$9 sm:$0xff] %v3449_v27  ;;  %v4396_v27 = vsel %vm4395_vm7, %v4394_v12, %v6888_v14  ;;  %v6935_v14 = vpop.permute.xlu0 %4255 }
 0x666   : > { %4016 = vst [vmem:[#allocation1 + $0x5] ss:$9 sm:$0xff] %v3450_v39  ;;  %v6928_v39 = vpop.permute.xlu1 %4243  ;;  %v4400_v11 = vsel %vm4399_vm8, %v4398_v47, %v4396_v27 }
 0x667   : > { %4017 = vst [vmem:[#allocation1 + $0x6] ss:$9 sm:$0xff] %v3451_v16  ;;  %v3464_v16 = vperm.slane %v2990_v59, 3 }
 0x668   : > { %4018 = vst [vmem:[#allocation1 + $0x7] ss:$9 sm:$0xff] %v3452_v7  ;;  %v4404_v7 = vsel %vm4403_vm9, %v4402_v54, %v4400_v11  ;;  %v4420_v54 = vperm.slane %v6893_v9, %v6808_v26 }
 0x66f   : > { %v4019_v33 = vld [vmem:[#allocation1] sm:$0xff] }
 0x670   : > { %4306 = vperm.xlu1 %5007, %v4019_v33   ;;  %4020 = vst [vmem:[#allocation1] ss:$9 sm:$0xff] %v3453_v44  ;;  %v3467_v44 = vperm.slane %v2990_v59, 6  ;;  %v4205_v33 = vpop.permute.xlu2 %4204 }
 0x671   : > { %4021 = vst [vmem:[#allocation1 + $0x1] ss:$9 sm:$0xff] %v3454_v50  ;;  %v6938_v50 = vadd.s32 4294967192, %v5296_v58 }
 0x672   : > { %4022 = vst [vmem:[#allocation1 + $0x2] ss:$9 sm:$0xff] %v3455_v19  ;;  %v3468_v19 = vperm.slane %v2990_v59, 7 }
 0x673   : > { %4023 = vst [vmem:[#allocation1 + $0x3] ss:$9 sm:$0xff] %v3456_v42  ;;  %v4406_v42 = vperm.slane %v4205_v33, %v6938_v50 }
 0x674   : > { %4024 = vst [vmem:[#allocation1 + $0x4] ss:$9 sm:$0xff] %v3457_v24  ;;  %v4410_v24 = vperm.slane %v6895_v63, %v6933_v31 }
 0x675   : > { %4025 = vst [vmem:[#allocation1 + $0x5] ss:$9 sm:$0xff] %v3458_v28  ;;  %v4408_v28 = vsel %vm4407_vm10, %v4406_v42, %v4404_v7 }
 0x676   : > { %4026 = vst [vmem:[#allocation1 + $0x6] ss:$9 sm:$0xff] %v3459_v37  ;;  %v6944_v37 = vpop.permute.xlu1 %4252  ;;  %v6949_v59 = vsel %vm4411_vm11, %v4410_v24, %v4408_v28  ;;  %v4424_v24 = vperm.slane %v6904_v52, %v6834_v60  ;;  %v2992_v28 = vadd.f32 %v6258_v4, %v6664_v5  ;;  %v4430_v5 = vperm.slane %v6906_v3, %v6866_v1 }
 0x677   : > { %4027 = vst [vmem:[#allocation1 + $0x7] ss:$9 sm:$0xff] %v3460_v17  ;;  %v2991_v17 = vadd.f32 %v6258_v4, %v6652_v23 }
 0x679   : > { %v3469_v30 = vperm.slane %v2991_v17, 0  ;;  %v3470_v12 = vperm.slane %v2991_v17, 1  ;;  %v3472_v23 = vperm.slane %v2991_v17, 3  ;;  %v3473_v11 = vperm.slane %v2991_v17, 4 }
 0x67e   : > { %v4028_v0 = vld [vmem:[#allocation1] sm:$0xff] }
 0x67f   : > { %4029 = vst [vmem:[#allocation1] ss:$9 sm:$0xff] %v3461_v51  ;;  %4309 = vperm.xlu0 %5006, %v4028_v0   ;;  %v4214_v51 = vpop.permute.xlu2 %4213  ;;  %v4265_v0 = vpop.permute.xlu0 %4264 }
 0x680   : > { %4030 = vst [vmem:[#allocation1 + $0x1] ss:$9 sm:$0xff] %v3462_v43  ;;  %v4418_v43 = vperm.slane %v6899_v6, %v6797_v62  ;;  %v4417_v63 = vperm.slane %v4214_v51, %v5296_v58 }
 0x681   : > { %4031 = vst [vmem:[#allocation1 + $0x2] ss:$9 sm:$0xff] %v3463_v61  ;;  %v3471_v61 = vperm.slane %v2991_v17, 2 }
 0x682   : > { %4032 = vst [vmem:[#allocation1 + $0x3] ss:$9 sm:$0xff] %v3464_v16  ;;  %v4419_v27 = vsel %vm4359_vm0, %v4418_v43, %v4417_v63  ;;  %v4262_v16 = vpop.permute.xlu1 %4261  ;;  %v3477_v43 = vperm.slane %v2992_v28, 0 }
 0x683   : > { %4033 = vst [vmem:[#allocation1 + $0x4] ss:$9 sm:$0xff] %v3465_v25  ;;  %v4449_v25 = vperm.slane %v4265_v0, %v6797_v62  ;;  %v4448_v6 = vperm.slane %v4262_v16, %v5296_v58  ;;  %v4421_v7 = vsel %vm4363_vm12, %v4420_v54, %v4419_v27  ;;  %v3480_v54 = vperm.slane %v2992_v28, 3 }
 0x684   : > { %4034 = vst [vmem:[#allocation1 + $0x5] ss:$9 sm:$0xff] %v3466_v13  ;;  %v3474_v13 = vperm.slane %v2991_v17, 5  ;;  %v3482_v27 = vperm.slane %v2992_v28, 5  ;;  %v4432_v16 = vperm.slane %v6902_v32, %v6880_v22  ;;  %v4436_v32 = vperm.slane %v6928_v39, %v6919_v21 }
 0x685   : > { %4035 = vst [vmem:[#allocation1 + $0x6] ss:$9 sm:$0xff] %v3467_v44  ;;  %v3475_v44 = vperm.slane %v2991_v17, 6  ;;  %v6961_v9 = vsel %vm4359_vm0, %v4449_v25, %v4448_v6  ;;  %v3483_v25 = vperm.slane %v2992_v28, 6  ;;  %v3484_v6 = vperm.slane %v2992_v28, 7 }
 0x686   : > { %4036 = vst [vmem:[#allocation1 + $0x7] ss:$9 sm:$0xff] %v3468_v19  ;;  %v3476_v19 = vperm.slane %v2991_v17, 7 }
 0x687   : > { %v4223_v33 = vpop.permute.xlu2 %4222 }
 0x688   : > { %v4422_v42 = vperm.slane %v4223_v33, %v6837_v57 }
 0x68a   : > { %v4423_v51 = vsel %vm4367_vm15, %v4422_v42, %v4421_v7 }
 0x68d   : > { %v4037_v47 = vld [vmem:[#allocation1] sm:$0xff] }
 0x68e   : > { %4038 = vst [vmem:[#allocation1] ss:$9 sm:$0xff] %v3469_v30  ;;  %4312 = vperm.xlu2 %5008, %v4037_v47   ;;  %v4426_v30 = vperm.slane %v6897_v53, %v6848_v35  ;;  %v3478_v47 = vperm.slane %v2992_v28, 1  ;;  %v3481_v53 = vperm.slane %v2992_v28, 4 }
 0x68f   : > { %4039 = vst [vmem:[#allocation1 + $0x1] ss:$9 sm:$0xff] %v3470_v12  ;;  %v4425_v12 = vsel %vm4371_vm1, %v4424_v24, %v4423_v51  ;;  %v4232_v63 = vpop.permute.xlu2 %4231 }
 0x690   : > { %4040 = vst [vmem:[#allocation1 + $0x2] ss:$9 sm:$0xff] %v3471_v61  ;;  %v4427_v17 = vsel %vm4375_vm2, %v4426_v30, %v4425_v12  ;;  %v3479_v61 = vperm.slane %v2992_v28, 2  ;;  %v4428_v52 = vperm.slane %v4232_v63, %v6862_v41 }
 0x691   : > { %4041 = vst [vmem:[#allocation1 + $0x3] ss:$9 sm:$0xff] %v3472_v23 }
 0x692   : > { %4042 = vst [vmem:[#allocation1 + $0x4] ss:$9 sm:$0xff] %v3473_v11  ;;  %v4429_v23 = vsel %vm4379_vm3, %v4428_v52, %v4427_v17 }
 0x693   : > { %4043 = vst [vmem:[#allocation1 + $0x5] ss:$9 sm:$0xff] %v3474_v13  ;;  %v4431_v11 = vsel %vm4383_vm4, %v4430_v5, %v4429_v23 }
 0x694   : > { %4044 = vst [vmem:[#allocation1 + $0x6] ss:$9 sm:$0xff] %v3475_v44  ;;  %v4433_v7 = vsel %vm4387_vm5, %v4432_v16, %v4431_v11  ;;  %v2993_v44 = vadd.f32 %v6258_v4, %v6670_v55  ;;  %v4438_v55 = vperm.slane %v6910_v46, %v6913_v8  ;;  %v2994_v46 = vadd.f32 %v6258_v4, %v6679_v49 }
 0x695   : > { %4045 = vst [vmem:[#allocation1 + $0x7] ss:$9 sm:$0xff] %v3476_v19  ;;  %v7001_v49 = vadd.s32 4294967176, %v5296_v58 }
 0x696   : > { %v3485_v42 = vperm.slane %v2993_v44, 0  ;;  %v3486_v24 = vperm.slane %v2993_v44, 1  ;;  %v3487_v30 = vperm.slane %v2993_v44, 2  ;;  %v3488_v51 = vperm.slane %v2993_v44, 3 }
 0x697   : > { %v4241_v3 = vpop.permute.xlu2 %4240  ;;  %v3489_v12 = vperm.slane %v2993_v44, 4  ;;  %v3490_v17 = vperm.slane %v2993_v44, 5  ;;  %v3491_v39 = vperm.slane %v2993_v44, 6  ;;  %v3493_v5 = vperm.slane %v2994_v46, 0 }
 0x698   : > { %v4434_v13 = vperm.slane %v4241_v3, %v6877_v48  ;;  %v3496_v16 = vperm.slane %v2994_v46, 3  ;;  %v3497_v11 = vperm.slane %v2994_v46, 4 }
 0x69a   : > { %v4435_v19 = vsel %vm4391_vm6, %v4434_v13, %v4433_v7  ;;  %v3500_v7 = vperm.slane %v2994_v46, 7 }
 0x69b   : > { %v4437_v33 = vsel %vm4395_vm7, %v4436_v32, %v4435_v19 }
 0x69c   : > { %v4046_v0 = vld [vmem:[#allocation1] sm:$0xff] }
 0x69d   : > { %4047 = vst [vmem:[#allocation1] ss:$9 sm:$0xff] %v3477_v43  ;;  %4315 = vperm.xlu1 %5007, %v4046_v0   ;;  %v3492_v43 = vperm.slane %v2993_v44, 7  ;;  %v4439_v0 = vsel %vm4399_vm8, %v4438_v55, %v4437_v33 }
 0x69e   : > { %4048 = vst [vmem:[#allocation1 + $0x1] ss:$9 sm:$0xff] %v3478_v47 }
 0x69f   : > { %4049 = vst [vmem:[#allocation1 + $0x2] ss:$9 sm:$0xff] %v3479_v61  ;;  %v4250_v47 = vpop.permute.xlu2 %4249  ;;  %v4442_v61 = vperm.slane %v6944_v37, %v6938_v50  ;;  %v4444_v37 = vperm.slane %v6935_v14, %v6933_v31  ;;  %v2995_v14 = vadd.f32 %v6258_v4, %v6701_v29 }
 0x6a0   : > { %4050 = vst [vmem:[#allocation1 + $0x3] ss:$9 sm:$0xff] %v3480_v54  ;;  %v4440_v63 = vperm.slane %v4250_v47, %v6916_v18 }
 0x6a1   : > { %4051 = vst [vmem:[#allocation1 + $0x4] ss:$9 sm:$0xff] %v3481_v53  ;;  %v3494_v53 = vperm.slane %v2994_v46, 1  ;;  %v3501_v19 = vperm.slane %v2995_v14, 0  ;;  %v3502_v33 = vperm.slane %v2995_v14, 1  ;;  %v3508_v55 = vperm.slane %v2995_v14, 7 }
 0x6a2   : > { %4052 = vst [vmem:[#allocation1 + $0x5] ss:$9 sm:$0xff] %v3482_v27  ;;  %v4441_v52 = vsel %vm4403_vm9, %v4440_v63, %v4439_v0  ;;  %v3495_v27 = vperm.slane %v2994_v46, 2 }
 0x6a3   : > { %4053 = vst [vmem:[#allocation1 + $0x6] ss:$9 sm:$0xff] %v3483_v25  ;;  %v4443_v54 = vsel %vm4407_vm10, %v4442_v61, %v4441_v52  ;;  %v3498_v25 = vperm.slane %v2994_v46, 5 }
 0x6a4   : > { %4054 = vst [vmem:[#allocation1 + $0x7] ss:$9 sm:$0xff] %v3484_v6  ;;  %v3499_v6 = vperm.slane %v2994_v46, 6  ;;  %v4445_v13 = vsel %vm4411_vm11, %v4444_v37, %v4443_v54 }
 0x6a7   : > { %v4259_v3 = vpop.permute.xlu2 %4258 }
 0x6a8   : > { %v4446_v44 = vperm.slane %v4259_v3, %v7001_v49 }
 0x6aa   : > { %v7006_v32 = vsel %vm4415_vm13, %v4446_v44, %v4445_v13 }
 0x6ab   : > { %v4055_v28 = vld [vmem:[#allocation1] sm:$0xff] }
 0x6ac   : > { %4318 = vperm.xlu0 %5006, %v4055_v28   ;;  %4056 = vst [vmem:[#allocation1] ss:$9 sm:$0xff] %v3485_v42  ;;  %v3504_v28 = vperm.slane %v2995_v14, 3 }
 0x6ad   : > { %4057 = vst [vmem:[#allocation1 + $0x1] ss:$9 sm:$0xff] %v3486_v24  ;;  %v3503_v24 = vperm.slane %v2995_v14, 2 }
 0x6ae   : > { %4058 = vst [vmem:[#allocation1 + $0x2] ss:$9 sm:$0xff] %v3487_v30  ;;  %v3505_v30 = vperm.slane %v2995_v14, 4 }
 0x6af   : > { %4059 = vst [vmem:[#allocation1 + $0x3] ss:$9 sm:$0xff] %v3488_v51  ;;  %v3506_v51 = vperm.slane %v2995_v14, 5 }
 0x6b0   : > { %4060 = vst [vmem:[#allocation1 + $0x4] ss:$9 sm:$0xff] %v3489_v12  ;;  %v3507_v12 = vperm.slane %v2995_v14, 6 }
 0x6b1   : > { %4061 = vst [vmem:[#allocation1 + $0x5] ss:$9 sm:$0xff] %v3490_v17  ;;  %v4414_v17 = vperm.slane %v6884_v10, %v7001_v49 }
 0x6b2   : > { %4062 = vst [vmem:[#allocation1 + $0x6] ss:$9 sm:$0xff] %v3491_v39  ;;  %v2996_v39 = vadd.f32 %v6258_v4, %v6718_v40  ;;  %v2997_v40 = vadd.f32 %v6258_v4, %v6726_v34  ;;  %v2998_v34 = vadd.f32 %v6258_v4, %v6733_v38  ;;  %v2999_v38 = vadd.f32 %v6258_v4, %v6739_v56 }
 0x6b3   : > { %4063 = vst [vmem:[#allocation1 + $0x7] ss:$9 sm:$0xff] %v3492_v43  ;;  %v7014_v29 = vsel %vm4415_vm13, %v4414_v17, %v6949_v59  ;;  %v3000_v56 = vadd.f32 %v6258_v4, %v6748_v36  ;;  %v3001_v36 = vadd.f32 %v6258_v4, %v6758_v45  ;;  %v3002_v45 = vadd.f32 %v6258_v4, %v6764_v15 }
 0x6b4   : > { %v3509_v43 = vperm.slane %v2996_v39, 0  ;;  %v3510_v47 = vperm.slane %v2996_v39, 1  ;;  %v3511_v63 = vperm.slane %v2996_v39, 2  ;;  %v3512_v61 = vperm.slane %v2996_v39, 3 }
 0x6b5   : > { %v3513_v10 = vperm.slane %v2996_v39, 4  ;;  %v3514_v52 = vperm.slane %v2996_v39, 5  ;;  %v3515_v46 = vperm.slane %v2996_v39, 6  ;;  %v3516_v59 = vperm.slane %v2996_v39, 7 }
 0x6b6   : > { %v3517_v54 = vperm.slane %v2997_v40, 0  ;;  %v3524_v37 = vperm.slane %v2997_v40, 7  ;;  %v3527_v13 = vperm.slane %v2998_v34, 2  ;;  %v3528_v44 = vperm.slane %v2998_v34, 3 }
 0x6b7   : > { %v3529_v14 = vperm.slane %v2998_v34, 4  ;;  %v3535_v17 = vperm.slane %v2999_v38, 2  ;;  %v3537_v39 = vperm.slane %v2999_v38, 4  ;;  %v3003_v15 = vadd.f32 %v6258_v4, %v6774_v20 }
 0x6b8   : > { %v3004_v20 = vadd.f32 %v6258_v4, %v6783_v2  ;;  %v4268_v4 = vpop.permute.xlu2 %4267  ;;  %v4271_v2 = vpop.permute.xlu1 %4270 }
 0x6ba   : > { %v4064_v23 = vld [vmem:[#allocation1] sm:$0xff] }
 0x6bb   : > { %4321 = vperm.xlu2 %5008, %v4064_v23   ;;  %4065 = vst [vmem:[#allocation1] ss:$9 sm:$0xff] %v3493_v5  ;;  %v3518_v5 = vperm.slane %v2997_v40, 1  ;;  %v3519_v23 = vperm.slane %v2997_v40, 2 }
 0x6bc   : > { %4066 = vst [vmem:[#allocation1 + $0x1] ss:$9 sm:$0xff] %v3494_v53 }
 0x6bd   : > { %4067 = vst [vmem:[#allocation1 + $0x2] ss:$9 sm:$0xff] %v3495_v27  ;;  %v3520_v27 = vperm.slane %v2997_v40, 3 }
 0x6be   : > { %4068 = vst [vmem:[#allocation1 + $0x3] ss:$9 sm:$0xff] %v3496_v16  ;;  %v3521_v16 = vperm.slane %v2997_v40, 4 }
 0x6bf   : > { %4069 = vst [vmem:[#allocation1 + $0x4] ss:$9 sm:$0xff] %v3497_v11  ;;  %v3522_v11 = vperm.slane %v2997_v40, 5 }
 0x6c0   : > { %4070 = vst [vmem:[#allocation1 + $0x5] ss:$9 sm:$0xff] %v3498_v25  ;;  %v3523_v25 = vperm.slane %v2997_v40, 6  ;;  %v3548_v40 = vperm.slane %v3000_v56, 7 }
 0x6c1   : > { %4071 = vst [vmem:[#allocation1 + $0x6] ss:$9 sm:$0xff] %v3499_v6  ;;  %v3525_v6 = vperm.slane %v2998_v34, 0 }
 0x6c2   : > { %4072 = vst [vmem:[#allocation1 + $0x7] ss:$9 sm:$0xff] %v3500_v7  ;;  %v3526_v7 = vperm.slane %v2998_v34, 1 }
 0x6c9   : > { %v4073_v42 = vld [vmem:[#allocation1] sm:$0xff] }
 0x6ca   : > { %4324 = vperm.xlu1 %5007, %v4073_v42   ;;  %4074 = vst [vmem:[#allocation1] ss:$9 sm:$0xff] %v3501_v19  ;;  %v3530_v19 = vperm.slane %v2998_v34, 5  ;;  %v3532_v42 = vperm.slane %v2998_v34, 7 }
 0x6cb   : > { %4075 = vst [vmem:[#allocation1 + $0x1] ss:$9 sm:$0xff] %v3502_v33  ;;  %v3531_v33 = vperm.slane %v2998_v34, 6  ;;  %v3557_v34 = vperm.slane %v3002_v45, 0 }
 0x6cc   : > { %4076 = vst [vmem:[#allocation1 + $0x2] ss:$9 sm:$0xff] %v3503_v24  ;;  %v4510_v24 = vrot.slane %v7006_v32, 7  ;;  %v3538_v32 = vperm.slane %v2999_v38, 5 }
 0x6cd   : > { %4077 = vst [vmem:[#allocation1 + $0x3] ss:$9 sm:$0xff] %v3504_v28 }
 0x6ce   : > { %4078 = vst [vmem:[#allocation1 + $0x4] ss:$9 sm:$0xff] %v3505_v30  ;;  %v7026_v28 = vsel %vm4513_vm14, %v7014_v29, %v4510_v24  ;;  %v3533_v30 = vperm.slane %v2999_v38, 0  ;;  %v3541_v29 = vperm.slane %v3000_v56, 0  ;;  %v3566_v24 = vperm.slane %v3003_v15, 1 }
 0x6cf   : > { %4079 = vst [vmem:[#allocation1 + $0x5] ss:$9 sm:$0xff] %v3506_v51  ;;  %v3534_v51 = vperm.slane %v2999_v38, 1 }
 0x6d0   : > { %4080 = vst [vmem:[#allocation1 + $0x6] ss:$9 sm:$0xff] %v3507_v12 }
 0x6d1   : > { %4081 = vst [vmem:[#allocation1 + $0x7] ss:$9 sm:$0xff] %v3508_v55  ;;  %v3536_v55 = vperm.slane %v2999_v38, 3 }
 0x6d8   : > { %v4082_v0 = vld [vmem:[#allocation1] sm:$0xff] }
 0x6d9   : > { %4327 = vperm.xlu0 %5006, %v4082_v0   ;;  %4083 = vst [vmem:[#allocation1] ss:$9 sm:$0xff] %v3509_v43  ;;  %v3539_v43 = vperm.slane %v2999_v38, 6  ;;  %v3542_v0 = vperm.slane %v3000_v56, 1 }
 0x6da   : > { %4084 = vst [vmem:[#allocation1 + $0x1] ss:$9 sm:$0xff] %v3510_v47  ;;  %v3540_v47 = vperm.slane %v2999_v38, 7 }
 0x6db   : > { %4085 = vst [vmem:[#allocation1 + $0x2] ss:$9 sm:$0xff] %v3511_v63 }
 0x6dc   : > { %4086 = vst [vmem:[#allocation1 + $0x3] ss:$9 sm:$0xff] %v3512_v61  ;;  %v3543_v61 = vperm.slane %v3000_v56, 2 }
 0x6dd   : > { %4087 = vst [vmem:[#allocation1 + $0x4] ss:$9 sm:$0xff] %v3513_v10  ;;  %v3544_v10 = vperm.slane %v3000_v56, 3 }
 0x6de   : > { %4088 = vst [vmem:[#allocation1 + $0x5] ss:$9 sm:$0xff] %v3514_v52  ;;  %v3545_v52 = vperm.slane %v3000_v56, 4 }
 0x6df   : > { %4089 = vst [vmem:[#allocation1 + $0x6] ss:$9 sm:$0xff] %v3515_v46  ;;  %v3546_v46 = vperm.slane %v3000_v56, 5 }
 0x6e0   : > { %4090 = vst [vmem:[#allocation1 + $0x7] ss:$9 sm:$0xff] %v3516_v59  ;;  %v3547_v59 = vperm.slane %v3000_v56, 6  ;;  %v3575_v56 = vperm.slane %v3004_v20, 2 }
 0x6e7   : > { %v4091_v53 = vld [vmem:[#allocation1] sm:$0xff] }
 0x6e8   : > { %4330 = vperm.xlu2 %5008, %v4091_v53   ;;  %4092 = vst [vmem:[#allocation1] ss:$9 sm:$0xff] %v3517_v54  ;;  %v3549_v54 = vperm.slane %v3001_v36, 0 }
 0x6e9   : > { %4093 = vst [vmem:[#allocation1 + $0x1] ss:$9 sm:$0xff] %v3518_v5  ;;  %v3550_v5 = vperm.slane %v3001_v36, 1 }
 0x6ea   : > { %4094 = vst [vmem:[#allocation1 + $0x2] ss:$9 sm:$0xff] %v3519_v23  ;;  %v3551_v23 = vperm.slane %v3001_v36, 2 }
 0x6eb   : > { %4095 = vst [vmem:[#allocation1 + $0x3] ss:$9 sm:$0xff] %v3520_v27  ;;  %v3552_v27 = vperm.slane %v3001_v36, 3 }
 0x6ec   : > { %4096 = vst [vmem:[#allocation1 + $0x4] ss:$9 sm:$0xff] %v3521_v16  ;;  %v3553_v16 = vperm.slane %v3001_v36, 4 }
 0x6ed   : > { %4097 = vst [vmem:[#allocation1 + $0x5] ss:$9 sm:$0xff] %v3522_v11  ;;  %v3554_v11 = vperm.slane %v3001_v36, 5 }
 0x6ee   : > { %4098 = vst [vmem:[#allocation1 + $0x6] ss:$9 sm:$0xff] %v3523_v25  ;;  %v3555_v25 = vperm.slane %v3001_v36, 6 }
 0x6ef   : > { %4099 = vst [vmem:[#allocation1 + $0x7] ss:$9 sm:$0xff] %v3524_v37  ;;  %v3556_v37 = vperm.slane %v3001_v36, 7 }
 0x6f6   : > { %v4100_v3 = vld [vmem:[#allocation1] sm:$0xff] }
 0x6f7   : > { %4333 = vperm.xlu1 %5007, %v4100_v3   ;;  %4101 = vst [vmem:[#allocation1] ss:$9 sm:$0xff] %v3525_v6  ;;  %v3558_v6 = vperm.slane %v3002_v45, 1  ;;  %v3559_v3 = vperm.slane %v3002_v45, 2 }
 0x6f8   : > { %4102 = vst [vmem:[#allocation1 + $0x1] ss:$9 sm:$0xff] %v3526_v7 }
 0x6f9   : > { %4103 = vst [vmem:[#allocation1 + $0x2] ss:$9 sm:$0xff] %v3527_v13  ;;  %v3560_v13 = vperm.slane %v3002_v45, 3 }
 0x6fa   : > { %4104 = vst [vmem:[#allocation1 + $0x3] ss:$9 sm:$0xff] %v3528_v44  ;;  %v3561_v44 = vperm.slane %v3002_v45, 4 }
 0x6fb   : > { %4105 = vst [vmem:[#allocation1 + $0x4] ss:$9 sm:$0xff] %v3529_v14  ;;  %v3562_v14 = vperm.slane %v3002_v45, 5 }
 0x6fc   : > { %4106 = vst [vmem:[#allocation1 + $0x5] ss:$9 sm:$0xff] %v3530_v19  ;;  %v3563_v19 = vperm.slane %v3002_v45, 6 }
 0x6fd   : > { %4107 = vst [vmem:[#allocation1 + $0x6] ss:$9 sm:$0xff] %v3531_v33  ;;  %v3564_v33 = vperm.slane %v3002_v45, 7 }
 0x6fe   : > { %4108 = vst [vmem:[#allocation1 + $0x7] ss:$9 sm:$0xff] %v3532_v42  ;;  %v3565_v42 = vperm.slane %v3003_v15, 0 }
 0x705   : > { %v4109_v12 = vld [vmem:[#allocation1] sm:$0xff] }
 0x706   : > { %4336 = vperm.xlu0 %5006, %v4109_v12   ;;  %4110 = vst [vmem:[#allocation1] ss:$9 sm:$0xff] %v3533_v30  ;;  %v3567_v30 = vperm.slane %v3003_v15, 2  ;;  %v3569_v12 = vperm.slane %v3003_v15, 4 }
 0x707   : > { %4111 = vst [vmem:[#allocation1 + $0x1] ss:$9 sm:$0xff] %v3534_v51  ;;  %v3568_v51 = vperm.slane %v3003_v15, 3 }
 0x708   : > { %4112 = vst [vmem:[#allocation1 + $0x2] ss:$9 sm:$0xff] %v3535_v17  ;;  %v3570_v17 = vperm.slane %v3003_v15, 5 }
 0x709   : > { %4113 = vst [vmem:[#allocation1 + $0x3] ss:$9 sm:$0xff] %v3536_v55  ;;  %v3571_v55 = vperm.slane %v3003_v15, 6 }
 0x70a   : > { %4114 = vst [vmem:[#allocation1 + $0x4] ss:$9 sm:$0xff] %v3537_v39  ;;  %v3572_v39 = vperm.slane %v3003_v15, 7 }
 0x70b   : > { %4115 = vst [vmem:[#allocation1 + $0x5] ss:$9 sm:$0xff] %v3538_v32  ;;  %v3573_v32 = vperm.slane %v3004_v20, 0 }
 0x70c   : > { %4116 = vst [vmem:[#allocation1 + $0x6] ss:$9 sm:$0xff] %v3539_v43  ;;  %v3574_v43 = vperm.slane %v3004_v20, 1 }
 0x70d   : > { %4117 = vst [vmem:[#allocation1 + $0x7] ss:$9 sm:$0xff] %v3540_v47 }
 0x714   : > { %v4118_v63 = vld [vmem:[#allocation1] sm:$0xff] }
 0x715   : > { %4339 = vperm.xlu2 %5008, %v4118_v63   ;;  %4119 = vst [vmem:[#allocation1] ss:$9 sm:$0xff] %v3541_v29  ;;  %v3576_v29 = vperm.slane %v3004_v20, 3  ;;  %v3578_v63 = vperm.slane %v3004_v20, 5 }
 0x716   : > { %4120 = vst [vmem:[#allocation1 + $0x1] ss:$9 sm:$0xff] %v3542_v0  ;;  %v3577_v0 = vperm.slane %v3004_v20, 4 }
 0x717   : > { %4121 = vst [vmem:[#allocation1 + $0x2] ss:$9 sm:$0xff] %v3543_v61  ;;  %v3579_v61 = vperm.slane %v3004_v20, 6 }
 0x718   : > { %4122 = vst [vmem:[#allocation1 + $0x3] ss:$9 sm:$0xff] %v3544_v10  ;;  %v3580_v10 = vperm.slane %v3004_v20, 7 }
 0x719   : > { %4123 = vst [vmem:[#allocation1 + $0x4] ss:$9 sm:$0xff] %v3545_v52 }
 0x71a   : > { %4124 = vst [vmem:[#allocation1 + $0x5] ss:$9 sm:$0xff] %v3546_v46  ;;  %v4274_v46 = vpop.permute.xlu0 %4273 }
 0x71b   : > { %4125 = vst [vmem:[#allocation1 + $0x6] ss:$9 sm:$0xff] %v3547_v59  ;;  %v4277_v59 = vpop.permute.xlu2 %4276  ;;  %v4455_v15 = vperm.slane %v4274_v46, %v6834_v60 }
 0x71c   : > { %4126 = vst [vmem:[#allocation1 + $0x7] ss:$9 sm:$0xff] %v3548_v40  ;;  %v4280_v40 = vpop.permute.xlu1 %4279 }
 0x722   : > { %v4283_v36 = vpop.permute.xlu0 %4282 }
 0x723   : > { %v4127_v53 = vld [vmem:[#allocation1] sm:$0xff] }
 0x724   : > { %4342 = vperm.xlu1 %5007, %v4127_v53   ;;  %4128 = vst [vmem:[#allocation1] ss:$9 sm:$0xff] %v3549_v54  ;;  %v4286_v54 = vpop.permute.xlu2 %4285 }
 0x725   : > { %4129 = vst [vmem:[#allocation1 + $0x1] ss:$9 sm:$0xff] %v3550_v5  ;;  %v4289_v5 = vpop.permute.xlu1 %4288  ;;  %v4463_v20 = vperm.slane %v4286_v54, %v6880_v22 }
 0x726   : > { %4130 = vst [vmem:[#allocation1 + $0x2] ss:$9 sm:$0xff] %v3551_v23 }
 0x727   : > { %4131 = vst [vmem:[#allocation1 + $0x3] ss:$9 sm:$0xff] %v3552_v27 }
 0x728   : > { %4132 = vst [vmem:[#allocation1 + $0x4] ss:$9 sm:$0xff] %v3553_v16 }
 0x729   : > { %4133 = vst [vmem:[#allocation1 + $0x5] ss:$9 sm:$0xff] %v3554_v11 }
 0x72a   : > { %4134 = vst [vmem:[#allocation1 + $0x6] ss:$9 sm:$0xff] %v3555_v25  ;;  %v4292_v53 = vpop.permute.xlu0 %4291 }
 0x72b   : > { %4135 = vst [vmem:[#allocation1 + $0x7] ss:$9 sm:$0xff] %v3556_v37 }
 0x72c   : > { %v4295_v23 = vpop.permute.xlu2 %4294 }
 0x72d   : > { %v4298_v27 = vpop.permute.xlu1 %4297 }
 0x732   : > { %v4136_v7 = vld [vmem:[#allocation1] sm:$0xff]  ;;  %v7038_v16 = vpop.permute.xlu0 %4300 }
 0x733   : > { %4345 = vperm.xlu0 %5006, %v4136_v7   ;;  %4137 = vst [vmem:[#allocation1] ss:$9 sm:$0xff] %v3557_v34 }
 0x734   : > { %4138 = vst [vmem:[#allocation1 + $0x1] ss:$9 sm:$0xff] %v3558_v6  ;;  %v7040_v11 = vpop.permute.xlu2 %4303  ;;  %v4451_v6 = vperm.slane %v4268_v4, %v6808_v26  ;;  %v4469_v4 = vperm.slane %v4295_v23, %v6913_v8 }
 0x735   : > { %4139 = vst [vmem:[#allocation1 + $0x2] ss:$9 sm:$0xff] %v3559_v3  ;;  %v7042_v25 = vpop.permute.xlu1 %4306 }
 0x736   : > { %4140 = vst [vmem:[#allocation1 + $0x3] ss:$9 sm:$0xff] %v3560_v13  ;;  %v4452_v3 = vsel %vm4363_vm12, %v4451_v6, %v6961_v9  ;;  %v4453_v13 = vperm.slane %v4271_v2, %v6837_v57 }
 0x737   : > { %4141 = vst [vmem:[#allocation1 + $0x4] ss:$9 sm:$0xff] %v3561_v44 }
 0x738   : > { %4142 = vst [vmem:[#allocation1 + $0x5] ss:$9 sm:$0xff] %v3562_v14 }
 0x739   : > { %4143 = vst [vmem:[#allocation1 + $0x6] ss:$9 sm:$0xff] %v3563_v19  ;;  %v4454_v19 = vsel %vm4367_vm15, %v4453_v13, %v4452_v3 }
 0x73a   : > { %4144 = vst [vmem:[#allocation1 + $0x7] ss:$9 sm:$0xff] %v3564_v33  ;;  %v4310_v37 = vpop.permute.xlu0 %4309  ;;  %v4457_v33 = vperm.slane %v4277_v59, %v6848_v35 }
 0x73c   : > { %v4313_v34 = vpop.permute.xlu2 %4312 }
 0x73d   : > { %v4316_v45 = vpop.permute.xlu1 %4315 }
 0x73e   : > { %v4482_v9 = vperm.slane %v4316_v45, %v6808_v26 }
 0x741   : > { %v4145_v38 = vld [vmem:[#allocation1] sm:$0xff] }
 0x742   : > { %4348 = vperm.xlu2 %5008, %v4145_v38   ;;  %4146 = vst [vmem:[#allocation1] ss:$9 sm:$0xff] %v3565_v42  ;;  %v4319_v7 = vpop.permute.xlu0 %4318 }
 0x743   : > { %4147 = vst [vmem:[#allocation1 + $0x1] ss:$9 sm:$0xff] %v3566_v24  ;;  %v4456_v24 = vsel %vm4371_vm1, %v4455_v15, %v4454_v19 }
 0x744   : > { %4148 = vst [vmem:[#allocation1 + $0x2] ss:$9 sm:$0xff] %v3567_v30  ;;  %v4322_v14 = vpop.permute.xlu2 %4321  ;;  %v4458_v38 = vsel %vm4375_vm2, %v4457_v33, %v4456_v24  ;;  %v4479_v30 = vperm.slane %v4310_v37, %v5296_v58 }
 0x745   : > { %4149 = vst [vmem:[#allocation1 + $0x3] ss:$9 sm:$0xff] %v3568_v51  ;;  %v4325_v44 = vpop.permute.xlu1 %4324  ;;  %v4459_v51 = vperm.slane %v4280_v40, %v6862_v41 }
 0x746   : > { %4150 = vst [vmem:[#allocation1 + $0x4] ss:$9 sm:$0xff] %v3569_v12  ;;  %v4480_v12 = vperm.slane %v4313_v34, %v6797_v62  ;;  %v4488_v62 = vperm.slane %v4325_v44, %v6848_v35  ;;  %v4467_v35 = vperm.slane %v4292_v53, %v6919_v21  ;;  %v4471_v53 = vperm.slane %v4298_v27, %v6916_v18 }
 0x747   : > { %4151 = vst [vmem:[#allocation1 + $0x5] ss:$9 sm:$0xff] %v3570_v17  ;;  %v4484_v17 = vperm.slane %v4319_v7, %v6837_v57  ;;  %v4473_v27 = vperm.slane %v7038_v16, %v6938_v50  ;;  %v4477_v16 = vperm.slane %v7042_v25, %v7001_v49 }
 0x748   : > { %4152 = vst [vmem:[#allocation1 + $0x6] ss:$9 sm:$0xff] %v3571_v55 }
 0x749   : > { %4153 = vst [vmem:[#allocation1 + $0x7] ss:$9 sm:$0xff] %v3572_v39  ;;  %v4460_v39 = vsel %vm4379_vm3, %v4459_v51, %v4458_v38 }
 0x74b   : > { %v4328_v42 = vpop.permute.xlu0 %4327 }
 0x750   : > { %v4154_v47 = vld [vmem:[#allocation1] sm:$0xff] }
 0x751   : > { %4351 = vperm.xlu1 %5007, %v4154_v47   ;;  %4155 = vst [vmem:[#allocation1] ss:$9 sm:$0xff] %v3573_v32  ;;  %v4331_v32 = vpop.permute.xlu2 %4330  ;;  %v4481_v47 = vsel %vm4359_vm0, %v4480_v12, %v4479_v30  ;;  %vm4515_vm0 = vcmask 1042434   ;;  %v7209_v30 = vlaneseq }
 0x752   : > { %4156 = vst [vmem:[#allocation1 + $0x1] ss:$9 sm:$0xff] %v3574_v43  ;;  %v4461_v43 = vperm.slane %v4283_v36, %v6866_v1  ;;  %v4483_v58 = vsel %vm4363_vm12, %v4482_v9, %v4481_v47  ;;  %vm4517_vm12 = vcmask 1041408  }
 0x753   : > { %4157 = vst [vmem:[#allocation1 + $0x2] ss:$9 sm:$0xff] %v3575_v56  ;;  %v4485_v26 = vsel %vm4367_vm15, %v4484_v17, %v4483_v58  ;;  %vm4522_vm15 = vcmp.lt.s32.totalorder %v7209_v30, 512 }
 0x754   : > { %4158 = vst [vmem:[#allocation1 + $0x3] ss:$9 sm:$0xff] %v3576_v29  ;;  %v4462_v56 = vsel %vm4383_vm4, %v4461_v43, %v4460_v39 }
 0x755   : > { %4159 = vst [vmem:[#allocation1 + $0x4] ss:$9 sm:$0xff] %v3577_v0  ;;  %v4464_v57 = vsel %vm4387_vm5, %v4463_v20, %v4462_v56  ;;  %v4486_v0 = vperm.slane %v4322_v14, %v6834_v60 }
 0x756   : > { %4160 = vst [vmem:[#allocation1 + $0x5] ss:$9 sm:$0xff] %v3578_v63  ;;  %v4490_v63 = vperm.slane %v4328_v42, %v6862_v41  ;;  %v4492_v41 = vperm.slane %v4331_v32, %v6866_v1 }
 0x757   : > { %4161 = vst [vmem:[#allocation1 + $0x6] ss:$9 sm:$0xff] %v3579_v61  ;;  %v4465_v61 = vperm.slane %v4289_v5, %v6877_v48 }
 0x758   : > { %4162 = vst [vmem:[#allocation1 + $0x7] ss:$9 sm:$0xff] %v3580_v10  ;;  %v4487_v10 = vsel %vm4371_vm1, %v4486_v0, %v4485_v26 }
 0x759   : > { %v4489_v2 = vsel %vm4375_vm2, %v4488_v62, %v4487_v10 }
 0x75a   : > { %v4491_v59 = vsel %vm4379_vm3, %v4490_v63, %v4489_v2 }
 0x75b   : > { %v4493_v23 = vsel %vm4383_vm4, %v4492_v41, %v4491_v59 }
 0x75f   : > { %v4163_v52 = vld [vmem:[#allocation1] sm:$0xff] }
 0x760   : > { %4354 = vperm.xlu0 %5006, %v4163_v52   ;;  %v4466_v52 = vsel %vm4391_vm6, %v4465_v61, %v4464_v57 }
 0x761   : > { %v4468_v54 = vsel %vm4395_vm7, %v4467_v35, %v4466_v52 }
 0x762   : > { %v4470_v5 = vsel %vm4399_vm8, %v4469_v4, %v4468_v54 }
 0x763   : > { %v4472_v1 = vsel %vm4403_vm9, %v4471_v53, %v4470_v5 }
 0x764   : > { %v4474_v14 = vsel %vm4407_vm10, %v4473_v27, %v4472_v1 }
 0x769   : > { %v4334_v55 = vpop.permute.xlu1 %4333 }
 0x76a   : > { %v4494_v60 = vperm.slane %v4334_v55, %v6880_v22 }
 0x76c   : > { %v4495_v45 = vsel %vm4387_vm5, %v4494_v60, %v4493_v23 }
 0x76f   : > { %v4340_v40 = vpop.permute.xlu2 %4339 }
 0x770   : > { %v4498_v6 = vperm.slane %v4340_v40, %v6919_v21 }
 0x778   : > { %v4337_v29 = vpop.permute.xlu0 %4336 }
 0x779   : > { %v4496_v36 = vperm.slane %v4337_v29, %v6877_v48  ;;  %v4475_v48 = vperm.slane %v7040_v11, %v6933_v31 }
 0x77b   : > { %v4497_v34 = vsel %vm4391_vm6, %v4496_v36, %v4495_v45  ;;  %v4476_v11 = vsel %vm4411_vm11, %v4475_v48, %v4474_v14 }
 0x77c   : > { %v4499_v44 = vsel %vm4395_vm7, %v4498_v6, %v4497_v34  ;;  %v4478_v15 = vsel %vm4415_vm13, %v4477_v16, %v4476_v11 }
 0x796   : > { %v4343_v46 = vpop.permute.xlu1 %4342 }
 0x797   : > { %v4500_v22 = vperm.slane %v4343_v46, %v6913_v8 }
 0x799   : > { %v4501_v8 = vsel %vm4399_vm8, %v4500_v22, %v4499_v44 }
 0x79c   : > { %v4349_v13 = vpop.permute.xlu2 %4348 }
 0x79d   : > { %v4504_v19 = vperm.slane %v4349_v13, %v6938_v50  ;;  %v4511_v50 = vrot.slane %v4478_v15, 6 }
 0x7a5   : > { %v4346_v37 = vpop.permute.xlu0 %4345 }
 0x7a6   : > { %v4502_v7 = vperm.slane %v4346_v37, %v6916_v18 }
 0x7a8   : > { %v4503_v21 = vsel %vm4403_vm9, %v4502_v7, %v4501_v8 }
 0x7a9   : > { %v4505_v42 = vsel %vm4407_vm10, %v4504_v19, %v4503_v21 }
 0x7c3   : > { %v4352_v3 = vpop.permute.xlu1 %4351 }
 0x7c4   : > { %v4506_v18 = vperm.slane %v4352_v3, %v6933_v31 }
 0x7c6   : > { %v4507_v38 = vsel %vm4411_vm11, %v4506_v18, %v4505_v42 }
 0x7d2   : > { %v4355_v33 = vpop.permute.xlu0 %4354 }
 0x7d3   : > { %v4508_v24 = vperm.slane %v4355_v33, %v7001_v49 }
 0x7d5   : > { %v4509_v31 = vsel %vm4415_vm13, %v4508_v24, %v4507_v38 }
 0x7d6   : > { %v4512_v25 = vrot.slane %v4509_v31, 5 }
 0x7d8   : > { %v4516_v51 = vsel %vm4515_vm0, %v4511_v50, %v4512_v25 }
 0x7d9   : > { %v4518_v49 = vsel %vm4517_vm12, %v7026_v28, %v4516_v51 }
 0x7da   : > { %4524 = vst.msk [vmem:[%s343_s8] sm:$0xf] %vm4522_vm15, %v4518_v49 }
 0x7db   : > { %5045 = shalt.err (!%p5042_p3)
}
 0x7dc   : > { %4965 = dma.vmem_to_hbm [thread:$0]  (%p5175_p5), %s4539_s18, 64, %s4541_s22, %s4526_s23  }
 0x7dd PF: > { %p4971_p4 = scmp.ge.s32.totalorder %s5080_s14, 2  ;;  %s4552_s24 = sand.u32 1, %s5068_s11  }
 0x7de   : > { %s4553_s15 = scalar_lea.sflag [#allocation4], %s4552_s24 }
 0x7df   : > { %p4968_p7 = pnand %p4971_p4, %p5179_p6 }
 0x7e1   : > { %p4969_p8 = pneg %p4968_p7 }
 0x7e3   : > { %5063 = dma.done.wait (%p4969_p8), %s4553_s15, 64  }
 0x7e4   : > { %5065 = vsyncadd (%p4969_p8), %s4553_s15, 4294967232  ;;  %p20_p9 = scmp.ge.s32.totalorder %s5162_s16, 4   ;;  %s7210_s11 = smov %s5072_s12 }
 0x7e5   : > { %s7211_s12 = smov %s5076_s13  ;;  %s7212_s13 = smov %s5173_s19 }
 0x7e6   : > { %s7213_s14 = smov %s5162_s16  ;;  %22 = sbr.rel (!%p20_p9) target bundleno = 5 (0x5), region = 101 }
 0x7eb   :  { %4559 = vsyncpa [#allocation4], 1 }
 0x7ec   :  { %4561 = vsyncpa [#allocation4 + $0x1], 1 }

</bundles_post_ra>
